<compile_context>
chip_gen: v7x
topology: tpu7x:2x2x1
jax: 0.10.0
libtpu: 0.0.40
codegen_flags: <defaults>
</compile_context>

<pallas_src>
import functools

import jax
import jax.numpy as jnp
from jax.experimental import pallas as pl
from jax.experimental.pallas import tpu as pltpu

LANES = 128      # all matmul output channels padded to a full vreg lane width
N1_REAL, N1_PAD = 196, 208   # 14*14 pooled conv1 positions, padded to sublane multiple
N2_REAL, N2_PAD = 25, 32     # 5*5  pooled conv2 positions, padded to sublane multiple


def _round_up(x, m):
    return (x + m - 1) // m * m


# ----------------------------- Pallas kernels ------------------------------


def _conv_relu_pool_kernel(a_ref, w_ref, b_ref, o_ref, *, n_pad):
    """Fused conv-as-matmul + 2x2 maxpool + bias + ReLU for one image.

    a_ref: (1, 4*n_pad, K) bf16 -- im2col patches, pool window major in the row dim
    w_ref: (K, 128)        bf16 -- flattened conv weight, out-channels zero-padded
    b_ref: (1, 128)        f32
    o_ref: (1, n_pad, 128) bf16 -- pooled activations (row p = pooled position p)
    """
    # ONE long MXU matmul (M = 4*n_pad) instead of 4 short ones.
    acc = jnp.dot(a_ref[0], w_ref[...], preferred_element_type=jnp.float32)
    # 2x2 max over the 4 pool-window row blocks (offsets are multiples of 8).
    m = jnp.maximum(
        jnp.maximum(acc[0 * n_pad:1 * n_pad], acc[1 * n_pad:2 * n_pad]),
        jnp.maximum(acc[2 * n_pad:3 * n_pad], acc[3 * n_pad:4 * n_pad]))
    # Single bias + ReLU after the max (shared bias, monotone ReLU -> identical math).
    o_ref[0] = jnp.maximum(m + b_ref[...], 0.0).astype(o_ref.dtype)


def conv_relu_pool(patches, w, b, n_pad):
    """patches: (B, 4*n_pad, K); w: (K, 128); b: (1, 128) -> (B, n_pad, 128) bf16."""
    bsz, rows, k = patches.shape
    return pl.pallas_call(
        functools.partial(_conv_relu_pool_kernel, n_pad=n_pad),
        out_shape=jax.ShapeDtypeStruct((bsz, n_pad, LANES), jnp.bfloat16),
        grid=(bsz,),
        in_specs=[
            pl.BlockSpec((1, rows, k), lambda i: (i, 0, 0)),
            pl.BlockSpec((k, LANES), lambda i: (0, 0)),
            pl.BlockSpec((1, LANES), lambda i: (0, 0)),
        ],
        out_specs=pl.BlockSpec((1, n_pad, LANES), lambda i: (i, 0, 0)),
        compiler_params=pltpu.CompilerParams(
            dimension_semantics=("parallel",)),
    )(patches, w, b)


def _conv2_fc_kernel(a_ref, w2_ref, b2_ref, w1k_ref, bf1_ref, wf2_ref, bf2_ref,
                     wf3_ref, bf3_ref, o_ref, pooled_ref, *, n_pad, n_real):
    """conv2(+ReLU+pool) fused with fc1->ReLU->fc2->ReLU->fc3 for one image.

    a_ref:    (1, 4*n_pad, K2) bf16 im2col patches of the pooled conv1 output
    w1k_ref:  (n_real, 128, 128) bf16 fc1 weight, position-major (PyTorch flatten folded in)
    pooled_ref: (n_pad, 128) f32 VMEM scratch -- pooled conv2 activations, never leave VMEM
    o_ref:    (1, 1, 128) f32 padded logits
    """
    acc = jnp.dot(a_ref[0], w2_ref[...], preferred_element_type=jnp.float32)
    m = jnp.maximum(
        jnp.maximum(acc[0 * n_pad:1 * n_pad], acc[1 * n_pad:2 * n_pad]),
        jnp.maximum(acc[2 * n_pad:3 * n_pad], acc[3 * n_pad:4 * n_pad]))
    # Padded lanes stay exactly 0 (zero weight cols AND zero bias entries), so fc1's
    # contraction over the padded channel lanes is exact.
    pooled_ref[...] = jnp.maximum(m + b2_ref[...], 0.0)          # (n_pad, 128) f32

    # fc1: contract the pooled (n_real, 128) block over BOTH (position, channel) axes
    # via n_real statically-unrolled accumulating (1,128)x(128,128) dots.
    h = jnp.zeros((1, LANES), jnp.float32)
    for p in range(n_real):
        row = pooled_ref[pl.ds(p, 1), :].astype(jnp.bfloat16)    # (1, 128)
        h = h + jnp.dot(row, w1k_ref[p], preferred_element_type=jnp.float32)
    h = jnp.maximum(h + bf1_ref[...], 0.0).astype(jnp.bfloat16)

    h = jnp.dot(h, wf2_ref[...], preferred_element_type=jnp.float32)
    h = jnp.maximum(h + bf2_ref[...], 0.0).astype(jnp.bfloat16)

    out = jnp.dot(h, wf3_ref[...], preferred_element_type=jnp.float32) + bf3_ref[...]
    o_ref[0] = out


def conv2_fc(patches, p):
    """patches: (B, 4*N2_PAD, K2) bf16 -> (B, 128) f32 padded logits."""
    bsz, rows, k = patches.shape
    vec = lambda i: (0, 0)  # noqa: E731  (weights/biases: same block every step)
    out = pl.pallas_call(
        functools.partial(_conv2_fc_kernel, n_pad=N2_PAD, n_real=N2_REAL),
        out_shape=jax.ShapeDtypeStruct((bsz, 1, LANES), jnp.float32),
        grid=(bsz,),
        in_specs=[
            pl.BlockSpec((1, rows, k), lambda i: (i, 0, 0)),
            pl.BlockSpec((k, LANES), vec),                       # conv2 weight
            pl.BlockSpec((1, LANES), vec),                       # conv2 bias
            pl.BlockSpec((N2_REAL, LANES, LANES), lambda i: (0, 0, 0)),  # fc1 weight
            pl.BlockSpec((1, LANES), vec),                       # fc1 bias
            pl.BlockSpec((LANES, LANES), vec),                   # fc2 weight
            pl.BlockSpec((1, LANES), vec),                       # fc2 bias
            pl.BlockSpec((LANES, LANES), vec),                   # fc3 weight
            pl.BlockSpec((1, LANES), vec),                       # fc3 bias
        ],
        out_specs=pl.BlockSpec((1, 1, LANES), lambda i: (i, 0, 0)),
        scratch_shapes=[pltpu.VMEM((N2_PAD, LANES), jnp.float32)],
        compiler_params=pltpu.CompilerParams(
            dimension_semantics=("parallel",)),
    )(patches, p["w2"], p["b2"], p["fc1_w"], p["fc1_b"], p["fc2_w"], p["fc2_b"],
      p["fc3_w"], p["fc3_b"])
    return out.reshape(bsz, LANES)


# ------------------------------ JAX glue -----------------------------------


def _pool_major_patches(x_nhwc, kh, kw, k_pad, n_pad):
    """im2col + arrange rows so the 2x2 maxpool window is folded into the M dim.

    x_nhwc: (B, H, W, C) -> (B, 4*n_pad, k_pad) bf16; row index = window*n_pad + pooled
    position.  The K columns follow lax.conv_general_dilated_patches' feature order
    (the same op flattens the conv weights, so ordering is consistent by construction);
    padded rows/columns are zero.
    """
    bsz, h, w, c = x_nhwc.shape
    oh, ow = h - kh + 1, w - kw + 1
    ph, pw = oh // 2, ow // 2
    k = c * kh * kw
    p = jax.lax.conv_general_dilated_patches(
        x_nhwc, (kh, kw), (1, 1), "VALID",
        dimension_numbers=("NHWC", "HWIO", "NHWC"))          # (B, oh, ow, K)
    p = p.reshape(bsz, ph, 2, pw, 2, k)
    p = jnp.transpose(p, (0, 2, 4, 1, 3, 5))                 # (B, 2, 2, ph, pw, K)
    p = p.reshape(bsz, 4, ph * pw, k)
    p = jnp.pad(p, ((0, 0), (0, 0), (0, n_pad - ph * pw), (0, k_pad - k)))
    return p.reshape(bsz, 4 * n_pad, k_pad).astype(jnp.bfloat16), ph, pw


def _conv_weight_matrix(w_oihw, k_pad):
    """(out, Cin, kh, kw) PyTorch conv weight -> (k_pad, 128) matmul weight whose row
    order matches conv_general_dilated_patches' feature order (built *with* that op)."""
    out_ch, c, kh, kw = w_oihw.shape
    w_nhwc = jnp.transpose(w_oihw, (0, 2, 3, 1))             # (out, kh, kw, C)
    cols = jax.lax.conv_general_dilated_patches(
        w_nhwc, (kh, kw), (1, 1), "VALID",
        dimension_numbers=("NHWC", "HWIO", "NHWC"))          # (out, 1, 1, C*kh*kw)
    mat = cols.reshape(out_ch, c * kh * kw).T                # (K, out)
    mat = jnp.pad(mat, ((0, k_pad - mat.shape[0]), (0, LANES - out_ch)))
    return mat.astype(jnp.bfloat16)


def _pad_bias(b):
    return jnp.pad(b, (0, LANES - b.shape[0])).reshape(1, LANES).astype(jnp.float32)


def init_raw_params(key):
    """PyTorch-default-style uniform init, in PyTorch layouts."""
    ks = jax.random.split(key, 10)

    def unif(k, shape, fan_in):
        bound = 1.0 / float(fan_in) ** 0.5
        return jax.random.uniform(k, shape, jnp.float32, -bound, bound)

    return {
        "conv1_w": unif(ks[0], (6, 3, 5, 5), 75), "conv1_b": unif(ks[1], (6,), 75),
        "conv2_w": unif(ks[2], (16, 6, 5, 5), 150), "conv2_b": unif(ks[3], (16,), 150),
        "fc1_w": unif(ks[4], (120, 400), 400), "fc1_b": unif(ks[5], (120,), 400),
        "fc2_w": unif(ks[6], (84, 120), 120), "fc2_b": unif(ks[7], (84,), 120),
        "fc3_w": unif(ks[8], (10, 84), 84), "fc3_b": unif(ks[9], (10,), 84),
    }


def pack_params(raw):
    """Convert PyTorch-layout params into padded, bf16 kernel-side layouts.

    NOTE: correctness of the in-kernel fc1 contraction relies on (a) conv2's padded
    weight columns and padded bias entries being exactly zero (so padded channel lanes
    of the pooled activation are exactly zero) and (b) fc1_w being zero in all padded
    (channel >= 16, out >= 120) slots.  Both hold by construction below (zeros + .set).
    """
    k1 = _round_up(3 * 5 * 5, LANES)      # 75  -> 128
    k2 = _round_up(6 * 5 * 5, LANES)      # 150 -> 256

    # fc1 consumes the kernel-side pooled conv2 block (position, padded-channel);
    # fold PyTorch's x.view(-1, 16*5*5) (C, H, W) flatten into a (25, 128, 128)
    # position-major weight: fc1_w[p, c, o] = raw[o, c*25 + p].
    fc1 = raw["fc1_w"].reshape(120, 16, 5, 5)                # (o, c, h, w)
    fc1 = jnp.transpose(fc1, (2, 3, 1, 0)).reshape(25, 16, 120)
    fc1k = jnp.zeros((N2_REAL, LANES, LANES), jnp.float32).at[:, :16, :120].set(fc1)

    fc2e = jnp.zeros((LANES, LANES), jnp.float32).at[:120, :84].set(raw["fc2_w"].T)
    fc3e = jnp.zeros((LANES, LANES), jnp.float32).at[:84, :10].set(raw["fc3_w"].T)

    return {
        "w1": _conv_weight_matrix(raw["conv1_w"], k1), "b1": _pad_bias(raw["conv1_b"]),
        "w2": _conv_weight_matrix(raw["conv2_w"], k2), "b2": _pad_bias(raw["conv2_b"]),
        "fc1_w": fc1k.astype(jnp.bfloat16), "fc1_b": _pad_bias(raw["fc1_b"]),
        "fc2_w": fc2e.astype(jnp.bfloat16), "fc2_b": _pad_bias(raw["fc2_b"]),
        "fc3_w": fc3e.astype(jnp.bfloat16), "fc3_b": _pad_bias(raw["fc3_b"]),
    }


def net_forward(x_nchw, params):
    bsz = x_nchw.shape[0]
    x = jnp.transpose(x_nchw, (0, 2, 3, 1))                            # NHWC

    # conv1 (3->6, k=5) + ReLU + 2x2 maxpool: one fused Pallas kernel, one matmul/image
    p1, ph1, pw1 = _pool_major_patches(x, 5, 5, params["w1"].shape[0], N1_PAD)
    y1 = conv_relu_pool(p1, params["w1"], params["b1"], N1_PAD)        # (B, 208, 128)
    y1 = y1[:, :ph1 * pw1, :6].reshape(bsz, ph1, pw1, 6)               # (B, 14, 14, 6)

    # conv2 (6->16, k=5) + ReLU + pool + full FC stack: ONE fused Pallas kernel
    p2, _, _ = _pool_major_patches(y1, 5, 5, params["w2"].shape[0], N2_PAD)
    logits = conv2_fc(p2, params)                                      # (B, 128) f32
    return logits[:, :10]


def net_forward_reference(x, raw):
    """Pure-JAX/XLA reference of the PyTorch Net forward (f32)."""
    def conv(z, w, b):
        y = jax.lax.conv_general_dilated(
            z, w, (1, 1), "VALID",
            dimension_numbers=("NCHW", "OIHW", "NCHW"))
        return jax.nn.relu(y + b[None, :, None, None])

    def pool(z):
        return jax.lax.reduce_window(z, -jnp.inf, jax.lax.max,
                                     (1, 1, 2, 2), (1, 1, 2, 2), "VALID")

    y = pool(conv(x, raw["conv1_w"], raw["conv1_b"]))
    y = pool(conv(y, raw["conv2_w"], raw["conv2_b"]))
    flat = y.reshape(y.shape[0], -1)                                   # NCHW flatten
    h = jax.nn.relu(flat @ raw["fc1_w"].T + raw["fc1_b"])
    h = jax.nn.relu(h @ raw["fc2_w"].T + raw["fc2_b"])
    return h @ raw["fc3_w"].T + raw["fc3_b"]


if __name__ == "__main__":
    key = jax.random.PRNGKey(0)
    k_param, k_x = jax.random.split(key)
    raw = init_raw_params(k_param)
    params = pack_params(raw)
    # Net's forward implies 32x32 spatial input (16*5*5 flatten). Batch = 2.
    x = jax.random.normal(k_x, (2, 3, 32, 32), dtype=jnp.float32)

    fwd = jax.jit(net_forward)
    out = jax.block_until_ready(fwd(x, params))
    assert out.shape == (2, 10), out.shape
    assert out.dtype == jnp.float32

    # Sanity-check vs a pure-JAX reference (loose tolerance: bf16 MXU operands).
    ref = jax.jit(net_forward_reference)(x, raw)
    err = float(jnp.max(jnp.abs(out - ref)))
    assert err < 0.15, f"max |pallas - reference| = {err}"

    print("KERNEL_OK")
</pallas_src>

<mosaic_0001>
module attributes {stable_mosaic.version = 11 : i64} {
  func.func @_conv_relu_pool_kernel(%arg0: i32, %arg1: memref<1x832x128xbf16, #tpu.memory_space<vmem>>, %arg2: memref<128x128xbf16, #tpu.memory_space<vmem>>, %arg3: memref<1x128xf32, #tpu.memory_space<vmem>>, %arg4: memref<1x208x128xbf16, #tpu.memory_space<vmem>>) attributes {dimension_semantics = [#tpu.dimension_semantics<parallel>], iteration_bounds = array<i64: 2>, scalar_prefetch = 0 : i64, scratch_operands = 0 : i64, tpu.core_type = #tpu.core_type<tc>, window_params = [{transform_indices = @transform_0, window_bounds = array<i64: 1, 832, 128>}, {pipeline_mode = #tpu.pipeline_mode<synchronous>, transform_indices = @transform_1, window_bounds = array<i64: 128, 128>}, {pipeline_mode = #tpu.pipeline_mode<synchronous>, transform_indices = @transform_2, window_bounds = array<i64: 1, 128>}, {transform_indices = @transform_3, window_bounds = array<i64: 1, 208, 128>}]} {
    %c0 = arith.constant 0 : index
    %c0_0 = arith.constant 0 : index
    %c0_1 = arith.constant 0 : index
    %0 = vector.load %arg1[%c0, %c0_0, %c0_1] : memref<1x832x128xbf16, #tpu.memory_space<vmem>>, vector<1x832x128xbf16>
    %1 = vector.shape_cast %0 : vector<1x832x128xbf16> to vector<832x128xbf16>
    %c0_2 = arith.constant 0 : index
    %c0_3 = arith.constant 0 : index
    %2 = vector.load %arg2[%c0_2, %c0_3] : memref<128x128xbf16, #tpu.memory_space<vmem>>, vector<128x128xbf16>
    %cst = arith.constant dense<0.000000e+00> : vector<832x128xf32>
    %3 = tpu.matmul %1, %2, %cst {dimension_numbers = #tpu.dot_dimension_numbers<[1], [0], [0], [1], [0, 0, 1, 1], [], []>} : vector<832x128xbf16>, vector<128x128xbf16>, vector<832x128xf32> -> vector<832x128xf32>
    %4 = vector.extract_strided_slice %3 {offsets = [0, 0], sizes = [208, 128], strides = [1, 1]} : vector<832x128xf32> to vector<208x128xf32>
    %5 = vector.extract_strided_slice %3 {offsets = [208, 0], sizes = [208, 128], strides = [1, 1]} : vector<832x128xf32> to vector<208x128xf32>
    %6 = arith.maximumf %4, %5 : vector<208x128xf32>
    %7 = vector.extract_strided_slice %3 {offsets = [416, 0], sizes = [208, 128], strides = [1, 1]} : vector<832x128xf32> to vector<208x128xf32>
    %8 = vector.extract_strided_slice %3 {offsets = [624, 0], sizes = [208, 128], strides = [1, 1]} : vector<832x128xf32> to vector<208x128xf32>
    %9 = arith.maximumf %7, %8 : vector<208x128xf32>
    %10 = arith.maximumf %6, %9 : vector<208x128xf32>
    %c0_4 = arith.constant 0 : index
    %c0_5 = arith.constant 0 : index
    %11 = vector.load %arg3[%c0_4, %c0_5] : memref<1x128xf32, #tpu.memory_space<vmem>>, vector<1x128xf32>
    %12 = vector.broadcast %11 : vector<1x128xf32> to vector<208x128xf32>
    %13 = arith.addf %10, %12 : vector<208x128xf32>
    %cst_6 = arith.constant 0.000000e+00 : f32
    %14 = vector.broadcast %cst_6 : f32 to vector<208x128xf32>
    %15 = arith.maximumf %13, %14 : vector<208x128xf32>
    %16 = arith.truncf %15 : vector<208x128xf32> to vector<208x128xbf16>
    %c0_7 = arith.constant 0 : index
    %c0_8 = arith.constant 0 : index
    %c0_9 = arith.constant 0 : index
    %17 = vector.load %arg4[%c0_7, %c0_8, %c0_9] : memref<1x208x128xbf16, #tpu.memory_space<vmem>>, vector<1x208x128xbf16>
    %18 = vector.shape_cast %17 : vector<1x208x128xbf16> to vector<208x128xbf16>
    %19 = vector.shape_cast %16 : vector<208x128xbf16> to vector<1x208x128xbf16>
    tpu.vector_store %arg4[%c0_7, %c0_8, %c0_9], %19 {strides = array<i32>} : memref<1x208x128xbf16, #tpu.memory_space<vmem>>, vector<1x208x128xbf16>,
    return
  }
  func.func @transform_0(%arg0: i32) -> (i32, i32, i32) {
    %c0_i32 = arith.constant 0 : i32
    %c0_i32_0 = arith.constant 0 : i32
    %c0_i32_1 = arith.constant 0 : i32
    return %arg0, %c0_i32, %c0_i32_0 : i32, i32, i32
  }
  func.func @transform_1(%arg0: i32) -> (i32, i32) {
    %c0_i32 = arith.constant 0 : i32
    %c0_i32_0 = arith.constant 0 : i32
    %c0_i32_1 = arith.constant 0 : i32
    return %c0_i32, %c0_i32_0 : i32, i32
  }
  func.func @transform_2(%arg0: i32) -> (i32, i32) {
    %c0_i32 = arith.constant 0 : i32
    %c0_i32_0 = arith.constant 0 : i32
    %c0_i32_1 = arith.constant 0 : i32
    return %c0_i32, %c0_i32_0 : i32, i32
  }
  func.func @transform_3(%arg0: i32) -> (i32, i32, i32) {
    %c0_i32 = arith.constant 0 : i32
    %c0_i32_0 = arith.constant 0 : i32
    %c0_i32_1 = arith.constant 0 : i32
    return %arg0, %c0_i32, %c0_i32_0 : i32, i32, i32
  }
}

module attributes {stable_mosaic.version = 11 : i64} {
  func.func @_conv2_fc_kernel(%arg0: i32, %arg1: memref<1x128x256xbf16, #tpu.memory_space<vmem>>, %arg2: memref<256x128xbf16, #tpu.memory_space<vmem>>, %arg3: memref<1x128xf32, #tpu.memory_space<vmem>>, %arg4: memref<25x128x128xbf16, #tpu.memory_space<vmem>>, %arg5: memref<1x128xf32, #tpu.memory_space<vmem>>, %arg6: memref<128x128xbf16, #tpu.memory_space<vmem>>, %arg7: memref<1x128xf32, #tpu.memory_space<vmem>>, %arg8: memref<128x128xbf16, #tpu.memory_space<vmem>>, %arg9: memref<1x128xf32, #tpu.memory_space<vmem>>, %arg10: memref<1x1x128xf32, #tpu.memory_space<vmem>>, %arg11: memref<32x128xf32, #tpu.memory_space<vmem>>) attributes {dimension_semantics = [#tpu.dimension_semantics<parallel>], iteration_bounds = array<i64: 2>, scalar_prefetch = 0 : i64, scratch_operands = 1 : i64, tpu.core_type = #tpu.core_type<tc>, window_params = [{transform_indices = @transform_0, window_bounds = array<i64: 1, 128, 256>}, {pipeline_mode = #tpu.pipeline_mode<synchronous>, transform_indices = @transform_1, window_bounds = array<i64: 256, 128>}, {pipeline_mode = #tpu.pipeline_mode<synchronous>, transform_indices = @transform_2, window_bounds = array<i64: 1, 128>}, {pipeline_mode = #tpu.pipeline_mode<synchronous>, transform_indices = @transform_3, window_bounds = array<i64: 25, 128, 128>}, {pipeline_mode = #tpu.pipeline_mode<synchronous>, transform_indices = @transform_4, window_bounds = array<i64: 1, 128>}, {pipeline_mode = #tpu.pipeline_mode<synchronous>, transform_indices = @transform_5, window_bounds = array<i64: 128, 128>}, {pipeline_mode = #tpu.pipeline_mode<synchronous>, transform_indices = @transform_6, window_bounds = array<i64: 1, 128>}, {pipeline_mode = #tpu.pipeline_mode<synchronous>, transform_indices = @transform_7, window_bounds = array<i64: 128, 128>}, {pipeline_mode = #tpu.pipeline_mode<synchronous>, transform_indices = @transform_8, window_bounds = array<i64: 1, 128>}, {transform_indices = @transform_9, window_bounds = array<i64: 1, 1, 128>}]} {
    %c0 = arith.constant 0 : index
    %c0_0 = arith.constant 0 : index
    %c0_1 = arith.constant 0 : index
    %0 = vector.load %arg1[%c0, %c0_0, %c0_1] : memref<1x128x256xbf16, #tpu.memory_space<vmem>>, vector<1x128x256xbf16>
    %1 = vector.shape_cast %0 : vector<1x128x256xbf16> to vector<128x256xbf16>
    %c0_2 = arith.constant 0 : index
    %c0_3 = arith.constant 0 : index
    %2 = vector.load %arg2[%c0_2, %c0_3] : memref<256x128xbf16, #tpu.memory_space<vmem>>, vector<256x128xbf16>
    %cst = arith.constant dense<0.000000e+00> : vector<128x128xf32>
    %3 = tpu.matmul %1, %2, %cst {dimension_numbers = #tpu.dot_dimension_numbers<[1], [0], [0], [1], [0, 0, 1, 1], [], []>} : vector<128x256xbf16>, vector<256x128xbf16>, vector<128x128xf32> -> vector<128x128xf32>
    %4 = vector.extract_strided_slice %3 {offsets = [0, 0], sizes = [32, 128], strides = [1, 1]} : vector<128x128xf32> to vector<32x128xf32>
    %5 = vector.extract_strided_slice %3 {offsets = [32, 0], sizes = [32, 128], strides = [1, 1]} : vector<128x128xf32> to vector<32x128xf32>
    %6 = arith.maximumf %4, %5 : vector<32x128xf32>
    %7 = vector.extract_strided_slice %3 {offsets = [64, 0], sizes = [32, 128], strides = [1, 1]} : vector<128x128xf32> to vector<32x128xf32>
    %8 = vector.extract_strided_slice %3 {offsets = [96, 0], sizes = [32, 128], strides = [1, 1]} : vector<128x128xf32> to vector<32x128xf32>
    %9 = arith.maximumf %7, %8 : vector<32x128xf32>
    %10 = arith.maximumf %6, %9 : vector<32x128xf32>
    %c0_4 = arith.constant 0 : index
    %c0_5 = arith.constant 0 : index
    %11 = vector.load %arg3[%c0_4, %c0_5] : memref<1x128xf32, #tpu.memory_space<vmem>>, vector<1x128xf32>
    %12 = vector.broadcast %11 : vector<1x128xf32> to vector<32x128xf32>
    %13 = arith.addf %10, %12 : vector<32x128xf32>
    %cst_6 = arith.constant 0.000000e+00 : f32
    %14 = vector.broadcast %cst_6 : f32 to vector<32x128xf32>
    %15 = arith.maximumf %13, %14 : vector<32x128xf32>
    %c0_7 = arith.constant 0 : index
    %c0_8 = arith.constant 0 : index
    %16 = vector.load %arg11[%c0_7, %c0_8] : memref<32x128xf32, #tpu.memory_space<vmem>>, vector<32x128xf32>
    tpu.vector_store %arg11[%c0_7, %c0_8], %15 {strides = array<i32>} : memref<32x128xf32, #tpu.memory_space<vmem>>, vector<32x128xf32>,
    %cst_9 = arith.constant 0.000000e+00 : f32
    %17 = vector.broadcast %cst_9 : f32 to vector<1x128xf32>
    %c0_10 = arith.constant 0 : index
    %c0_11 = arith.constant 0 : index
    %18 = vector.load %arg11[%c0_10, %c0_11] : memref<32x128xf32, #tpu.memory_space<vmem>>, vector<1x128xf32>
    %19 = arith.truncf %18 : vector<1x128xf32> to vector<1x128xbf16>
    %c0_12 = arith.constant 0 : index
    %c0_13 = arith.constant 0 : index
    %c0_14 = arith.constant 0 : index
    %20 = vector.load %arg4[%c0_12, %c0_13, %c0_14] : memref<25x128x128xbf16, #tpu.memory_space<vmem>>, vector<1x128x128xbf16>
    %21 = vector.shape_cast %20 : vector<1x128x128xbf16> to vector<128x128xbf16>
    %cst_15 = arith.constant dense<0.000000e+00> : vector<1x128xf32>
    %22 = tpu.matmul %19, %21, %cst_15 {dimension_numbers = #tpu.dot_dimension_numbers<[1], [0], [0], [1], [0, 0, 1, 1], [], []>} : vector<1x128xbf16>, vector<128x128xbf16>, vector<1x128xf32> -> vector<1x128xf32>
    %23 = arith.addf %17, %22 : vector<1x128xf32>
    %c1 = arith.constant 1 : index
    %c0_16 = arith.constant 0 : index
    %24 = vector.load %arg11[%c1, %c0_16] : memref<32x128xf32, #tpu.memory_space<vmem>>, vector<1x128xf32>
    %25 = arith.truncf %24 : vector<1x128xf32> to vector<1x128xbf16>
    %c1_17 = arith.constant 1 : index
    %c0_18 = arith.constant 0 : index
    %c0_19 = arith.constant 0 : index
    %26 = vector.load %arg4[%c1_17, %c0_18, %c0_19] : memref<25x128x128xbf16, #tpu.memory_space<vmem>>, vector<1x128x128xbf16>
    %27 = vector.shape_cast %26 : vector<1x128x128xbf16> to vector<128x128xbf16>
    %cst_20 = arith.constant dense<0.000000e+00> : vector<1x128xf32>
    %28 = tpu.matmul %25, %27, %cst_20 {dimension_numbers = #tpu.dot_dimension_numbers<[1], [0], [0], [1], [0, 0, 1, 1], [], []>} : vector<1x128xbf16>, vector<128x128xbf16>, vector<1x128xf32> -> vector<1x128xf32>
    %29 = arith.addf %23, %28 : vector<1x128xf32>
    %c2 = arith.constant 2 : index
    %c0_21 = arith.constant 0 : index
    %30 = vector.load %arg11[%c2, %c0_21] : memref<32x128xf32, #tpu.memory_space<vmem>>, vector<1x128xf32>
    %31 = arith.truncf %30 : vector<1x128xf32> to vector<1x128xbf16>
    %c2_22 = arith.constant 2 : index
    %c0_23 = arith.constant 0 : index
    %c0_24 = arith.constant 0 : index
    %32 = vector.load %arg4[%c2_22, %c0_23, %c0_24] : memref<25x128x128xbf16, #tpu.memory_space<vmem>>, vector<1x128x128xbf16>
    %33 = vector.shape_cast %32 : vector<1x128x128xbf16> to vector<128x128xbf16>
    %cst_25 = arith.constant dense<0.000000e+00> : vector<1x128xf32>
    %34 = tpu.matmul %31, %33, %cst_25 {dimension_numbers = #tpu.dot_dimension_numbers<[1], [0], [0], [1], [0, 0, 1, 1], [], []>} : vector<1x128xbf16>, vector<128x128xbf16>, vector<1x128xf32> -> vector<1x128xf32>
    %35 = arith.addf %29, %34 : vector<1x128xf32>
    %c3 = arith.constant 3 : index
    %c0_26 = arith.constant 0 : index
    %36 = vector.load %arg11[%c3, %c0_26] : memref<32x128xf32, #tpu.memory_space<vmem>>, vector<1x128xf32>
    %37 = arith.truncf %36 : vector<1x128xf32> to vector<1x128xbf16>
    %c3_27 = arith.constant 3 : index
    %c0_28 = arith.constant 0 : index
    %c0_29 = arith.constant 0 : index
    %38 = vector.load %arg4[%c3_27, %c0_28, %c0_29] : memref<25x128x128xbf16, #tpu.memory_space<vmem>>, vector<1x128x128xbf16>
    %39 = vector.shape_cast %38 : vector<1x128x128xbf16> to vector<128x128xbf16>
    %cst_30 = arith.constant dense<0.000000e+00> : vector<1x128xf32>
    %40 = tpu.matmul %37, %39, %cst_30 {dimension_numbers = #tpu.dot_dimension_numbers<[1], [0], [0], [1], [0, 0, 1, 1], [], []>} : vector<1x128xbf16>, vector<128x128xbf16>, vector<1x128xf32> -> vector<1x128xf32>
    %41 = arith.addf %35, %40 : vector<1x128xf32>
    %c4 = arith.constant 4 : index
    %c0_31 = arith.constant 0 : index
    %42 = vector.load %arg11[%c4, %c0_31] : memref<32x128xf32, #tpu.memory_space<vmem>>, vector<1x128xf32>
    %43 = arith.truncf %42 : vector<1x128xf32> to vector<1x128xbf16>
    %c4_32 = arith.constant 4 : index
    %c0_33 = arith.constant 0 : index
    %c0_34 = arith.constant 0 : index
    %44 = vector.load %arg4[%c4_32, %c0_33, %c0_34] : memref<25x128x128xbf16, #tpu.memory_space<vmem>>, vector<1x128x128xbf16>
    %45 = vector.shape_cast %44 : vector<1x128x128xbf16> to vector<128x128xbf16>
    %cst_35 = arith.constant dense<0.000000e+00> : vector<1x128xf32>
    %46 = tpu.matmul %43, %45, %cst_35 {dimension_numbers = #tpu.dot_dimension_numbers<[1], [0], [0], [1], [0, 0, 1, 1], [], []>} : vector<1x128xbf16>, vector<128x128xbf16>, vector<1x128xf32> -> vector<1x128xf32>
    %47 = arith.addf %41, %46 : vector<1x128xf32>
    %c5 = arith.constant 5 : index
    %c0_36 = arith.constant 0 : index
    %48 = vector.load %arg11[%c5, %c0_36] : memref<32x128xf32, #tpu.memory_space<vmem>>, vector<1x128xf32>
    %49 = arith.truncf %48 : vector<1x128xf32> to vector<1x128xbf16>
    %c5_37 = arith.constant 5 : index
    %c0_38 = arith.constant 0 : index
    %c0_39 = arith.constant 0 : index
    %50 = vector.load %arg4[%c5_37, %c0_38, %c0_39] : memref<25x128x128xbf16, #tpu.memory_space<vmem>>, vector<1x128x128xbf16>
    %51 = vector.shape_cast %50 : vector<1x128x128xbf16> to vector<128x128xbf16>
    %cst_40 = arith.constant dense<0.000000e+00> : vector<1x128xf32>
    %52 = tpu.matmul %49, %51, %cst_40 {dimension_numbers = #tpu.dot_dimension_numbers<[1], [0], [0], [1], [0, 0, 1, 1], [], []>} : vector<1x128xbf16>, vector<128x128xbf16>, vector<1x128xf32> -> vector<1x128xf32>
    %53 = arith.addf %47, %52 : vector<1x128xf32>
    %c6 = arith.constant 6 : index
    %c0_41 = arith.constant 0 : index
    %54 = vector.load %arg11[%c6, %c0_41] : memref<32x128xf32, #tpu.memory_space<vmem>>, vector<1x128xf32>
    %55 = arith.truncf %54 : vector<1x128xf32> to vector<1x128xbf16>
    %c6_42 = arith.constant 6 : index
    %c0_43 = arith.constant 0 : index
    %c0_44 = arith.constant 0 : index
    %56 = vector.load %arg4[%c6_42, %c0_43, %c0_44] : memref<25x128x128xbf16, #tpu.memory_space<vmem>>, vector<1x128x128xbf16>
    %57 = vector.shape_cast %56 : vector<1x128x128xbf16> to vector<128x128xbf16>
    %cst_45 = arith.constant dense<0.000000e+00> : vector<1x128xf32>
    %58 = tpu.matmul %55, %57, %cst_45 {dimension_numbers = #tpu.dot_dimension_numbers<[1], [0], [0], [1], [0, 0, 1, 1], [], []>} : vector<1x128xbf16>, vector<128x128xbf16>, vector<1x128xf32> -> vector<1x128xf32>
    %59 = arith.addf %53, %58 : vector<1x128xf32>
    %c7 = arith.constant 7 : index
    %c0_46 = arith.constant 0 : index
    %60 = vector.load %arg11[%c7, %c0_46] : memref<32x128xf32, #tpu.memory_space<vmem>>, vector<1x128xf32>
    %61 = arith.truncf %60 : vector<1x128xf32> to vector<1x128xbf16>
    %c7_47 = arith.constant 7 : index
    %c0_48 = arith.constant 0 : index
    %c0_49 = arith.constant 0 : index
    %62 = vector.load %arg4[%c7_47, %c0_48, %c0_49] : memref<25x128x128xbf16, #tpu.memory_space<vmem>>, vector<1x128x128xbf16>
    %63 = vector.shape_cast %62 : vector<1x128x128xbf16> to vector<128x128xbf16>
    %cst_50 = arith.constant dense<0.000000e+00> : vector<1x128xf32>
    %64 = tpu.matmul %61, %63, %cst_50 {dimension_numbers = #tpu.dot_dimension_numbers<[1], [0], [0], [1], [0, 0, 1, 1], [], []>} : vector<1x128xbf16>, vector<128x128xbf16>, vector<1x128xf32> -> vector<1x128xf32>
    %65 = arith.addf %59, %64 : vector<1x128xf32>
    %c8 = arith.constant 8 : index
    %c0_51 = arith.constant 0 : index
    %66 = vector.load %arg11[%c8, %c0_51] : memref<32x128xf32, #tpu.memory_space<vmem>>, vector<1x128xf32>
    %67 = arith.truncf %66 : vector<1x128xf32> to vector<1x128xbf16>
    %c8_52 = arith.constant 8 : index
    %c0_53 = arith.constant 0 : index
    %c0_54 = arith.constant 0 : index
    %68 = vector.load %arg4[%c8_52, %c0_53, %c0_54] : memref<25x128x128xbf16, #tpu.memory_space<vmem>>, vector<1x128x128xbf16>
    %69 = vector.shape_cast %68 : vector<1x128x128xbf16> to vector<128x128xbf16>
    %cst_55 = arith.constant dense<0.000000e+00> : vector<1x128xf32>
    %70 = tpu.matmul %67, %69, %cst_55 {dimension_numbers = #tpu.dot_dimension_numbers<[1], [0], [0], [1], [0, 0, 1, 1], [], []>} : vector<1x128xbf16>, vector<128x128xbf16>, vector<1x128xf32> -> vector<1x128xf32>
    %71 = arith.addf %65, %70 : vector<1x128xf32>
    %c9 = arith.constant 9 : index
    %c0_56 = arith.constant 0 : index
    %72 = vector.load %arg11[%c9, %c0_56] : memref<32x128xf32, #tpu.memory_space<vmem>>, vector<1x128xf32>
    %73 = arith.truncf %72 : vector<1x128xf32> to vector<1x128xbf16>
    %c9_57 = arith.constant 9 : index
    %c0_58 = arith.constant 0 : index
    %c0_59 = arith.constant 0 : index
    %74 = vector.load %arg4[%c9_57, %c0_58, %c0_59] : memref<25x128x128xbf16, #tpu.memory_space<vmem>>, vector<1x128x128xbf16>
    %75 = vector.shape_cast %74 : vector<1x128x128xbf16> to vector<128x128xbf16>
    %cst_60 = arith.constant dense<0.000000e+00> : vector<1x128xf32>
    %76 = tpu.matmul %73, %75, %cst_60 {dimension_numbers = #tpu.dot_dimension_numbers<[1], [0], [0], [1], [0, 0, 1, 1], [], []>} : vector<1x128xbf16>, vector<128x128xbf16>, vector<1x128xf32> -> vector<1x128xf32>
    %77 = arith.addf %71, %76 : vector<1x128xf32>
    %c10 = arith.constant 10 : index
    %c0_61 = arith.constant 0 : index
    %78 = vector.load %arg11[%c10, %c0_61] : memref<32x128xf32, #tpu.memory_space<vmem>>, vector<1x128xf32>
    %79 = arith.truncf %78 : vector<1x128xf32> to vector<1x128xbf16>
    %c10_62 = arith.constant 10 : index
    %c0_63 = arith.constant 0 : index
    %c0_64 = arith.constant 0 : index
    %80 = vector.load %arg4[%c10_62, %c0_63, %c0_64] : memref<25x128x128xbf16, #tpu.memory_space<vmem>>, vector<1x128x128xbf16>
    %81 = vector.shape_cast %80 : vector<1x128x128xbf16> to vector<128x128xbf16>
    %cst_65 = arith.constant dense<0.000000e+00> : vector<1x128xf32>
    %82 = tpu.matmul %79, %81, %cst_65 {dimension_numbers = #tpu.dot_dimension_numbers<[1], [0], [0], [1], [0, 0, 1, 1], [], []>} : vector<1x128xbf16>, vector<128x128xbf16>, vector<1x128xf32> -> vector<1x128xf32>
    %83 = arith.addf %77, %82 : vector<1x128xf32>
    %c11 = arith.constant 11 : index
    %c0_66 = arith.constant 0 : index
    %84 = vector.load %arg11[%c11, %c0_66] : memref<32x128xf32, #tpu.memory_space<vmem>>, vector<1x128xf32>
    %85 = arith.truncf %84 : vector<1x128xf32> to vector<1x128xbf16>
    %c11_67 = arith.constant 11 : index
    %c0_68 = arith.constant 0 : index
    %c0_69 = arith.constant 0 : index
    %86 = vector.load %arg4[%c11_67, %c0_68, %c0_69] : memref<25x128x128xbf16, #tpu.memory_space<vmem>>, vector<1x128x128xbf16>
    %87 = vector.shape_cast %86 : vector<1x128x128xbf16> to vector<128x128xbf16>
    %cst_70 = arith.constant dense<0.000000e+00> : vector<1x128xf32>
    %88 = tpu.matmul %85, %87, %cst_70 {dimension_numbers = #tpu.dot_dimension_numbers<[1], [0], [0], [1], [0, 0, 1, 1], [], []>} : vector<1x128xbf16>, vector<128x128xbf16>, vector<1x128xf32> -> vector<1x128xf32>
    %89 = arith.addf %83, %88 : vector<1x128xf32>
    %c12 = arith.constant 12 : index
    %c0_71 = arith.constant 0 : index
    %90 = vector.load %arg11[%c12, %c0_71] : memref<32x128xf32, #tpu.memory_space<vmem>>, vector<1x128xf32>
    %91 = arith.truncf %90 : vector<1x128xf32> to vector<1x128xbf16>
    %c12_72 = arith.constant 12 : index
    %c0_73 = arith.constant 0 : index
    %c0_74 = arith.constant 0 : index
    %92 = vector.load %arg4[%c12_72, %c0_73, %c0_74] : memref<25x128x128xbf16, #tpu.memory_space<vmem>>, vector<1x128x128xbf16>
    %93 = vector.shape_cast %92 : vector<1x128x128xbf16> to vector<128x128xbf16>
    %cst_75 = arith.constant dense<0.000000e+00> : vector<1x128xf32>
    %94 = tpu.matmul %91, %93, %cst_75 {dimension_numbers = #tpu.dot_dimension_numbers<[1], [0], [0], [1], [0, 0, 1, 1], [], []>} : vector<1x128xbf16>, vector<128x128xbf16>, vector<1x128xf32> -> vector<1x128xf32>
    %95 = arith.addf %89, %94 : vector<1x128xf32>
    %c13 = arith.constant 13 : index
    %c0_76 = arith.constant 0 : index
    %96 = vector.load %arg11[%c13, %c0_76] : memref<32x128xf32, #tpu.memory_space<vmem>>, vector<1x128xf32>
    %97 = arith.truncf %96 : vector<1x128xf32> to vector<1x128xbf16>
    %c13_77 = arith.constant 13 : index
    %c0_78 = arith.constant 0 : index
    %c0_79 = arith.constant 0 : index
    %98 = vector.load %arg4[%c13_77, %c0_78, %c0_79] : memref<25x128x128xbf16, #tpu.memory_space<vmem>>, vector<1x128x128xbf16>
    %99 = vector.shape_cast %98 : vector<1x128x128xbf16> to vector<128x128xbf16>
    %cst_80 = arith.constant dense<0.000000e+00> : vector<1x128xf32>
    %100 = tpu.matmul %97, %99, %cst_80 {dimension_numbers = #tpu.dot_dimension_numbers<[1], [0], [0], [1], [0, 0, 1, 1], [], []>} : vector<1x128xbf16>, vector<128x128xbf16>, vector<1x128xf32> -> vector<1x128xf32>
    %101 = arith.addf %95, %100 : vector<1x128xf32>
    %c14 = arith.constant 14 : index
    %c0_81 = arith.constant 0 : index
    %102 = vector.load %arg11[%c14, %c0_81] : memref<32x128xf32, #tpu.memory_space<vmem>>, vector<1x128xf32>
    %103 = arith.truncf %102 : vector<1x128xf32> to vector<1x128xbf16>
    %c14_82 = arith.constant 14 : index
    %c0_83 = arith.constant 0 : index
    %c0_84 = arith.constant 0 : index
    %104 = vector.load %arg4[%c14_82, %c0_83, %c0_84] : memref<25x128x128xbf16, #tpu.memory_space<vmem>>, vector<1x128x128xbf16>
    %105 = vector.shape_cast %104 : vector<1x128x128xbf16> to vector<128x128xbf16>
    %cst_85 = arith.constant dense<0.000000e+00> : vector<1x128xf32>
    %106 = tpu.matmul %103, %105, %cst_85 {dimension_numbers = #tpu.dot_dimension_numbers<[1], [0], [0], [1], [0, 0, 1, 1], [], []>} : vector<1x128xbf16>, vector<128x128xbf16>, vector<1x128xf32> -> vector<1x128xf32>
    %107 = arith.addf %101, %106 : vector<1x128xf32>
    %c15 = arith.constant 15 : index
    %c0_86 = arith.constant 0 : index
    %108 = vector.load %arg11[%c15, %c0_86] : memref<32x128xf32, #tpu.memory_space<vmem>>, vector<1x128xf32>
    %109 = arith.truncf %108 : vector<1x128xf32> to vector<1x128xbf16>
    %c15_87 = arith.constant 15 : index
    %c0_88 = arith.constant 0 : index
    %c0_89 = arith.constant 0 : index
    %110 = vector.load %arg4[%c15_87, %c0_88, %c0_89] : memref<25x128x128xbf16, #tpu.memory_space<vmem>>, vector<1x128x128xbf16>
    %111 = vector.shape_cast %110 : vector<1x128x128xbf16> to vector<128x128xbf16>
    %cst_90 = arith.constant dense<0.000000e+00> : vector<1x128xf32>
    %112 = tpu.matmul %109, %111, %cst_90 {dimension_numbers = #tpu.dot_dimension_numbers<[1], [0], [0], [1], [0, 0, 1, 1], [], []>} : vector<1x128xbf16>, vector<128x128xbf16>, vector<1x128xf32> -> vector<1x128xf32>
    %113 = arith.addf %107, %112 : vector<1x128xf32>
    %c16 = arith.constant 16 : index
    %c0_91 = arith.constant 0 : index
    %114 = vector.load %arg11[%c16, %c0_91] : memref<32x128xf32, #tpu.memory_space<vmem>>, vector<1x128xf32>
    %115 = arith.truncf %114 : vector<1x128xf32> to vector<1x128xbf16>
    %c16_92 = arith.constant 16 : index
    %c0_93 = arith.constant 0 : index
    %c0_94 = arith.constant 0 : index
    %116 = vector.load %arg4[%c16_92, %c0_93, %c0_94] : memref<25x128x128xbf16, #tpu.memory_space<vmem>>, vector<1x128x128xbf16>
    %117 = vector.shape_cast %116 : vector<1x128x128xbf16> to vector<128x128xbf16>
    %cst_95 = arith.constant dense<0.000000e+00> : vector<1x128xf32>
    %118 = tpu.matmul %115, %117, %cst_95 {dimension_numbers = #tpu.dot_dimension_numbers<[1], [0], [0], [1], [0, 0, 1, 1], [], []>} : vector<1x128xbf16>, vector<128x128xbf16>, vector<1x128xf32> -> vector<1x128xf32>
    %119 = arith.addf %113, %118 : vector<1x128xf32>
    %c17 = arith.constant 17 : index
    %c0_96 = arith.constant 0 : index
    %120 = vector.load %arg11[%c17, %c0_96] : memref<32x128xf32, #tpu.memory_space<vmem>>, vector<1x128xf32>
    %121 = arith.truncf %120 : vector<1x128xf32> to vector<1x128xbf16>
    %c17_97 = arith.constant 17 : index
    %c0_98 = arith.constant 0 : index
    %c0_99 = arith.constant 0 : index
    %122 = vector.load %arg4[%c17_97, %c0_98, %c0_99] : memref<25x128x128xbf16, #tpu.memory_space<vmem>>, vector<1x128x128xbf16>
    %123 = vector.shape_cast %122 : vector<1x128x128xbf16> to vector<128x128xbf16>
    %cst_100 = arith.constant dense<0.000000e+00> : vector<1x128xf32>
    %124 = tpu.matmul %121, %123, %cst_100 {dimension_numbers = #tpu.dot_dimension_numbers<[1], [0], [0], [1], [0, 0, 1, 1], [], []>} : vector<1x128xbf16>, vector<128x128xbf16>, vector<1x128xf32> -> vector<1x128xf32>
    %125 = arith.addf %119, %124 : vector<1x128xf32>
    %c18 = arith.constant 18 : index
    %c0_101 = arith.constant 0 : index
    %126 = vector.load %arg11[%c18, %c0_101] : memref<32x128xf32, #tpu.memory_space<vmem>>, vector<1x128xf32>
    %127 = arith.truncf %126 : vector<1x128xf32> to vector<1x128xbf16>
    %c18_102 = arith.constant 18 : index
    %c0_103 = arith.constant 0 : index
    %c0_104 = arith.constant 0 : index
    %128 = vector.load %arg4[%c18_102, %c0_103, %c0_104] : memref<25x128x128xbf16, #tpu.memory_space<vmem>>, vector<1x128x128xbf16>
    %129 = vector.shape_cast %128 : vector<1x128x128xbf16> to vector<128x128xbf16>
    %cst_105 = arith.constant dense<0.000000e+00> : vector<1x128xf32>
    %130 = tpu.matmul %127, %129, %cst_105 {dimension_numbers = #tpu.dot_dimension_numbers<[1], [0], [0], [1], [0, 0, 1, 1], [], []>} : vector<1x128xbf16>, vector<128x128xbf16>, vector<1x128xf32> -> vector<1x128xf32>
    %131 = arith.addf %125, %130 : vector<1x128xf32>
    %c19 = arith.constant 19 : index
    %c0_106 = arith.constant 0 : index
    %132 = vector.load %arg11[%c19, %c0_106] : memref<32x128xf32, #tpu.memory_space<vmem>>, vector<1x128xf32>
    %133 = arith.truncf %132 : vector<1x128xf32> to vector<1x128xbf16>
    %c19_107 = arith.constant 19 : index
    %c0_108 = arith.constant 0 : index
    %c0_109 = arith.constant 0 : index
    %134 = vector.load %arg4[%c19_107, %c0_108, %c0_109] : memref<25x128x128xbf16, #tpu.memory_space<vmem>>, vector<1x128x128xbf16>
    %135 = vector.shape_cast %134 : vector<1x128x128xbf16> to vector<128x128xbf16>
    %cst_110 = arith.constant dense<0.000000e+00> : vector<1x128xf32>
    %136 = tpu.matmul %133, %135, %cst_110 {dimension_numbers = #tpu.dot_dimension_numbers<[1], [0], [0], [1], [0, 0, 1, 1], [], []>} : vector<1x128xbf16>, vector<128x128xbf16>, vector<1x128xf32> -> vector<1x128xf32>
    %137 = arith.addf %131, %136 : vector<1x128xf32>
    %c20 = arith.constant 20 : index
    %c0_111 = arith.constant 0 : index
    %138 = vector.load %arg11[%c20, %c0_111] : memref<32x128xf32, #tpu.memory_space<vmem>>, vector<1x128xf32>
    %139 = arith.truncf %138 : vector<1x128xf32> to vector<1x128xbf16>
    %c20_112 = arith.constant 20 : index
    %c0_113 = arith.constant 0 : index
    %c0_114 = arith.constant 0 : index
    %140 = vector.load %arg4[%c20_112, %c0_113, %c0_114] : memref<25x128x128xbf16, #tpu.memory_space<vmem>>, vector<1x128x128xbf16>
    %141 = vector.shape_cast %140 : vector<1x128x128xbf16> to vector<128x128xbf16>
    %cst_115 = arith.constant dense<0.000000e+00> : vector<1x128xf32>
    %142 = tpu.matmul %139, %141, %cst_115 {dimension_numbers = #tpu.dot_dimension_numbers<[1], [0], [0], [1], [0, 0, 1, 1], [], []>} : vector<1x128xbf16>, vector<128x128xbf16>, vector<1x128xf32> -> vector<1x128xf32>
    %143 = arith.addf %137, %142 : vector<1x128xf32>
    %c21 = arith.constant 21 : index
    %c0_116 = arith.constant 0 : index
    %144 = vector.load %arg11[%c21, %c0_116] : memref<32x128xf32, #tpu.memory_space<vmem>>, vector<1x128xf32>
    %145 = arith.truncf %144 : vector<1x128xf32> to vector<1x128xbf16>
    %c21_117 = arith.constant 21 : index
    %c0_118 = arith.constant 0 : index
    %c0_119 = arith.constant 0 : index
    %146 = vector.load %arg4[%c21_117, %c0_118, %c0_119] : memref<25x128x128xbf16, #tpu.memory_space<vmem>>, vector<1x128x128xbf16>
    %147 = vector.shape_cast %146 : vector<1x128x128xbf16> to vector<128x128xbf16>
    %cst_120 = arith.constant dense<0.000000e+00> : vector<1x128xf32>
    %148 = tpu.matmul %145, %147, %cst_120 {dimension_numbers = #tpu.dot_dimension_numbers<[1], [0], [0], [1], [0, 0, 1, 1], [], []>} : vector<1x128xbf16>, vector<128x128xbf16>, vector<1x128xf32> -> vector<1x128xf32>
    %149 = arith.addf %143, %148 : vector<1x128xf32>
    %c22 = arith.constant 22 : index
    %c0_121 = arith.constant 0 : index
    %150 = vector.load %arg11[%c22, %c0_121] : memref<32x128xf32, #tpu.memory_space<vmem>>, vector<1x128xf32>
    %151 = arith.truncf %150 : vector<1x128xf32> to vector<1x128xbf16>
    %c22_122 = arith.constant 22 : index
    %c0_123 = arith.constant 0 : index
    %c0_124 = arith.constant 0 : index
    %152 = vector.load %arg4[%c22_122, %c0_123, %c0_124] : memref<25x128x128xbf16, #tpu.memory_space<vmem>>, vector<1x128x128xbf16>
    %153 = vector.shape_cast %152 : vector<1x128x128xbf16> to vector<128x128xbf16>
    %cst_125 = arith.constant dense<0.000000e+00> : vector<1x128xf32>
    %154 = tpu.matmul %151, %153, %cst_125 {dimension_numbers = #tpu.dot_dimension_numbers<[1], [0], [0], [1], [0, 0, 1, 1], [], []>} : vector<1x128xbf16>, vector<128x128xbf16>, vector<1x128xf32> -> vector<1x128xf32>
    %155 = arith.addf %149, %154 : vector<1x128xf32>
    %c23 = arith.constant 23 : index
    %c0_126 = arith.constant 0 : index
    %156 = vector.load %arg11[%c23, %c0_126] : memref<32x128xf32, #tpu.memory_space<vmem>>, vector<1x128xf32>
    %157 = arith.truncf %156 : vector<1x128xf32> to vector<1x128xbf16>
    %c23_127 = arith.constant 23 : index
    %c0_128 = arith.constant 0 : index
    %c0_129 = arith.constant 0 : index
    %158 = vector.load %arg4[%c23_127, %c0_128, %c0_129] : memref<25x128x128xbf16, #tpu.memory_space<vmem>>, vector<1x128x128xbf16>
    %159 = vector.shape_cast %158 : vector<1x128x128xbf16> to vector<128x128xbf16>
    %cst_130 = arith.constant dense<0.000000e+00> : vector<1x128xf32>
    %160 = tpu.matmul %157, %159, %cst_130 {dimension_numbers = #tpu.dot_dimension_numbers<[1], [0], [0], [1], [0, 0, 1, 1], [], []>} : vector<1x128xbf16>, vector<128x128xbf16>, vector<1x128xf32> -> vector<1x128xf32>
    %161 = arith.addf %155, %160 : vector<1x128xf32>
    %c24 = arith.constant 24 : index
    %c0_131 = arith.constant 0 : index
    %162 = vector.load %arg11[%c24, %c0_131] : memref<32x128xf32, #tpu.memory_space<vmem>>, vector<1x128xf32>
    %163 = arith.truncf %162 : vector<1x128xf32> to vector<1x128xbf16>
    %c24_132 = arith.constant 24 : index
    %c0_133 = arith.constant 0 : index
    %c0_134 = arith.constant 0 : index
    %164 = vector.load %arg4[%c24_132, %c0_133, %c0_134] : memref<25x128x128xbf16, #tpu.memory_space<vmem>>, vector<1x128x128xbf16>
    %165 = vector.shape_cast %164 : vector<1x128x128xbf16> to vector<128x128xbf16>
    %cst_135 = arith.constant dense<0.000000e+00> : vector<1x128xf32>
    %166 = tpu.matmul %163, %165, %cst_135 {dimension_numbers = #tpu.dot_dimension_numbers<[1], [0], [0], [1], [0, 0, 1, 1], [], []>} : vector<1x128xbf16>, vector<128x128xbf16>, vector<1x128xf32> -> vector<1x128xf32>
    %167 = arith.addf %161, %166 : vector<1x128xf32>
    %c0_136 = arith.constant 0 : index
    %c0_137 = arith.constant 0 : index
    %168 = vector.load %arg5[%c0_136, %c0_137] : memref<1x128xf32, #tpu.memory_space<vmem>>, vector<1x128xf32>
    %169 = arith.addf %167, %168 : vector<1x128xf32>
    %cst_138 = arith.constant 0.000000e+00 : f32
    %170 = vector.broadcast %cst_138 : f32 to vector<1x128xf32>
    %171 = arith.maximumf %169, %170 : vector<1x128xf32>
    %172 = arith.truncf %171 : vector<1x128xf32> to vector<1x128xbf16>
    %c0_139 = arith.constant 0 : index
    %c0_140 = arith.constant 0 : index
    %173 = vector.load %arg6[%c0_139, %c0_140] : memref<128x128xbf16, #tpu.memory_space<vmem>>, vector<128x128xbf16>
    %cst_141 = arith.constant dense<0.000000e+00> : vector<1x128xf32>
    %174 = tpu.matmul %172, %173, %cst_141 {dimension_numbers = #tpu.dot_dimension_numbers<[1], [0], [0], [1], [0, 0, 1, 1], [], []>} : vector<1x128xbf16>, vector<128x128xbf16>, vector<1x128xf32> -> vector<1x128xf32>
    %c0_142 = arith.constant 0 : index
    %c0_143 = arith.constant 0 : index
    %175 = vector.load %arg7[%c0_142, %c0_143] : memref<1x128xf32, #tpu.memory_space<vmem>>, vector<1x128xf32>
    %176 = arith.addf %174, %175 : vector<1x128xf32>
    %cst_144 = arith.constant 0.000000e+00 : f32
    %177 = vector.broadcast %cst_144 : f32 to vector<1x128xf32>
    %178 = arith.maximumf %176, %177 : vector<1x128xf32>
    %179 = arith.truncf %178 : vector<1x128xf32> to vector<1x128xbf16>
    %c0_145 = arith.constant 0 : index
    %c0_146 = arith.constant 0 : index
    %180 = vector.load %arg8[%c0_145, %c0_146] : memref<128x128xbf16, #tpu.memory_space<vmem>>, vector<128x128xbf16>
    %cst_147 = arith.constant dense<0.000000e+00> : vector<1x128xf32>
    %181 = tpu.matmul %179, %180, %cst_147 {dimension_numbers = #tpu.dot_dimension_numbers<[1], [0], [0], [1], [0, 0, 1, 1], [], []>} : vector<1x128xbf16>, vector<128x128xbf16>, vector<1x128xf32> -> vector<1x128xf32>
    %c0_148 = arith.constant 0 : index
    %c0_149 = arith.constant 0 : index
    %182 = vector.load %arg9[%c0_148, %c0_149] : memref<1x128xf32, #tpu.memory_space<vmem>>, vector<1x128xf32>
    %183 = arith.addf %181, %182 : vector<1x128xf32>
    %c0_150 = arith.constant 0 : index
    %c0_151 = arith.constant 0 : index
    %c0_152 = arith.constant 0 : index
    %184 = vector.load %arg10[%c0_150, %c0_151, %c0_152] : memref<1x1x128xf32, #tpu.memory_space<vmem>>, vector<1x1x128xf32>
    %185 = vector.shape_cast %184 : vector<1x1x128xf32> to vector<1x128xf32>
    %186 = vector.shape_cast %183 : vector<1x128xf32> to vector<1x1x128xf32>
    tpu.vector_store %arg10[%c0_150, %c0_151, %c0_152], %186 {strides = array<i32>} : memref<1x1x128xf32, #tpu.memory_space<vmem>>, vector<1x1x128xf32>,
    return
  }
  func.func @transform_0(%arg0: i32) -> (i32, i32, i32) {
    %c0_i32 = arith.constant 0 : i32
    %c0_i32_0 = arith.constant 0 : i32
    %c0_i32_1 = arith.constant 0 : i32
    return %arg0, %c0_i32, %c0_i32_0 : i32, i32, i32
  }
  func.func @transform_1(%arg0: i32) -> (i32, i32) {
    %c0_i32 = arith.constant 0 : i32
    %c0_i32_0 = arith.constant 0 : i32
    %c0_i32_1 = arith.constant 0 : i32
    return %c0_i32, %c0_i32_0 : i32, i32
  }
  func.func @transform_2(%arg0: i32) -> (i32, i32) {
    %c0_i32 = arith.constant 0 : i32
    %c0_i32_0 = arith.constant 0 : i32
    %c0_i32_1 = arith.constant 0 : i32
    return %c0_i32, %c0_i32_0 : i32, i32
  }
  func.func @transform_3(%arg0: i32) -> (i32, i32, i32) {
    %c0_i32 = arith.constant 0 : i32
    %c0_i32_0 = arith.constant 0 : i32
    %c0_i32_1 = arith.constant 0 : i32
    %c0_i32_2 = arith.constant 0 : i32
    return %c0_i32, %c0_i32_0, %c0_i32_1 : i32, i32, i32
  }
  func.func @transform_4(%arg0: i32) -> (i32, i32) {
    %c0_i32 = arith.constant 0 : i32
    %c0_i32_0 = arith.constant 0 : i32
    %c0_i32_1 = arith.constant 0 : i32
    return %c0_i32, %c0_i32_0 : i32, i32
  }
  func.func @transform_5(%arg0: i32) -> (i32, i32) {
    %c0_i32 = arith.constant 0 : i32
    %c0_i32_0 = arith.constant 0 : i32
    %c0_i32_1 = arith.constant 0 : i32
    return %c0_i32, %c0_i32_0 : i32, i32
  }
  func.func @transform_6(%arg0: i32) -> (i32, i32) {
    %c0_i32 = arith.constant 0 : i32
    %c0_i32_0 = arith.constant 0 : i32
    %c0_i32_1 = arith.constant 0 : i32
    return %c0_i32, %c0_i32_0 : i32, i32
  }
  func.func @transform_7(%arg0: i32) -> (i32, i32) {
    %c0_i32 = arith.constant 0 : i32
    %c0_i32_0 = arith.constant 0 : i32
    %c0_i32_1 = arith.constant 0 : i32
    return %c0_i32, %c0_i32_0 : i32, i32
  }
  func.func @transform_8(%arg0: i32) -> (i32, i32) {
    %c0_i32 = arith.constant 0 : i32
    %c0_i32_0 = arith.constant 0 : i32
    %c0_i32_1 = arith.constant 0 : i32
    return %c0_i32, %c0_i32_0 : i32, i32
  }
  func.func @transform_9(%arg0: i32) -> (i32, i32, i32) {
    %c0_i32 = arith.constant 0 : i32
    %c0_i32_0 = arith.constant 0 : i32
    %c0_i32_1 = arith.constant 0 : i32
    return %arg0, %c0_i32, %c0_i32_0 : i32, i32, i32
  }
}

</mosaic_0001>

<bundles_post_ra>
// kernel: net_forward.2
= control target key start
LH: loop header
LB: loop body
LE: loop exit
PB: predicated region body
PF: predicated region fallthrough
CT: control target
= control target key end

     0   :  { %s1916_s12 = smov 0   ;;  %s2205_s0 = inlined_call_operand.vmem [shape: bf16[2,832,128], index: 0, kind: input, shape index: {}]   ;;  %s2206_s1 = inlined_call_operand.vmem [shape: bf16[128,128], index: 1, kind: input, shape index: {}]   ;;  %s2207_s2 = inlined_call_operand.vmem [shape: f32[1,128], index: 2, kind: input, shape index: {}]   ;;  %s2208_s3 = inlined_call_operand.vmem [shape: bf16[2,208,128], index: 3, kind: output, shape index: {}]  }
   0x1 LB: > { %s1423_s13 = sadd.s32 4294967295, %s1894_s12   ;;  %p1427_p0 = scmp.ge.s32.totalorder %s1894_s12, 1  ;;  %s1894_s12 = sphi %s1916_s12, %s13_s12  }
   0x2   : > { %p137_p1 = scmp.lt.s32.totalorder %s1894_s12, 3 }
   0x4   : > { %p138_p2 = pnand %p1427_p0, %p137_p1 }
   0x6   : > { %141 = sbr.rel (%p138_p2) target bundleno = 368 (0x170), region = 32 }
   0xd   : > { %v1828_v0 = vld [vmem:[%s2206_s1] sm:$0xff]   ;;  %p161_p3 = scmp.lt.s32.totalorder %s1423_s13, 1  ;;  %v1829_v1 = vld [vmem:[%s2206_s1 + $0x8] sm:$0xff]   ;;  %v1830_v2 = vld [vmem:[%s2206_s1 + $0x10] sm:$0xff]  }
   0xe   : > { %1682 = vmatprep.subr.bf16.mxu0 %v1828_v0  ;;  %1802 = vmatprep.subr.bf16.mxu1 %v1828_v0  ;;  %v1831_v3 = vld [vmem:[%s2206_s1 + $0x18] sm:$0xff]   ;;  %v1832_v6 = vld [vmem:[%s2206_s1 + $0x20] sm:$0xff]   ;;  %v1833_v7 = vld [vmem:[%s2206_s1 + $0x28] sm:$0xff]  }
   0xf   : > { %s2214_s13 = smov (!%p161_p3, %s1423_s13), 1  ;;  %1683 = vmatpush3.bf16.msra.mxu0 %v1828_v0  ;;  %1810 = vmatpush3.bf16.msra.mxu1 %v1828_v0  ;;  %v1834_v8 = vld [vmem:[%s2206_s1 + $0x30] sm:$0xff]   ;;  %v1835_v9 = vld [vmem:[%s2206_s1 + $0x38] sm:$0xff]  }
  0x10   : > { %1684 = vmatprep.subr.bf16.mxu0 %v1829_v1  ;;  %1803 = vmatprep.subr.bf16.mxu1 %v1829_v1  ;;  %s1818_s20 = smul.u32 416, %s2214_s13 }
  0x11   : > { %s1819_s9 = smul.u32 104, %s2214_s13 }
  0x12   : > { %s1939_s23 = scalar_lea.vmem %s2205_s0, %s1818_s20 }
  0x13   : > { %1685 = vmatpush3.bf16.msra.mxu0 %v1829_v1  ;;  %1811 = vmatpush3.bf16.msra.mxu1 %v1829_v1  ;;  %v1836_v4 = vld [vmem:[%s1939_s23] sm:$0xff]   ;;  %v1837_v5 = vld [vmem:[%s1939_s23 + $0xd0] sm:$0xff]   ;;  %v1838_v10 = vld [vmem:[%s1939_s23 + $0x8] sm:$0xff]   ;;  %s2117_s14 = scalar_lea.vmem %s2208_s3, %s1819_s9 }
  0x14   : > { %1686 = vmatprep.subr.bf16.mxu0 %v1830_v2  ;;  %1804 = vmatprep.subr.bf16.mxu1 %v1830_v2  ;;  %v1839_v11 = vld [vmem:[%s1939_s23 + $0xd8] sm:$0xff]   ;;  %v1840_v12 = vld [vmem:[%s1939_s23 + $0x10] sm:$0xff]   ;;  %v1841_v13 = vld [vmem:[%s1939_s23 + $0xe0] sm:$0xff]  }
  0x15   : > { %1698 = vmatprep.mubr.bf16.mxu0 %v1836_v4  ;;  %1750 = vmatprep.mubr.bf16.mxu1 %v1837_v5  ;;  %v1842_v14 = vld [vmem:[%s1939_s23 + $0x18] sm:$0xff]   ;;  %v1843_v15 = vld [vmem:[%s1939_s23 + $0xe8] sm:$0xff]   ;;  %v1844_v16 = vld [vmem:[%s1939_s23 + $0x20] sm:$0xff]  }
  0x16   : > { %v1845_v17 = vld [vmem:[%s1939_s23 + $0xf0] sm:$0xff]   ;;  %v1846_v18 = vld [vmem:[%s1939_s23 + $0x28] sm:$0xff]   ;;  %v1847_v19 = vld [vmem:[%s1939_s23 + $0xf8] sm:$0xff]  }
  0x17   : > { %1687 = vmatpush3.bf16.msra.mxu0 %v1830_v2  ;;  %1812 = vmatpush3.bf16.msra.mxu1 %v1830_v2  ;;  %v1848_v20 = vld [vmem:[%s1939_s23 + $0x30] sm:$0xff]   ;;  %v1849_v21 = vld [vmem:[%s1939_s23 + $0x100] sm:$0xff]   ;;  %v1850_v22 = vld [vmem:[%s1939_s23 + $0x38] sm:$0xff]  }
  0x18   : > { %1688 = vmatprep.subr.bf16.mxu0 %v1831_v3  ;;  %1805 = vmatprep.subr.bf16.mxu1 %v1831_v3  ;;  %v1851_v23 = vld [vmem:[%s1939_s23 + $0x108] sm:$0xff]   ;;  %v1852_v24 = vld [vmem:[%s1939_s23 + $0x40] sm:$0xff]   ;;  %v1853_v25 = vld [vmem:[%s1939_s23 + $0x110] sm:$0xff]  }
  0x19   : > { %v1854_v26 = vld [vmem:[%s1939_s23 + $0x48] sm:$0xff]   ;;  %v1855_v27 = vld [vmem:[%s1939_s23 + $0x118] sm:$0xff]   ;;  %v1856_v28 = vld [vmem:[%s1939_s23 + $0x50] sm:$0xff]  }
  0x1a   : > { %v1857_v29 = vld [vmem:[%s1939_s23 + $0x120] sm:$0xff]   ;;  %v1858_v30 = vld [vmem:[%s1939_s23 + $0x58] sm:$0xff]   ;;  %v1859_v31 = vld [vmem:[%s1939_s23 + $0x128] sm:$0xff]  }
  0x1b   : > { %1689 = vmatpush3.bf16.msra.mxu0 %v1831_v3  ;;  %1813 = vmatpush3.bf16.msra.mxu1 %v1831_v3  ;;  %v1860_v32 = vld [vmem:[%s1939_s23 + $0x60] sm:$0xff]   ;;  %v1861_v33 = vld [vmem:[%s1939_s23 + $0x130] sm:$0xff]   ;;  %v1862_v34 = vld [vmem:[%s1939_s23 + $0x68] sm:$0xff]  }
  0x1c   : > { %1690 = vmatprep.subr.bf16.mxu0 %v1832_v6  ;;  %1806 = vmatprep.subr.bf16.mxu1 %v1832_v6  ;;  %v1863_v35 = vld [vmem:[%s1939_s23 + $0x138] sm:$0xff]   ;;  %v1864_v36 = vld [vmem:[%s1939_s23 + $0x70] sm:$0xff]   ;;  %v1865_v37 = vld [vmem:[%s1939_s23 + $0x140] sm:$0xff]  }
  0x1d   : > { %v1866_v38 = vld [vmem:[%s1939_s23 + $0x78] sm:$0xff]   ;;  %v1867_v39 = vld [vmem:[%s1939_s23 + $0x148] sm:$0xff]   ;;  %v1868_v40 = vld [vmem:[%s1939_s23 + $0x80] sm:$0xff]  }
  0x1e   : > { %v1869_v41 = vld [vmem:[%s1939_s23 + $0x150] sm:$0xff]   ;;  %v1870_v42 = vld [vmem:[%s1939_s23 + $0x88] sm:$0xff]   ;;  %v1871_v43 = vld [vmem:[%s1939_s23 + $0x158] sm:$0xff]  }
  0x1f   : > { %1691 = vmatpush3.bf16.msra.mxu0 %v1832_v6  ;;  %1814 = vmatpush3.bf16.msra.mxu1 %v1832_v6  ;;  %v1872_v44 = vld [vmem:[%s1939_s23 + $0x90] sm:$0xff]   ;;  %v1873_v45 = vld [vmem:[%s1939_s23 + $0x160] sm:$0xff]   ;;  %v1874_v46 = vld [vmem:[%s1939_s23 + $0x98] sm:$0xff]  }
  0x20   : > { %1692 = vmatprep.subr.bf16.mxu0 %v1833_v7  ;;  %1807 = vmatprep.subr.bf16.mxu1 %v1833_v7  ;;  %v1875_v47 = vld [vmem:[%s1939_s23 + $0x168] sm:$0xff]   ;;  %v1876_v48 = vld [vmem:[%s1939_s23 + $0xa0] sm:$0xff]   ;;  %v1877_v49 = vld [vmem:[%s1939_s23 + $0x170] sm:$0xff]  }
  0x21   : > { %v1878_v50 = vld [vmem:[%s1939_s23 + $0xa8] sm:$0xff]   ;;  %v1879_v51 = vld [vmem:[%s1939_s23 + $0x178] sm:$0xff]   ;;  %v1880_v52 = vld [vmem:[%s1939_s23 + $0xb0] sm:$0xff]  }
  0x22   : > { %v1881_v53 = vld [vmem:[%s1939_s23 + $0x180] sm:$0xff]   ;;  %v1882_v54 = vld [vmem:[%s1939_s23 + $0xb8] sm:$0xff]   ;;  %v1883_v55 = vld [vmem:[%s1939_s23 + $0x188] sm:$0xff]  }
  0x23   : > { %1693 = vmatpush3.bf16.msra.mxu0 %v1833_v7  ;;  %1815 = vmatpush3.bf16.msra.mxu1 %v1833_v7  ;;  %v1884_v56 = vld [vmem:[%s1939_s23 + $0xc0] sm:$0xff]   ;;  %v1885_v57 = vld [vmem:[%s1939_s23 + $0x190] sm:$0xff]   ;;  %v1886_v58 = vld [vmem:[%s1939_s23 + $0xc8] sm:$0xff]  }
  0x24   : > { %1694 = vmatprep.subr.bf16.mxu0 %v1834_v8  ;;  %1808 = vmatprep.subr.bf16.mxu1 %v1834_v8  ;;  %v1887_v59 = vld [vmem:[%s1939_s23 + $0x198] sm:$0xff]  }
  0x27   : > { %1695 = vmatpush3.bf16.msra.mxu0 %v1834_v8  ;;  %1816 = vmatpush3.bf16.msra.mxu1 %v1834_v8 }
  0x28   : > { %1696 = vmatprep.subr.bf16.mxu0 %v1835_v9  ;;  %1809 = vmatprep.subr.bf16.mxu1 %v1835_v9 }
  0x2b   : > { %1697 = vmatpush3.bf16.msra.mxu0 %v1835_v9  ;;  %1817 = vmatpush3.bf16.msra.mxu1 %v1835_v9 }
  0x2e   : > { %1699 = vmatmul.mubr.bf16.vlgmr.msra.gmra.mrb[0].mxu0 %v1838_v10  ;;  %1751 = vmatmul.mubr.bf16.vlgmr.msra.gmra.mrb[0].mxu1 %v1839_v11 }
  0x2f   : > { %1702 = vmatprep.mubr.bf16.mxu0 %v1840_v12  ;;  %1754 = vmatprep.mubr.bf16.mxu1 %v1841_v13 }
  0x36   : > { %1703 = vmatmul.mubr.bf16.gmra.mrb[4].mxu0 %v1842_v14  ;;  %1755 = vmatmul.mubr.bf16.gmra.mrb[4].mxu1 %v1843_v15 }
  0x37   : > { %1706 = vmatprep.mubr.bf16.mxu0 %v1844_v16  ;;  %1758 = vmatprep.mubr.bf16.mxu1 %v1845_v17 }
  0x3e   : > { %1707 = vmatmul.mubr.bf16.gmra.mrb[8].mxu0 %v1846_v18  ;;  %1759 = vmatmul.mubr.bf16.gmra.mrb[8].mxu1 %v1847_v19 }
  0x3f   : > { %1710 = vmatprep.mubr.bf16.mxu0 %v1848_v20  ;;  %1762 = vmatprep.mubr.bf16.mxu1 %v1849_v21 }
  0x46   : > { %1711 = vmatmul.mubr.bf16.gmra.mrb[12].mxu0 %v1850_v22  ;;  %1763 = vmatmul.mubr.bf16.gmra.mrb[12].mxu1 %v1851_v23 }
  0x47   : > { %1714 = vmatprep.mubr.bf16.mxu0 %v1852_v24  ;;  %1766 = vmatprep.mubr.bf16.mxu1 %v1853_v25 }
  0x4e   : > { %1715 = vmatmul.mubr.bf16.gmra.mrb[16].mxu0 %v1854_v26  ;;  %1767 = vmatmul.mubr.bf16.gmra.mrb[16].mxu1 %v1855_v27 }
  0x4f   : > { %1718 = vmatprep.mubr.bf16.mxu0 %v1856_v28  ;;  %1770 = vmatprep.mubr.bf16.mxu1 %v1857_v29 }
  0x56   : > { %1719 = vmatmul.mubr.bf16.gmra.mrb[20].mxu0 %v1858_v30  ;;  %1771 = vmatmul.mubr.bf16.gmra.mrb[20].mxu1 %v1859_v31 }
  0x57   : > { %1722 = vmatprep.mubr.bf16.mxu0 %v1860_v32  ;;  %1774 = vmatprep.mubr.bf16.mxu1 %v1861_v33 }
  0x5e   : > { %1723 = vmatmul.mubr.bf16.gmra.mrb[24].mxu0 %v1862_v34  ;;  %1775 = vmatmul.mubr.bf16.gmra.mrb[24].mxu1 %v1863_v35 }
  0x5f   : > { %1726 = vmatprep.mubr.bf16.mxu0 %v1864_v36  ;;  %1778 = vmatprep.mubr.bf16.mxu1 %v1865_v37 }
  0x66   : > { %1727 = vmatmul.mubr.bf16.gmra.mrb[28].mxu0 %v1866_v38  ;;  %1779 = vmatmul.mubr.bf16.gmra.mrb[28].mxu1 %v1867_v39 }
  0x67   : > { %1730 = vmatprep.mubr.bf16.mxu0 %v1868_v40  ;;  %1782 = vmatprep.mubr.bf16.mxu1 %v1869_v41 }
  0x6e   : > { %1731 = vmatmul.mubr.bf16.gmra.mrb[32].mxu0 %v1870_v42  ;;  %1783 = vmatmul.mubr.bf16.gmra.mrb[32].mxu1 %v1871_v43 }
  0x6f   : > { %1734 = vmatprep.mubr.bf16.mxu0 %v1872_v44  ;;  %1786 = vmatprep.mubr.bf16.mxu1 %v1873_v45 }
  0x76   : > { %1735 = vmatmul.mubr.bf16.gmra.mrb[36].mxu0 %v1874_v46  ;;  %1787 = vmatmul.mubr.bf16.gmra.mrb[36].mxu1 %v1875_v47 }
  0x77   : > { %1738 = vmatprep.mubr.bf16.mxu0 %v1876_v48  ;;  %1790 = vmatprep.mubr.bf16.mxu1 %v1877_v49 }
  0x7e   : > { %1739 = vmatmul.mubr.bf16.gmra.mrb[40].mxu0 %v1878_v50  ;;  %1791 = vmatmul.mubr.bf16.gmra.mrb[40].mxu1 %v1879_v51  ;;  %v2103_v50 = vld [vmem:[%s2207_s2] ss:$0 sm:$0xff] }
  0x7f   : > { %1742 = vmatprep.mubr.bf16.mxu0 %v1880_v52  ;;  %1794 = vmatprep.mubr.bf16.mxu1 %v1881_v53 }
  0x86   : > { %1743 = vmatmul.mubr.bf16.gmra.mrb[44].mxu0 %v1882_v54  ;;  %1795 = vmatmul.mubr.bf16.gmra.mrb[44].mxu1 %v1883_v55 }
  0x87   : > { %1746 = vmatprep.mubr.bf16.mxu0 %v1884_v56  ;;  %1798 = vmatprep.mubr.bf16.mxu1 %v1885_v57 }
  0x8e   : > { %1747 = vmatmul.mubr.bf16.gmra.mrb[48].mxu0 %v1886_v58  ;;  %1799 = vmatmul.mubr.bf16.gmra.mrb[48].mxu1 %v1887_v59 }
 0x101   : > { %v2008_v60 = vpop.f32.mrb[0].mxu0  ;;  %v2010_v61 = vpop.f32.mrb[0].mxu1 }
 0x102   : > { %v686_v62 = vpop.f32.mrb[1].mxu0  ;;  %v894_v63 = vpop.f32.mrb[1].mxu1 }
 0x103   : > { %v2012_v0 = vpop.f32.mrb[2].mxu0  ;;  %v2014_v1 = vpop.f32.mrb[2].mxu1 }
 0x104   : > { %v689_v2 = vpop.f32.mrb[3].mxu0  ;;  %v897_v3 = vpop.f32.mrb[3].mxu1 }
 0x109   : > { %v2016_v4 = vpop.f32.mrb[4].mxu0  ;;  %v2018_v5 = vpop.f32.mrb[4].mxu1 }
 0x10a   : > { %v2020_v6 = vpop.f32.mrb[5].mxu0  ;;  %v2022_v7 = vpop.f32.mrb[5].mxu1 }
 0x10b   : > { %v2024_v8 = vpop.f32.mrb[6].mxu0  ;;  %v2026_v9 = vpop.f32.mrb[6].mxu1 }
 0x10c   : > { %v2028_v10 = vpop.f32.mrb[7].mxu0  ;;  %v2030_v11 = vpop.f32.mrb[7].mxu1 }
 0x111   : > { %v2032_v12 = vpop.f32.mrb[8].mxu0  ;;  %v2034_v13 = vpop.f32.mrb[8].mxu1 }
 0x112   : > { %v2036_v14 = vpop.f32.mrb[9].mxu0  ;;  %v2038_v15 = vpop.f32.mrb[9].mxu1 }
 0x113   : > { %v2040_v16 = vpop.f32.mrb[10].mxu0  ;;  %v2042_v17 = vpop.f32.mrb[10].mxu1 }
 0x114   : > { %v2044_v18 = vpop.f32.mrb[11].mxu0  ;;  %v2046_v19 = vpop.f32.mrb[11].mxu1 }
 0x119   : > { %v2048_v20 = vpop.f32.mrb[12].mxu0  ;;  %v2050_v21 = vpop.f32.mrb[12].mxu1 }
 0x11a   : > { %v2052_v22 = vpop.f32.mrb[13].mxu0  ;;  %v2054_v23 = vpop.f32.mrb[13].mxu1 }
 0x11b   : > { %v2056_v24 = vpop.f32.mrb[14].mxu0  ;;  %v2058_v25 = vpop.f32.mrb[14].mxu1 }
 0x11c   : > { %v2060_v26 = vpop.f32.mrb[15].mxu0  ;;  %v2062_v27 = vpop.f32.mrb[15].mxu1 }
 0x121   : > { %v2064_v28 = vpop.f32.mrb[16].mxu0  ;;  %v2066_v29 = vpop.f32.mrb[16].mxu1 }
 0x122   : > { %v2068_v30 = vpop.f32.mrb[17].mxu0  ;;  %v2070_v31 = vpop.f32.mrb[17].mxu1 }
 0x123   : > { %v2072_v32 = vpop.f32.mrb[18].mxu0  ;;  %v2074_v33 = vpop.f32.mrb[18].mxu1 }
 0x124   : > { %v2076_v34 = vpop.f32.mrb[19].mxu0  ;;  %v2078_v35 = vpop.f32.mrb[19].mxu1 }
 0x129   : > { %v2080_v36 = vpop.f32.mrb[20].mxu0  ;;  %v2082_v37 = vpop.f32.mrb[20].mxu1 }
 0x12a   : > { %v2084_v38 = vpop.f32.mrb[21].mxu0  ;;  %v2086_v39 = vpop.f32.mrb[21].mxu1 }
 0x12b   : > { %v2088_v40 = vpop.f32.mrb[22].mxu0  ;;  %v2090_v41 = vpop.f32.mrb[22].mxu1 }
 0x12c   : > { %2209 = vst [vmem:[#allocation2_spill] sm:$0xff] %v2088_v40  ;;  %2210 = vst [vmem:[#allocation3_spill] sm:$0xff] %v2090_v41  ;;  %v2092_v42 = vpop.f32.mrb[23].mxu0  ;;  %v2094_v43 = vpop.f32.mrb[23].mxu1 }
 0x131   : > { %v1724_v44 = vpop.f32.mrb[24].mxu0  ;;  %v1776_v45 = vpop.f32.mrb[24].mxu1 }
 0x132   : > { %v1101_v46 = vmax.f32 %v686_v62, %v1724_v44  ;;  %v1127_v47 = vmax.f32 %v894_v63, %v1776_v45  ;;  %v2096_v48 = vpop.f32.mrb[25].mxu0  ;;  %v2098_v49 = vpop.f32.mrb[25].mxu1 }
 0x133   : > { %v1725_v51 = vpop.f32.mrb[26].mxu0  ;;  %v1777_v52 = vpop.f32.mrb[26].mxu1 }
 0x134   : > { %v1153_v53 = vmax.f32 %v1101_v46, %v1127_v47  ;;  %v1102_v54 = vmax.f32 %v689_v2, %v1725_v51  ;;  %v1128_v55 = vmax.f32 %v897_v3, %v1777_v52  ;;  %v2105_v56 = vpop.f32.mrb[27].mxu0  ;;  %v2107_v57 = vpop.f32.mrb[27].mxu1 }
 0x136   : > { %v1186_v58 = vadd.f32 %v2103_v50, %v1153_v53  ;;  %v1154_v59 = vmax.f32 %v1102_v54, %v1128_v55 }
 0x138   : > { %v1187_v62 = vadd.f32 %v2103_v50, %v1154_v59  ;;  %v1212_v45 = vmax.f32 %v1186_v58, 0.0 }
 0x139   : > { %v1728_v63 = vpop.f32.mrb[28].mxu0  ;;  %v1780_v44 = vpop.f32.mrb[28].mxu1 }
 0x13a   : > { %v1213_v41 = vmax.f32 %v1187_v62, 0.0  ;;  %v1105_v40 = vmax.f32 %v2020_v6, %v1728_v63  ;;  %v1131_v46 = vmax.f32 %v2022_v7, %v1780_v44  ;;  %v798_v2 = vpop.f32.mrb[29].mxu0  ;;  %v1006_v3 = vpop.f32.mrb[29].mxu1 }
 0x13b   : > { %v1103_v47 = vmax.f32 %v2008_v60, %v798_v2  ;;  %v1129_v51 = vmax.f32 %v2010_v61, %v1006_v3  ;;  %v1729_v52 = vpop.f32.mrb[30].mxu0  ;;  %v1781_v53 = vpop.f32.mrb[30].mxu1 }
 0x13c   : > { %v1548_v54 = vpack.c.bf16 %v1213_v41, %v1212_v45  ;;  %v1157_v55 = vmax.f32 %v1105_v40, %v1131_v46  ;;  %v1106_v6 = vmax.f32 %v2028_v10, %v1729_v52  ;;  %v1132_v7 = vmax.f32 %v2030_v11, %v1781_v53  ;;  %v801_v58 = vpop.f32.mrb[31].mxu0  ;;  %v1009_v59 = vpop.f32.mrb[31].mxu1 }
 0x13d   : > { %v1155_v62 = vmax.f32 %v1103_v47, %v1129_v51  ;;  %v1104_v63 = vmax.f32 %v2012_v0, %v801_v58  ;;  %v1130_v44 = vmax.f32 %v2014_v1, %v1009_v59 }
 0x13e   : > { %1549 = vst [vmem:[%s2117_s14] sm:$0xff] %v1548_v54   ;;  %v1190_v60 = vadd.f32 %v2103_v50, %v1157_v55  ;;  %v1158_v2 = vmax.f32 %v1106_v6, %v1132_v7 }
 0x13f   : > { %v1188_v61 = vadd.f32 %v2103_v50, %v1155_v62  ;;  %v1156_v3 = vmax.f32 %v1104_v63, %v1130_v44 }
 0x140   : > { %v1191_v40 = vadd.f32 %v2103_v50, %v1158_v2  ;;  %v1216_v45 = vmax.f32 %v1190_v60, 0.0 }
 0x141   : > { %v1189_v10 = vadd.f32 %v2103_v50, %v1156_v3  ;;  %v1732_v41 = vpop.f32.mrb[32].mxu0  ;;  %v1784_v11 = vpop.f32.mrb[32].mxu1  ;;  %v1214_v52 = vmax.f32 %v1188_v61, 0.0 }
 0x142   : > { %v1217_v46 = vmax.f32 %v1191_v40, 0.0  ;;  %v1109_v47 = vmax.f32 %v2036_v14, %v1732_v41  ;;  %v1135_v0 = vmax.f32 %v2038_v15, %v1784_v11  ;;  %v814_v1 = vpop.f32.mrb[33].mxu0  ;;  %v1022_v51 = vpop.f32.mrb[33].mxu1 }
 0x143   : > { %v1215_v53 = vmax.f32 %v1189_v10, 0.0  ;;  %v1107_v54 = vmax.f32 %v2016_v4, %v814_v1  ;;  %v1133_v55 = vmax.f32 %v2018_v5, %v1022_v51  ;;  %v1733_v6 = vpop.f32.mrb[34].mxu0  ;;  %v1785_v7 = vpop.f32.mrb[34].mxu1 }
 0x144   : > { %v1558_v58 = vpack.c.bf16 %v1217_v46, %v1216_v45  ;;  %v1161_v59 = vmax.f32 %v1109_v47, %v1135_v0  ;;  %v1110_v62 = vmax.f32 %v2044_v18, %v1733_v6  ;;  %v1136_v14 = vmax.f32 %v2046_v19, %v1785_v7  ;;  %v817_v63 = vpop.f32.mrb[35].mxu0  ;;  %v1025_v15 = vpop.f32.mrb[35].mxu1 }
 0x145   : > { %v1553_v44 = vpack.c.bf16 %v1215_v53, %v1214_v52  ;;  %v1159_v60 = vmax.f32 %v1107_v54, %v1133_v55  ;;  %v1108_v2 = vmax.f32 %v2024_v8, %v817_v63  ;;  %v1134_v61 = vmax.f32 %v2026_v9, %v1025_v15 }
 0x146   : > { %1611 = vst [vmem:[%s2117_s14 + $0x10] sm:$0xff] %v1558_v58   ;;  %v1194_v4 = vadd.f32 %v2103_v50, %v1161_v59  ;;  %v1162_v5 = vmax.f32 %v1110_v62, %v1136_v14 }
 0x147   : > { %1610 = vst [vmem:[%s2117_s14 + $0x8] sm:$0xff] %v1553_v44   ;;  %v1192_v3 = vadd.f32 %v2103_v50, %v1159_v60  ;;  %v1160_v40 = vmax.f32 %v1108_v2, %v1134_v61 }
 0x148   : > { %v1195_v18 = vadd.f32 %v2103_v50, %v1162_v5  ;;  %v1220_v11 = vmax.f32 %v1194_v4, 0.0 }
 0x149   : > { %v1193_v19 = vadd.f32 %v2103_v50, %v1160_v40  ;;  %v1736_v10 = vpop.f32.mrb[36].mxu0  ;;  %v1788_v41 = vpop.f32.mrb[36].mxu1  ;;  %v1218_v0 = vmax.f32 %v1192_v3, 0.0 }
 0x14a   : > { %v1221_v45 = vmax.f32 %v1195_v18, 0.0  ;;  %v1113_v8 = vmax.f32 %v2052_v22, %v1736_v10  ;;  %v1139_v9 = vmax.f32 %v2054_v23, %v1788_v41  ;;  %v830_v46 = vpop.f32.mrb[37].mxu0  ;;  %v1038_v47 = vpop.f32.mrb[37].mxu1 }
 0x14b   : > { %v1219_v1 = vmax.f32 %v1193_v19, 0.0  ;;  %v1111_v51 = vmax.f32 %v2032_v12, %v830_v46  ;;  %v1137_v52 = vmax.f32 %v2034_v13, %v1038_v47  ;;  %v1737_v53 = vpop.f32.mrb[38].mxu0  ;;  %v1789_v54 = vpop.f32.mrb[38].mxu1 }
 0x14c   : > { %v1568_v55 = vpack.c.bf16 %v1221_v45, %v1220_v11  ;;  %v1165_v6 = vmax.f32 %v1113_v8, %v1139_v9  ;;  %v1114_v7 = vmax.f32 %v2060_v26, %v1737_v53  ;;  %v1140_v22 = vmax.f32 %v2062_v27, %v1789_v54  ;;  %v833_v58 = vpop.f32.mrb[39].mxu0  ;;  %v1041_v23 = vpop.f32.mrb[39].mxu1 }
 0x14d   : > { %v1563_v59 = vpack.c.bf16 %v1219_v1, %v1218_v0  ;;  %v1163_v62 = vmax.f32 %v1111_v51, %v1137_v52  ;;  %v1112_v14 = vmax.f32 %v2040_v16, %v833_v58  ;;  %v1138_v63 = vmax.f32 %v2042_v17, %v1041_v23 }
 0x14e   : > { %1613 = vst [vmem:[%s2117_s14 + $0x20] sm:$0xff] %v1568_v55   ;;  %v1198_v12 = vadd.f32 %v2103_v50, %v1165_v6  ;;  %v1166_v13 = vmax.f32 %v1114_v7, %v1140_v22 }
 0x14f   : > { %1612 = vst [vmem:[%s2117_s14 + $0x18] sm:$0xff] %v1563_v59   ;;  %v1196_v15 = vadd.f32 %v2103_v50, %v1163_v62  ;;  %v1164_v44 = vmax.f32 %v1112_v14, %v1138_v63 }
 0x150   : > { %v1199_v26 = vadd.f32 %v2103_v50, %v1166_v13  ;;  %v1224_v61 = vmax.f32 %v1198_v12, 0.0 }
 0x151   : > { %v1197_v27 = vadd.f32 %v2103_v50, %v1164_v44  ;;  %v1740_v60 = vpop.f32.mrb[40].mxu0  ;;  %v1792_v2 = vpop.f32.mrb[40].mxu1  ;;  %v1222_v40 = vmax.f32 %v1196_v15, 0.0 }
 0x152   : > { %v1225_v4 = vmax.f32 %v1199_v26, 0.0  ;;  %v1117_v16 = vmax.f32 %v2068_v30, %v1740_v60  ;;  %v1143_v17 = vmax.f32 %v2070_v31, %v1792_v2  ;;  %v846_v5 = vpop.f32.mrb[41].mxu0  ;;  %v1054_v3 = vpop.f32.mrb[41].mxu1 }
 0x153   : > { %v1223_v18 = vmax.f32 %v1197_v27, 0.0  ;;  %v1115_v19 = vmax.f32 %v2048_v20, %v846_v5  ;;  %v1141_v10 = vmax.f32 %v2050_v21, %v1054_v3  ;;  %v1741_v41 = vpop.f32.mrb[42].mxu0  ;;  %v1793_v11 = vpop.f32.mrb[42].mxu1 }
 0x154   : > { %v1578_v45 = vpack.c.bf16 %v1225_v4, %v1224_v61  ;;  %v1169_v8 = vmax.f32 %v1117_v16, %v1143_v17  ;;  %v1118_v9 = vmax.f32 %v2076_v34, %v1741_v41  ;;  %v1144_v30 = vmax.f32 %v2078_v35, %v1793_v11  ;;  %v849_v46 = vpop.f32.mrb[43].mxu0  ;;  %v1057_v31 = vpop.f32.mrb[43].mxu1 }
 0x155   : > { %v1573_v47 = vpack.c.bf16 %v1223_v18, %v1222_v40  ;;  %v1167_v0 = vmax.f32 %v1115_v19, %v1141_v10  ;;  %v1116_v1 = vmax.f32 %v2056_v24, %v849_v46  ;;  %v1142_v51 = vmax.f32 %v2058_v25, %v1057_v31 }
 0x156   : > { %1615 = vst [vmem:[%s2117_s14 + $0x30] sm:$0xff] %v1578_v45   ;;  %v1202_v20 = vadd.f32 %v2103_v50, %v1169_v8  ;;  %v1170_v21 = vmax.f32 %v1118_v9, %v1144_v30 }
 0x157   : > { %1614 = vst [vmem:[%s2117_s14 + $0x28] sm:$0xff] %v1573_v47   ;;  %v1200_v52 = vadd.f32 %v2103_v50, %v1167_v0  ;;  %v1168_v53 = vmax.f32 %v1116_v1, %v1142_v51  ;;  %v2211_v51 = vld [vmem:[#allocation2_spill] sm:$0xff] }
 0x158   : > { %v1203_v34 = vadd.f32 %v2103_v50, %v1170_v21  ;;  %v1228_v6 = vmax.f32 %v1202_v20, 0.0  ;;  %v2212_v21 = vld [vmem:[#allocation3_spill] sm:$0xff] }
 0x159   : > { %v1201_v35 = vadd.f32 %v2103_v50, %v1168_v53  ;;  %v1744_v54 = vpop.f32.mrb[44].mxu0  ;;  %v1796_v55 = vpop.f32.mrb[44].mxu1  ;;  %v1226_v23 = vmax.f32 %v1200_v52, 0.0 }
 0x15a   : > { %v1229_v7 = vmax.f32 %v1203_v34, 0.0  ;;  %v1121_v24 = vmax.f32 %v2084_v38, %v1744_v54  ;;  %v1147_v25 = vmax.f32 %v2086_v39, %v1796_v55  ;;  %v862_v22 = vpop.f32.mrb[45].mxu0  ;;  %v1070_v58 = vpop.f32.mrb[45].mxu1 }
 0x15b   : > { %v1227_v59 = vmax.f32 %v1201_v35, 0.0  ;;  %v1119_v62 = vmax.f32 %v2064_v28, %v862_v22  ;;  %v1145_v14 = vmax.f32 %v2066_v29, %v1070_v58  ;;  %v1745_v63 = vpop.f32.mrb[46].mxu0  ;;  %v1797_v12 = vpop.f32.mrb[46].mxu1 }
 0x15c   : > { %v1588_v13 = vpack.c.bf16 %v1229_v7, %v1228_v6  ;;  %v1173_v15 = vmax.f32 %v1121_v24, %v1147_v25  ;;  %v1122_v44 = vmax.f32 %v2092_v42, %v1745_v63  ;;  %v1148_v38 = vmax.f32 %v2094_v43, %v1797_v12  ;;  %v865_v26 = vpop.f32.mrb[47].mxu0  ;;  %v1073_v39 = vpop.f32.mrb[47].mxu1 }
 0x15d   : > { %v1583_v27 = vpack.c.bf16 %v1227_v59, %v1226_v23  ;;  %v1171_v60 = vmax.f32 %v1119_v62, %v1145_v14  ;;  %v1120_v2 = vmax.f32 %v2072_v32, %v865_v26  ;;  %v1146_v61 = vmax.f32 %v2074_v33, %v1073_v39 }
 0x15e   : > { %1617 = vst [vmem:[%s2117_s14 + $0x40] sm:$0xff] %v1588_v13   ;;  %v1206_v28 = vadd.f32 %v2103_v50, %v1173_v15  ;;  %v1174_v29 = vmax.f32 %v1122_v44, %v1148_v38 }
 0x15f   : > { %1616 = vst [vmem:[%s2117_s14 + $0x38] sm:$0xff] %v1583_v27   ;;  %v1204_v4 = vadd.f32 %v2103_v50, %v1171_v60  ;;  %v1172_v16 = vmax.f32 %v1120_v2, %v1146_v61 }
 0x160   : > { %v1207_v42 = vadd.f32 %v2103_v50, %v1174_v29  ;;  %v1232_v3 = vmax.f32 %v1206_v28, 0.0 }
 0x161   : > { %v1205_v43 = vadd.f32 %v2103_v50, %v1172_v16  ;;  %v1748_v17 = vpop.f32.mrb[48].mxu0  ;;  %v1800_v5 = vpop.f32.mrb[48].mxu1  ;;  %v1230_v10 = vmax.f32 %v1204_v4, 0.0 }
 0x162   : > { %v1233_v40 = vmax.f32 %v1207_v42, 0.0  ;;  %v1125_v32 = vmax.f32 %v2096_v48, %v1748_v17  ;;  %v1151_v33 = vmax.f32 %v2098_v49, %v1800_v5  ;;  %v878_v18 = vpop.f32.mrb[49].mxu0  ;;  %v1086_v19 = vpop.f32.mrb[49].mxu1 }
 0x163   : > { %v1231_v41 = vmax.f32 %v1205_v43, 0.0  ;;  %v1123_v11 = vmax.f32 %v2080_v36, %v878_v18  ;;  %v1149_v45 = vmax.f32 %v2082_v37, %v1086_v19  ;;  %v1749_v8 = vpop.f32.mrb[50].mxu0  ;;  %v1801_v9 = vpop.f32.mrb[50].mxu1 }
 0x164   : > { %v1598_v30 = vpack.c.bf16 %v1233_v40, %v1232_v3  ;;  %v1177_v46 = vmax.f32 %v1125_v32, %v1151_v33  ;;  %v1126_v31 = vmax.f32 %v2105_v56, %v1749_v8  ;;  %v1152_v48 = vmax.f32 %v2107_v57, %v1801_v9  ;;  %v881_v47 = vpop.f32.mrb[51].mxu0  ;;  %v1089_v49 = vpop.f32.mrb[51].mxu1 }
 0x165   : > { %v1593_v0 = vpack.c.bf16 %v1231_v41, %v1230_v10  ;;  %v1175_v1 = vmax.f32 %v1123_v11, %v1149_v45  ;;  %v1124_v20 = vmax.f32 %v2211_v51, %v881_v47  ;;  %v1150_v36 = vmax.f32 %v2212_v21, %v1089_v49 }
 0x166   : > { %1619 = vst [vmem:[%s2117_s14 + $0x50] sm:$0xff] %v1598_v30   ;;  %v1210_v37 = vadd.f32 %v2103_v50, %v1177_v46  ;;  %v1178_v52 = vmax.f32 %v1126_v31, %v1152_v48 }
 0x167   : > { %1618 = vst [vmem:[%s2117_s14 + $0x48] sm:$0xff] %v1593_v0   ;;  %v1208_v53 = vadd.f32 %v2103_v50, %v1175_v1  ;;  %v1176_v56 = vmax.f32 %v1124_v20, %v1150_v36 }
 0x168   : > { %v1211_v57 = vadd.f32 %v2103_v50, %v1178_v52  ;;  %v1236_v35 = vmax.f32 %v1210_v37, 0.0 }
 0x169   : > { %v1209_v34 = vadd.f32 %v2103_v50, %v1176_v56  ;;  %v1234_v55 = vmax.f32 %v1208_v53, 0.0 }
 0x16a   : > { %v1237_v54 = vmax.f32 %v1211_v57, 0.0 }
 0x16b   : > { %v1235_v6 = vmax.f32 %v1209_v34, 0.0 }
 0x16c   : > { %v1608_v7 = vpack.c.bf16 %v1237_v54, %v1236_v35 }
 0x16d   : > { %v1603_v24 = vpack.c.bf16 %v1235_v6, %v1234_v55 }
 0x16e   : > { %1621 = vst [vmem:[%s2117_s14 + $0x60] sm:$0xff] %v1608_v7  }
 0x16f   : > { %1620 = vst [vmem:[%s2117_s14 + $0x58] sm:$0xff] %v1603_v24  }
 0x170 PF: > { %s13_s12 = sadd.s32 1, %s1894_s12  }
 0x171   : > { %p10_p4 = scmp.ge.s32.totalorder %s13_s12, 4  }
 0x173   :  { %12 = sbr.rel (!%p10_p4) target bundleno = 1 (0x1), region = 62 }

// kernel: net_forward.3
= control target key start
LH: loop header
LB: loop body
LE: loop exit
PB: predicated region body
PF: predicated region fallthrough
CT: control target
= control target key end

     0   :  { %14 = vsyncpa [#allocation4], 0  ;;  %s6680_s0 = inlined_call_operand.vmem [shape: bf16[2,128,256], index: 0, kind: input, shape index: {}]   ;;  %s6681_s1 = inlined_call_operand.vmem [shape: bf16[256,128], index: 1, kind: input, shape index: {}]   ;;  %s6682_s2 = inlined_call_operand.vmem [shape: f32[1,128], index: 2, kind: input, shape index: {}]   ;;  %s6683_s3 = inlined_call_operand.vmem [shape: bf16[25,128,128], index: 3, kind: input, shape index: {}]   ;;  %s6684_s4 = inlined_call_operand.vmem [shape: f32[1,128], index: 4, kind: input, shape index: {}]   ;;  %s6685_s5 = inlined_call_operand.vmem [shape: bf16[128,128], index: 5, kind: input, shape index: {}]   ;;  %s6686_s6 = inlined_call_operand.vmem [shape: f32[1,128], index: 6, kind: input, shape index: {}]   ;;  %s6687_s7 = inlined_call_operand.vmem [shape: bf16[128,128], index: 7, kind: input, shape index: {}]   ;;  %s6688_s8 = inlined_call_operand.vmem [shape: f32[1,128], index: 8, kind: input, shape index: {}]   ;;  %s6689_s9 = inlined_call_operand.hbm [shape: f32[2,1,128], index: 9, kind: output, shape index: {}]  }
   0x1   :  { %16 = vsyncpa [#allocation4 + $0x1], 0  ;;  %s5569_s30 = smov 0   ;;  %s5571_s10 = smov 0  }
   0x2   :  { %s5573_s11 = smov 0   ;;  %s5575_s12 = smov 0  }
   0x3 LB: > { %s5590_s13 = sadd.s32 4294967295, %s5514_s12   ;;  %s3665_s14 = sadd.s32 4294967294, %s5514_s12   ;;  %s5514_s12 = sphi %s5575_s12, %s6695_s12   ;;  %s5510_s11 = sphi %s5573_s11, %s6694_s11   ;;  %s5506_s10 = sphi %s5571_s10, %s6693_s10   ;;  %s5502_s30 = sphi %s5569_s30, %s6692_s30  }
   0x4   : > { %s5594_s15 = sadd.s32 1, %s5514_s12   ;;  %s223_s16 = sadd.s32 1, %s5510_s11 }
   0x5   : > { %s220_s17 = ssub.s32 %s5514_s12, %s5594_s15  ;;  %p233_p0 = scmp.ne.s32.totalorder %s5510_s11, %s5506_s10 }
   0x6   : > { %p221_p1 = scmp.eq.s32.totalorder %s220_s17, 0  ;;  %p234_p2 = scmp.eq.s32.totalorder %s5590_s13, 1 }
   0x7   : > { %p239_p3 = scmp.ne.s32.totalorder %s5506_s10, %s5502_s30  ;;  %p240_p4 = scmp.eq.s32.totalorder %s3665_s14, 1 }
   0x8   : > { %s5605_s18 = scalar_select %p221_p1, %s5510_s11, %s223_s16  }
   0x9   : > { %p5607_p5 = por %p234_p2, %p233_p0  ;;  %p5611_p6 = por %p240_p4, %p239_p3 }
   0xa   : > { %p3668_p7 = scmp.ge.s32.totalorder %s5514_s12, 1  ;;  %p290_p8 = scmp.lt.s32.totalorder %s5514_s12, 3 }
   0xc   : > { %p291_p9 = pnand %p3668_p7, %p290_p8 }
   0xd   : > { %v5196_v0 = vld [vmem:[%s6681_s1 + $0x40] sm:$0xff] (!%p291_p9)   ;;  %v5198_v2 = vld [vmem:[%s6681_s1 + $0x48] sm:$0xff] (!%p291_p9)   ;;  %p325_p10 = scmp.lt.s32.totalorder (!%p291_p9), %s5590_s13, 1  ;;  %v5200_v4 = vld [vmem:[%s6681_s1 + $0x50] sm:$0xff] (!%p291_p9)   ;;  %v5516_v34 = vmov (!%p291_p9), 0.0   ;;  %vm5517_vm0 = vmmov (!%p291_p9), 0  }
   0xe   : > { %294 = sbr.rel (%p291_p9) target bundleno = 1379 (0x563), region = 56  ;;  %v5197_v1 = vld [vmem:[%s6681_s1] sm:$0xff] (!%p291_p9)   ;;  %4308 = vmatprep.subr.bf16.mxu0 (!%p291_p9), %v5196_v0  ;;  %v5199_v3 = vld [vmem:[%s6681_s1 + $0x8] sm:$0xff] (!%p291_p9)   ;;  %v5201_v5 = vld [vmem:[%s6681_s1 + $0x10] sm:$0xff] (!%p291_p9)   ;;  %4615 = vmatprep.subr.bf16.mxu1 (!%p291_p9), %v5516_v34  ;;  %s323_s28 = sand.u32 (!%p291_p9), 1, %s5506_s10  }
   0xf   : > { %4309 = vmatpush3.bf16.msra.mxu0 (!%p291_p9), %v5197_v1  ;;  %v5202_v6 = vld [vmem:[%s6681_s1 + $0x58] sm:$0xff] (!%p291_p9)   ;;  %v5204_v8 = vld [vmem:[%s6681_s1 + $0x60] sm:$0xff] (!%p291_p9)   ;;  %v5206_v10 = vld [vmem:[%s6681_s1 + $0x68] sm:$0xff] (!%p291_p9)   ;;  %4631 = vmatprep.mubr.msk.bf16.mxu1 (!%p291_p9), %vm5517_vm0, %v5516_v34  ;;  %s4304_s17 = sshll.u32 (!%p291_p9), %s5590_s13, 4  ;;  %s324_s22 = scalar_lea.vmem (!%p291_p9), [#allocation3], %s323_s28 }
  0x10   : > { %4310 = vmatprep.subr.bf16.mxu0 (!%p291_p9), %v5198_v2  ;;  %v5203_v7 = vld [vmem:[%s6681_s1 + $0x18] sm:$0xff] (!%p291_p9)   ;;  %v5205_v9 = vld [vmem:[%s6681_s1 + $0x20] sm:$0xff] (!%p291_p9)   ;;  %v5207_v12 = vld [vmem:[%s6681_s1 + $0x28] sm:$0xff] (!%p291_p9)   ;;  %s3610_s23 = sshll.u32 (!%p291_p9), %s324_s22, 4  ;;  %s6638_s25 = scalar_lea.hbm (!%p291_p9), %s6689_s9, %s4304_s17  ;;  %s6640_s23 = int_to_ptr.vmem [resolvable:$true] %s3610_s23 }
  0x11   : > { %v5208_v13 = vld [vmem:[%s6681_s1 + $0x70] sm:$0xff] (!%p291_p9)   ;;  %v5210_v15 = vld [vmem:[%s6681_s1 + $0x78] sm:$0xff] (!%p291_p9)   ;;  %v5236_v32 = vld [vmem:[%s6683_s3 + $0x40] sm:$0xff] (!%p291_p9)  }
  0x12   : > { %v5209_v14 = vld [vmem:[%s6681_s1 + $0x30] sm:$0xff] (!%p291_p9)   ;;  %v5211_v16 = vld [vmem:[%s6681_s1 + $0x38] sm:$0xff] (!%p291_p9)   ;;  %v5237_v33 = vld [vmem:[%s6683_s3 + $0x80] sm:$0xff] (!%p291_p9)   ;;  %4616 = vmatpush3.bf16.msra.mxu1 (!%p291_p9), %v5236_v32 }
  0x13   : > { %4311 = vmatpush3.bf16.msra.mxu0 (!%p291_p9), %v5199_v3  ;;  %4617 = vmatprep.subr.bf16.mxu1 (!%p291_p9), %v5516_v34  ;;  %v5238_v35 = vld [vmem:[%s6683_s3 + $0x48] sm:$0xff] (!%p291_p9)   ;;  %v5240_v37 = vld [vmem:[%s6683_s3 + $0x50] sm:$0xff] (!%p291_p9)   ;;  %v5242_v39 = vld [vmem:[%s6683_s3 + $0x58] sm:$0xff] (!%p291_p9)  }
  0x14   : > { %4312 = vmatprep.subr.bf16.mxu0 (!%p291_p9), %v5200_v4  ;;  %v5239_v36 = vld [vmem:[%s6683_s3 + $0x88] sm:$0xff] (!%p291_p9)   ;;  %v5241_v38 = vld [vmem:[%s6683_s3 + $0x90] sm:$0xff] (!%p291_p9)   ;;  %v5243_v40 = vld [vmem:[%s6683_s3 + $0x98] sm:$0xff] (!%p291_p9)  }
  0x15   : > { %s326_s21 = scalar_select %p325_p10, %s5590_s13, 1  ;;  %v5244_v41 = vld [vmem:[%s6683_s3 + $0x60] sm:$0xff]   ;;  %v5246_v43 = vld [vmem:[%s6683_s3 + $0x68] sm:$0xff]   ;;  %v5248_v45 = vld [vmem:[%s6683_s3 + $0x70] sm:$0xff]  }
  0x16   : > { %4618 = vmatpush3.bf16.msra.mxu1 %v5238_v35  ;;  %v5245_v42 = vld [vmem:[%s6683_s3 + $0xa0] sm:$0xff]   ;;  %v5247_v44 = vld [vmem:[%s6683_s3 + $0xa8] sm:$0xff]   ;;  %v5249_v46 = vld [vmem:[%s6683_s3 + $0xb0] sm:$0xff]   ;;  %s5452_s13 = scalar_lea.vmem %s6640_s23, 16 }
  0x17   : > { %4313 = vmatpush3.bf16.msra.mxu0 %v5201_v5  ;;  %s4307_s26 = sshll.u32 %s326_s21, 7  ;;  %4619 = vmatprep.subr.bf16.mxu1 %v5516_v34  ;;  %v5250_v47 = vld [vmem:[%s6683_s3 + $0x78] sm:$0xff]   ;;  %v3703_v32 = vld [vmem:[%s6682_s2] ss:$0 sm:$0xff]  ;;  %p5453_p11 = scmp.ne.s32.totalorder %s6640_s23, %s5452_s13 }
  0x18   : > { %4314 = vmatprep.subr.bf16.mxu0 %v5202_v6  ;;  %s5649_s16 = scalar_lea.vmem %s6680_s0, %s4307_s26  ;;  %v5251_v48 = vld [vmem:[%s6683_s3 + $0xb8] sm:$0xff]   ;;  %s3598_s26 = scalar_lea.sflag [#allocation4], %s323_s28 }
  0x19   : > { %v5214_v11 = vld [vmem:[%s5649_s16 + $0x4] ss:$8 sps:$4 sm:$0xff]   ;;  %v5212_v17 = vld [vmem:[%s5649_s16] ss:$8 sps:$4 sm:$0xff]   ;;  %v5215_v18 = vld [vmem:[%s5649_s16 + $0x14] ss:$8 sps:$4 sm:$0xff]   ;;  %p5454_p12 = pnand %p5453_p11, %p5607_p5 }
  0x1a   : > { %587 = vmatprep.mubr.bf16.mxu0 %v5214_v11  ;;  %v5217_v19 = vld [vmem:[%s5649_s16 + $0x10] ss:$8 sps:$4 sm:$0xff]   ;;  %v5218_v20 = vld [vmem:[%s5649_s16 + $0x24] ss:$8 sps:$4 sm:$0xff]   ;;  %v5220_v21 = vld [vmem:[%s5649_s16 + $0x20] ss:$8 sps:$4 sm:$0xff]   ;;  %4620 = vmatpush3.bf16.msra.mxu1 %v5240_v37 }
  0x1b   : > { %4315 = vmatpush3.bf16.msra.mxu0 %v5203_v7  ;;  %v5221_v22 = vld [vmem:[%s5649_s16 + $0x34] ss:$8 sps:$4 sm:$0xff]   ;;  %v5223_v23 = vld [vmem:[%s5649_s16 + $0x30] ss:$8 sps:$4 sm:$0xff]   ;;  %v5224_v24 = vld [vmem:[%s5649_s16 + $0x44] ss:$8 sps:$4 sm:$0xff]   ;;  %4621 = vmatprep.subr.bf16.mxu1 %v5516_v34  ;;  %p5455_p13 = pneg %p5454_p12 }
  0x1c   : > { %4316 = vmatprep.subr.bf16.mxu0 %v5204_v8  ;;  %v5226_v25 = vld [vmem:[%s5649_s16 + $0x40] ss:$8 sps:$4 sm:$0xff]   ;;  %v5227_v26 = vld [vmem:[%s5649_s16 + $0x54] ss:$8 sps:$4 sm:$0xff]   ;;  %v5229_v27 = vld [vmem:[%s5649_s16 + $0x50] ss:$8 sps:$4 sm:$0xff]  }
  0x1d   : > { %v5230_v28 = vld [vmem:[%s5649_s16 + $0x64] ss:$8 sps:$4 sm:$0xff]   ;;  %v5232_v29 = vld [vmem:[%s5649_s16 + $0x60] ss:$8 sps:$4 sm:$0xff]   ;;  %v5233_v30 = vld [vmem:[%s5649_s16 + $0x74] ss:$8 sps:$4 sm:$0xff]  }
  0x1e   : > { %v5235_v31 = vld [vmem:[%s5649_s16 + $0x70] ss:$8 sps:$4 sm:$0xff]   ;;  %4622 = vmatpush3.bf16.msra.mxu1 %v5242_v39  ;;  %s5518_s16 = smov [#allocation3]  }
  0x1f   : > { %4317 = vmatpush3.bf16.msra.mxu0 %v5205_v9  ;;  %4623 = vmatprep.subr.bf16.mxu1 %v5516_v34  ;;  %s5456_s27 = sshll.u32 %s5518_s16, 4  ;;  %s5457_s27 = int_to_ptr.vmem [resolvable:$false] %s5456_s27 }
  0x20   : > { %4318 = vmatprep.subr.bf16.mxu0 %v5206_v10  ;;  %s5458_s29 = scalar_lea.vmem %s5457_s27, 32  ;;  %p5459_p0 = scmp.lt.s32.totalorder %s6640_s23, %s5457_s27 }
  0x21   : > { %p5460_p1 = scmp.lt.s32.totalorder %s5458_s29, %s5452_s13 }
  0x22   : > { %4624 = vmatpush3.bf16.msra.mxu1 %v5244_v41 }
  0x23   : > { %4319 = vmatpush3.bf16.msra.mxu0 %v5207_v12  ;;  %4625 = vmatprep.subr.bf16.mxu1 %v5516_v34  ;;  %p5461_p2 = por %p5460_p1, %p5459_p0 }
  0x24   : > { %4320 = vmatprep.subr.bf16.mxu0 %v5208_v13 }
  0x25   : > { %p5462_p3 = pnand %p5461_p2, %p5455_p13 }
  0x26   : > { %4626 = vmatpush3.bf16.msra.mxu1 %v5246_v43 }
  0x27   : > { %4321 = vmatpush3.bf16.msra.mxu0 %v5209_v14  ;;  %4627 = vmatprep.subr.bf16.mxu1 %v5516_v34 }
  0x28   : > { %4322 = vmatprep.subr.bf16.mxu0 %v5210_v15 }
  0x2a   : > { %4628 = vmatpush3.bf16.msra.mxu1 %v5248_v45 }
  0x2b   : > { %4323 = vmatpush3.bf16.msra.mxu0 %v5211_v16  ;;  %4629 = vmatprep.subr.bf16.mxu1 %v5516_v34 }
  0x2c   : > { %4655 = vmatprep.subr.bf16.mxu0 %v5516_v34 }
  0x2e   : > { %588 = vmatmul.mubr.bf16.vlgmr.msra.gmra.mrb[0].mxu0 %v5212_v17  ;;  %4630 = vmatpush3.bf16.msra.mxu1 %v5250_v47 }
  0x2f   : > { %595 = vmatprep.mubr.bf16.mxu0 %v5215_v18  ;;  %4656 = vmatpush3.bf16.msra.mxu0 %v5237_v33 }
  0x30   : > { %4657 = vmatprep.subr.bf16.mxu0 %v5516_v34  ;;  %4635 = vmatprep.subr.bf16.mxu1 %v5516_v34 }
  0x33   : > { %4658 = vmatpush3.bf16.msra.mxu0 %v5239_v36 }
  0x34   : > { %4659 = vmatprep.subr.bf16.mxu0 %v5516_v34 }
  0x36   : > { %596 = vmatmul.mubr.bf16.gmra.mrb[4].mxu0 %v5217_v19 }
  0x37   : > { %603 = vmatprep.mubr.bf16.mxu0 %v5218_v20  ;;  %4660 = vmatpush3.bf16.msra.mxu0 %v5241_v38 }
  0x38   : > { %4661 = vmatprep.subr.bf16.mxu0 %v5516_v34 }
  0x3b   : > { %4662 = vmatpush3.bf16.msra.mxu0 %v5243_v40 }
  0x3c   : > { %4663 = vmatprep.subr.bf16.mxu0 %v5516_v34 }
  0x3e   : > { %604 = vmatmul.mubr.bf16.gmra.mrb[8].mxu0 %v5220_v21 }
  0x3f   : > { %611 = vmatprep.mubr.bf16.mxu0 %v5221_v22  ;;  %4664 = vmatpush3.bf16.msra.mxu0 %v5245_v42 }
  0x40   : > { %4665 = vmatprep.subr.bf16.mxu0 %v5516_v34 }
  0x43   : > { %4666 = vmatpush3.bf16.msra.mxu0 %v5247_v44 }
  0x44   : > { %4667 = vmatprep.subr.bf16.mxu0 %v5516_v34 }
  0x46   : > { %612 = vmatmul.mubr.bf16.gmra.mrb[12].mxu0 %v5223_v23 }
  0x47   : > { %619 = vmatprep.mubr.bf16.mxu0 %v5224_v24  ;;  %4668 = vmatpush3.bf16.msra.mxu0 %v5249_v46 }
  0x48   : > { %4669 = vmatprep.subr.bf16.mxu0 %v5516_v34 }
  0x4b   : > { %4670 = vmatpush3.bf16.msra.mxu0 %v5251_v48 }
  0x4c   : > { %4695 = vmatprep.subr.bf16.mxu0 %v5516_v34 }
  0x4e   : > { %620 = vmatmul.mubr.bf16.gmra.mrb[16].mxu0 %v5226_v25 }
  0x4f   : > { %627 = vmatprep.mubr.bf16.mxu0 %v5227_v26 }
  0x56   : > { %628 = vmatmul.mubr.bf16.gmra.mrb[20].mxu0 %v5229_v27 }
  0x57   : > { %635 = vmatprep.mubr.bf16.mxu0 %v5230_v28 }
  0x5e   : > { %636 = vmatmul.mubr.bf16.gmra.mrb[24].mxu0 %v5232_v29 }
  0x5f   : > { %643 = vmatprep.mubr.bf16.mxu0 %v5233_v30 }
  0x66   : > { %644 = vmatmul.mubr.bf16.gmra.mrb[28].mxu0 %v5235_v31 }
  0x67   : > { %4671 = vmatprep.mubr.msk.bf16.mxu0 %vm5517_vm0, %v5516_v34 }
 0x101   : > { %v4324_v49 = vpop.f32.mrb[0].mxu0 }
 0x102   : > { %v4325_v50 = vpop.f32.mrb[1].mxu0 }
 0x103   : > { %v4326_v51 = vadd.f32 %v4325_v50, %v4324_v49  ;;  %v4327_v52 = vpop.f32.mrb[2].mxu0 }
 0x104   : > { %v4328_v53 = vpop.f32.mrb[3].mxu0 }
 0x105   : > { %v4329_v54 = vadd.f32 %v4328_v53, %v4327_v52 }
 0x109   : > { %v4330_v55 = vpop.f32.mrb[4].mxu0 }
 0x10a   : > { %v4331_v56 = vpop.f32.mrb[5].mxu0 }
 0x10b   : > { %v4332_v57 = vadd.f32 %v4331_v56, %v4330_v55  ;;  %v4333_v58 = vpop.f32.mrb[6].mxu0 }
 0x10c   : > { %v4334_v59 = vpop.f32.mrb[7].mxu0 }
 0x10d   : > { %v4335_v60 = vadd.f32 %v4334_v59, %v4333_v58 }
 0x111   : > { %v4336_v61 = vpop.f32.mrb[8].mxu0 }
 0x112   : > { %v4337_v62 = vpop.f32.mrb[9].mxu0 }
 0x113   : > { %v4338_v63 = vadd.f32 %v4337_v62, %v4336_v61  ;;  %v4339_v0 = vpop.f32.mrb[10].mxu0  ;;  %v5254_v61 = vld [vmem:[%s6683_s3 + $0x8] sm:$0xff]  }
 0x114   : > { %v4340_v1 = vpop.f32.mrb[11].mxu0  ;;  %v5255_v62 = vld [vmem:[%s6683_s3 + $0x108] sm:$0xff]  }
 0x115   : > { %v652_v2 = vmax.f32 %v4326_v51, %v4338_v63  ;;  %v4341_v3 = vadd.f32 %v4340_v1, %v4339_v0  ;;  %v5256_v63 = vld [vmem:[%s6683_s3 + $0x10] sm:$0xff]   ;;  %v5258_v1 = vld [vmem:[%s6683_s3 + $0x18] sm:$0xff]  }
 0x116   : > { %v5257_v0 = vld [vmem:[%s6683_s3 + $0x110] sm:$0xff]  }
 0x117   : > { %v653_v4 = vmax.f32 %v4329_v54, %v4341_v3  ;;  %v5252_v54 = vld [vmem:[%s6683_s3] sm:$0xff]  }
 0x118   : > { %v5260_v3 = vld [vmem:[%s6683_s3 + $0x20] sm:$0xff]  }
 0x119   : > { %v4342_v5 = vpop.f32.mrb[12].mxu0 }
 0x11a   : > { %v4343_v6 = vpop.f32.mrb[13].mxu0 }
 0x11b   : > { %v4344_v7 = vadd.f32 %v4343_v6, %v4342_v5  ;;  %v4345_v8 = vpop.f32.mrb[14].mxu0  ;;  %v5262_v5 = vld [vmem:[%s6683_s3 + $0x28] sm:$0xff]  }
 0x11c   : > { %v4346_v9 = vpop.f32.mrb[15].mxu0  ;;  %v5263_v6 = vld [vmem:[%s6683_s3 + $0x128] sm:$0xff]  }
 0x11d   : > { %v654_v10 = vmax.f32 %v4332_v57, %v4344_v7  ;;  %v4347_v11 = vadd.f32 %v4346_v9, %v4345_v8  ;;  %v5253_v57 = vld [vmem:[%s6683_s3 + $0x100] sm:$0xff]   ;;  %v5264_v7 = vld [vmem:[%s6683_s3 + $0x30] sm:$0xff]   ;;  %v5266_v9 = vld [vmem:[%s6683_s3 + $0x38] sm:$0xff]  }
 0x11e   : > { %v5265_v8 = vld [vmem:[%s6683_s3 + $0x130] sm:$0xff]  }
 0x11f   : > { %v655_v12 = vmax.f32 %v4335_v60, %v4347_v11 }
 0x121   : > { %v4348_v13 = vpop.f32.mrb[16].mxu0 }
 0x122   : > { %v4349_v14 = vpop.f32.mrb[17].mxu0 }
 0x123   : > { %v4350_v15 = vadd.f32 %v4349_v14, %v4348_v13  ;;  %v4351_v16 = vpop.f32.mrb[18].mxu0  ;;  %v5268_v13 = vld [vmem:[%s6683_s3 + $0xc0] sm:$0xff]  }
 0x124   : > { %v4352_v17 = vpop.f32.mrb[19].mxu0  ;;  %v5269_v14 = vld [vmem:[%s6683_s3 + $0x180] sm:$0xff]  }
 0x125   : > { %v4353_v18 = vadd.f32 %v4352_v17, %v4351_v16  ;;  %v5270_v17 = vld [vmem:[%s6683_s3 + $0xc8] sm:$0xff]  }
 0x129   : > { %v4354_v19 = vpop.f32.mrb[20].mxu0 }
 0x12a   : > { %v4355_v20 = vpop.f32.mrb[21].mxu0 }
 0x12b   : > { %v4356_v21 = vadd.f32 %v4355_v20, %v4354_v19  ;;  %v4357_v22 = vpop.f32.mrb[22].mxu0  ;;  %v5272_v19 = vld [vmem:[%s6683_s3 + $0xd0] sm:$0xff]  }
 0x12c   : > { %v4358_v23 = vpop.f32.mrb[23].mxu0  ;;  %v5273_v20 = vld [vmem:[%s6683_s3 + $0x190] sm:$0xff]  }
 0x12d   : > { %v4359_v24 = vadd.f32 %v4358_v23, %v4357_v22  ;;  %v5275_v22 = vld [vmem:[%s6683_s3 + $0x198] sm:$0xff]   ;;  %v5276_v23 = vld [vmem:[%s6683_s3 + $0xe0] sm:$0xff]  }
 0x131   : > { %v4360_v25 = vpop.f32.mrb[24].mxu0 }
 0x132   : > { %v4361_v26 = vpop.f32.mrb[25].mxu0 }
 0x133   : > { %v4362_v27 = vadd.f32 %v4361_v26, %v4360_v25  ;;  %v4363_v28 = vpop.f32.mrb[26].mxu0  ;;  %v5278_v25 = vld [vmem:[%s6683_s3 + $0xe8] sm:$0xff]  }
 0x134   : > { %v4364_v29 = vpop.f32.mrb[27].mxu0  ;;  %v5279_v26 = vld [vmem:[%s6683_s3 + $0x1a8] sm:$0xff]  }
 0x135   : > { %v656_v30 = vmax.f32 %v4350_v15, %v4362_v27  ;;  %v4365_v31 = vadd.f32 %v4364_v29, %v4363_v28  ;;  %v5280_v27 = vld [vmem:[%s6683_s3 + $0xf0] sm:$0xff]   ;;  %v5282_v29 = vld [vmem:[%s6683_s3 + $0xf8] sm:$0xff]  }
 0x136   : > { %v5281_v28 = vld [vmem:[%s6683_s3 + $0x1b0] sm:$0xff]  }
 0x137   : > { %v660_v33 = vmax.f32 %v652_v2, %v656_v30  ;;  %v657_v35 = vmax.f32 %v4353_v18, %v4365_v31  ;;  %v5259_v2 = vld [vmem:[%s6683_s3 + $0x118] sm:$0xff]   ;;  %v5271_v18 = vld [vmem:[%s6683_s3 + $0x188] sm:$0xff]  }
 0x138   : > { %v5283_v30 = vld [vmem:[%s6683_s3 + $0x1b8] sm:$0xff]  }
 0x139   : > { %v671_v36 = vadd.f32 %v3703_v32, %v660_v33  ;;  %v661_v37 = vmax.f32 %v653_v4, %v657_v35  ;;  %v4366_v38 = vpop.f32.mrb[28].mxu0  ;;  %v5261_v4 = vld [vmem:[%s6683_s3 + $0x120] sm:$0xff]  }
 0x13a   : > { %v4367_v39 = vpop.f32.mrb[29].mxu0  ;;  %v5284_v33 = vld [vmem:[%s6683_s3 + $0x140] sm:$0xff]  }
 0x13b   : > { %v675_v40 = vmax.f32 %v671_v36, 0.0  ;;  %v672_v41 = vadd.f32 %v3703_v32, %v661_v37  ;;  %v4368_v42 = vadd.f32 %v4367_v39, %v4366_v38  ;;  %v4369_v43 = vpop.f32.mrb[30].mxu0  ;;  %v5285_v35 = vld [vmem:[%s6683_s3 + $0x200] sm:$0xff]   ;;  %v5286_v38 = vld [vmem:[%s6683_s3 + $0x148] sm:$0xff]  }
 0x13c   : > { %v4370_v44 = vpop.f32.mrb[31].mxu0  ;;  %v5287_v39 = vld [vmem:[%s6683_s3 + $0x208] sm:$0xff]  }
 0x13d   : > { %679 = vst [vmem:[#allocation2] sm:$0xff] %v675_v40  ;;  %v676_v45 = vmax.f32 %v672_v41, 0.0  ;;  %v658_v46 = vmax.f32 %v4356_v21, %v4368_v42  ;;  %v4371_v47 = vadd.f32 %v4370_v44, %v4369_v43  ;;  %v5274_v21 = vld [vmem:[%s6683_s3 + $0xd8] sm:$0xff]   ;;  %v5288_v40 = vld [vmem:[%s6683_s3 + $0x150] sm:$0xff]   ;;  %v5292_v44 = vld [vmem:[%s6683_s3 + $0x160] sm:$0xff]  }
 0x13e   : > { %v5289_v41 = vld [vmem:[%s6683_s3 + $0x210] sm:$0xff]   ;;  %v5290_v42 = vld [vmem:[%s6683_s3 + $0x158] sm:$0xff]  }
 0x13f   : > { %680 = vst [vmem:[#allocation2 + $0x8] sm:$0xff] %v676_v45  ;;  %v662_v48 = vmax.f32 %v654_v10, %v658_v46  ;;  %v659_v49 = vmax.f32 %v4359_v24, %v4371_v47  ;;  %v5267_v10 = vld [vmem:[%s6683_s3 + $0x138] sm:$0xff]   ;;  %v5277_v24 = vld [vmem:[%s6683_s3 + $0x1a0] sm:$0xff]   ;;  %v5294_v46 = vld [vmem:[%s6683_s3 + $0x168] sm:$0xff]  }
 0x140   : > { %v5291_v43 = vld [vmem:[%s6683_s3 + $0x218] sm:$0xff]   ;;  %v5293_v45 = vld [vmem:[%s6683_s3 + $0x220] sm:$0xff]   ;;  %v5295_v47 = vld [vmem:[%s6683_s3 + $0x228] sm:$0xff]  }
 0x141   : > { %v673_v50 = vadd.f32 %v3703_v32, %v662_v48  ;;  %v663_v51 = vmax.f32 %v655_v12, %v659_v49  ;;  %v5296_v48 = vld [vmem:[%s6683_s3 + $0x170] sm:$0xff]  }
 0x142   : > { %v5297_v49 = vld [vmem:[%s6683_s3 + $0x230] sm:$0xff]  }
 0x143   : > { %v677_v52 = vmax.f32 %v673_v50, 0.0  ;;  %v674_v53 = vadd.f32 %v3703_v32, %v663_v51  ;;  %v5298_v50 = vld [vmem:[%s6683_s3 + $0x178] sm:$0xff]  }
 0x144   : > { %v701_v55 = vld [vmem:[#allocation2 + $0x1] sm:$0x1]  ;;  %v896_v56 = vld [vmem:[#allocation2 + $0x2] sm:$0x1]  ;;  %v683_v11 = vld [vmem:[#allocation2] sm:$0x1] }
 0x145   : > { %681 = vst [vmem:[#allocation2 + $0x10] sm:$0xff] %v677_v52  ;;  %v678_v58 = vmax.f32 %v674_v53, 0.0  ;;  %v702_v59 = vpack.c.bf16 %v701_v55, %v701_v55  ;;  %v897_v60 = vpack.c.bf16 %v896_v56, %v896_v56  ;;  %v1112_v12 = vld [vmem:[#allocation2 + $0x4] sm:$0x1]  ;;  %v684_v15 = vpack.c.bf16 %v683_v11, %v683_v11  ;;  %v1004_v31 = vld [vmem:[#allocation2 + $0x3] sm:$0x1] }
 0x146   : > { %v1113_v16 = vpack.c.bf16 %v1112_v12, %v1112_v12  ;;  %v1328_v32 = vld [vmem:[#allocation2 + $0x6] sm:$0x1]  ;;  %v1005_v36 = vpack.c.bf16 %v1004_v31, %v1004_v31  ;;  %v5299_v51 = vld [vmem:[%s6683_s3 + $0x238] sm:$0xff]   ;;  %v1220_v52 = vld [vmem:[#allocation2 + $0x5] sm:$0x1] }
 0x147   : > { %682 = vst [vmem:[#allocation2 + $0x18] sm:$0xff] %v678_v58  ;;  %4632 = vmatmul.mubr.bf16.vlgmr.msra.gmra.mrb[0].mxu1 %v702_v59  ;;  %4672 = vmatmul.mubr.bf16.vlgmr.msra.gmra.mrb[32].mxu0 %v897_v60  ;;  %v1329_v37 = vpack.c.bf16 %v1328_v32, %v1328_v32  ;;  %v1544_v53 = vld [vmem:[#allocation2 + $0x8] sm:$0x1]  ;;  %v5301_v55 = vld [vmem:[%s6683_s3 + $0x280] sm:$0xff]   ;;  %v1221_v56 = vpack.c.bf16 %v1220_v52, %v1220_v52  ;;  %v5304_v60 = vld [vmem:[%s6683_s3 + $0x1d0] sm:$0xff]  }
 0x148   : > { %4636 = vmatpush3.bf16.msra.mxu1 %v5252_v54  ;;  %4696 = vmatpush3.bf16.msra.mxu0 %v5253_v57  ;;  %v5300_v54 = vld [vmem:[%s6683_s3 + $0x1c0] sm:$0xff]   ;;  %v1545_v57 = vpack.c.bf16 %v1544_v53, %v1544_v53  ;;  %v5302_v58 = vld [vmem:[%s6683_s3 + $0x1c8] sm:$0xff]  }
 0x149   : > { %4637 = vmatprep.subr.bf16.mxu1 %v5516_v34  ;;  %4697 = vmatprep.subr.bf16.mxu0 %v5516_v34  ;;  %v5303_v59 = vld [vmem:[%s6683_s3 + $0x288] sm:$0xff]   ;;  %v5317_v11 = vld [vmem:[%s6683_s3 + $0x300] sm:$0xff]  }
 0x14a   : > { %4651 = vmatprep.mubr.msk.bf16.mxu1 %vm5517_vm0, %v5516_v34  ;;  %4711 = vmatprep.mubr.msk.bf16.mxu0 %vm5517_vm0, %v5516_v34  ;;  %v5333_v31 = vld [vmem:[%s6683_s3 + $0x380] sm:$0xff]  }
 0x14b   : > { %v5349_v52 = vld [vmem:[%s6683_s3 + $0x400] sm:$0xff]  }
 0x14c   : > { %4638 = vmatpush3.bf16.msra.mxu1 %v5254_v61  ;;  %4698 = vmatpush3.bf16.msra.mxu0 %v5255_v62  ;;  %v5305_v61 = vld [vmem:[%s6683_s3 + $0x290] sm:$0xff]   ;;  %v5306_v62 = vld [vmem:[%s6683_s3 + $0x1d8] sm:$0xff]  }
 0x14d   : > { %4639 = vmatprep.subr.bf16.mxu1 %v5516_v34  ;;  %4699 = vmatprep.subr.bf16.mxu0 %v5516_v34 }
 0x150   : > { %4640 = vmatpush3.bf16.msra.mxu1 %v5256_v63  ;;  %4700 = vmatpush3.bf16.msra.mxu0 %v5257_v0  ;;  %v5307_v63 = vld [vmem:[%s6683_s3 + $0x298] sm:$0xff]   ;;  %v5308_v0 = vld [vmem:[%s6683_s3 + $0x1e0] sm:$0xff]  }
 0x151   : > { %4641 = vmatprep.subr.bf16.mxu1 %v5516_v34  ;;  %4701 = vmatprep.subr.bf16.mxu0 %v5516_v34 }
 0x154   : > { %4642 = vmatpush3.bf16.msra.mxu1 %v5258_v1  ;;  %4702 = vmatpush3.bf16.msra.mxu0 %v5259_v2  ;;  %v5309_v1 = vld [vmem:[%s6683_s3 + $0x2a0] sm:$0xff]   ;;  %v5310_v2 = vld [vmem:[%s6683_s3 + $0x1e8] sm:$0xff]  }
 0x155   : > { %4643 = vmatprep.subr.bf16.mxu1 %v5516_v34  ;;  %4703 = vmatprep.subr.bf16.mxu0 %v5516_v34 }
 0x158   : > { %4644 = vmatpush3.bf16.msra.mxu1 %v5260_v3  ;;  %4704 = vmatpush3.bf16.msra.mxu0 %v5261_v4  ;;  %v5311_v3 = vld [vmem:[%s6683_s3 + $0x2a8] sm:$0xff]   ;;  %v5312_v4 = vld [vmem:[%s6683_s3 + $0x1f0] sm:$0xff]  }
 0x159   : > { %4645 = vmatprep.subr.bf16.mxu1 %v5516_v34  ;;  %4705 = vmatprep.subr.bf16.mxu0 %v5516_v34 }
 0x15c   : > { %4646 = vmatpush3.bf16.msra.mxu1 %v5262_v5  ;;  %4706 = vmatpush3.bf16.msra.mxu0 %v5263_v6  ;;  %v5313_v5 = vld [vmem:[%s6683_s3 + $0x2b0] sm:$0xff]   ;;  %v5314_v6 = vld [vmem:[%s6683_s3 + $0x1f8] sm:$0xff]  }
 0x15d   : > { %4647 = vmatprep.subr.bf16.mxu1 %v5516_v34  ;;  %4707 = vmatprep.subr.bf16.mxu0 %v5516_v34 }
 0x160   : > { %4648 = vmatpush3.bf16.msra.mxu1 %v5264_v7  ;;  %4708 = vmatpush3.bf16.msra.mxu0 %v5265_v8  ;;  %v5315_v7 = vld [vmem:[%s6683_s3 + $0x2b8] sm:$0xff]   ;;  %v1436_v8 = vld [vmem:[#allocation2 + $0x7] sm:$0x1] }
 0x161   : > { %4649 = vmatprep.subr.bf16.mxu1 %v5516_v34  ;;  %4709 = vmatprep.subr.bf16.mxu0 %v5516_v34  ;;  %v1437_v12 = vpack.c.bf16 %v1436_v8, %v1436_v8  ;;  %v5361_v8 = vld [vmem:[%s6683_s3 + $0x430] sm:$0xff]  }
 0x164   : > { %4650 = vmatpush3.bf16.msra.mxu1 %v5266_v9  ;;  %4710 = vmatpush3.bf16.msra.mxu0 %v5267_v10  ;;  %v1760_v9 = vld [vmem:[#allocation2 + $0xa] sm:$0x1]  ;;  %v5316_v10 = vld [vmem:[%s6683_s3 + $0x240] sm:$0xff]  }
 0x165   : > { %4675 = vmatprep.subr.bf16.mxu1 %v5516_v34  ;;  %4735 = vmatprep.subr.bf16.mxu0 %v5516_v34 }
 0x167   : > { %4652 = vmatmul.mubr.bf16.vlgmr.msra.gmra.mrb[4].mxu1 %v684_v15  ;;  %4712 = vmatmul.mubr.bf16.vlgmr.msra.gmra.mrb[36].mxu0 %v1113_v16  ;;  %v5319_v15 = vld [vmem:[%s6683_s3 + $0x308] sm:$0xff]   ;;  %v5320_v16 = vld [vmem:[%s6683_s3 + $0x250] sm:$0xff]  }
 0x168   : > { %4676 = vmatpush3.bf16.msra.mxu1 %v5268_v13  ;;  %4736 = vmatpush3.bf16.msra.mxu0 %v5269_v14  ;;  %v1761_v13 = vpack.c.bf16 %v1760_v9, %v1760_v9  ;;  %v5318_v14 = vld [vmem:[%s6683_s3 + $0x248] sm:$0xff]  }
 0x169   : > { %4677 = vmatprep.subr.bf16.mxu1 %v5516_v34  ;;  %4737 = vmatprep.subr.bf16.mxu0 %v5516_v34 }
 0x16a   : > { %4691 = vmatprep.mubr.msk.bf16.mxu1 %vm5517_vm0, %v5516_v34  ;;  %4751 = vmatprep.mubr.msk.bf16.mxu0 %vm5517_vm0, %v5516_v34 }
 0x16c   : > { %4678 = vmatpush3.bf16.msra.mxu1 %v5270_v17  ;;  %4738 = vmatpush3.bf16.msra.mxu0 %v5271_v18  ;;  %v5321_v17 = vld [vmem:[%s6683_s3 + $0x310] sm:$0xff]   ;;  %v5322_v18 = vld [vmem:[%s6683_s3 + $0x258] sm:$0xff]  }
 0x16d   : > { %4679 = vmatprep.subr.bf16.mxu1 %v5516_v34  ;;  %4739 = vmatprep.subr.bf16.mxu0 %v5516_v34 }
 0x170   : > { %4680 = vmatpush3.bf16.msra.mxu1 %v5272_v19  ;;  %4740 = vmatpush3.bf16.msra.mxu0 %v5273_v20  ;;  %v5323_v19 = vld [vmem:[%s6683_s3 + $0x318] sm:$0xff]   ;;  %v5324_v20 = vld [vmem:[%s6683_s3 + $0x260] sm:$0xff]  }
 0x171   : > { %4681 = vmatprep.subr.bf16.mxu1 %v5516_v34  ;;  %4741 = vmatprep.subr.bf16.mxu0 %v5516_v34 }
 0x174   : > { %4682 = vmatpush3.bf16.msra.mxu1 %v5274_v21  ;;  %4742 = vmatpush3.bf16.msra.mxu0 %v5275_v22  ;;  %v5325_v21 = vld [vmem:[%s6683_s3 + $0x320] sm:$0xff]   ;;  %v5326_v22 = vld [vmem:[%s6683_s3 + $0x268] sm:$0xff]  }
 0x175   : > { %4683 = vmatprep.subr.bf16.mxu1 %v5516_v34  ;;  %4743 = vmatprep.subr.bf16.mxu0 %v5516_v34 }
 0x178   : > { %4684 = vmatpush3.bf16.msra.mxu1 %v5276_v23  ;;  %4744 = vmatpush3.bf16.msra.mxu0 %v5277_v24  ;;  %v5327_v23 = vld [vmem:[%s6683_s3 + $0x328] sm:$0xff]   ;;  %v5328_v24 = vld [vmem:[%s6683_s3 + $0x270] sm:$0xff]  }
 0x179   : > { %4685 = vmatprep.subr.bf16.mxu1 %v5516_v34  ;;  %4745 = vmatprep.subr.bf16.mxu0 %v5516_v34 }
 0x17c   : > { %4686 = vmatpush3.bf16.msra.mxu1 %v5278_v25  ;;  %4746 = vmatpush3.bf16.msra.mxu0 %v5279_v26  ;;  %v5329_v25 = vld [vmem:[%s6683_s3 + $0x330] sm:$0xff]   ;;  %v5330_v26 = vld [vmem:[%s6683_s3 + $0x278] sm:$0xff]  }
 0x17d   : > { %4687 = vmatprep.subr.bf16.mxu1 %v5516_v34  ;;  %4747 = vmatprep.subr.bf16.mxu0 %v5516_v34 }
 0x180   : > { %4688 = vmatpush3.bf16.msra.mxu1 %v5280_v27  ;;  %4748 = vmatpush3.bf16.msra.mxu0 %v5281_v28  ;;  %v5331_v27 = vld [vmem:[%s6683_s3 + $0x338] sm:$0xff]   ;;  %v1652_v28 = vld [vmem:[#allocation2 + $0x9] sm:$0x1] }
 0x181   : > { %4689 = vmatprep.subr.bf16.mxu1 %v5516_v34  ;;  %4749 = vmatprep.subr.bf16.mxu0 %v5516_v34  ;;  %v1653_v32 = vpack.c.bf16 %v1652_v28, %v1652_v28  ;;  %v5375_v28 = vld [vmem:[%s6683_s3 + $0x4a8] sm:$0xff]  }
 0x184   : > { %4690 = vmatpush3.bf16.msra.mxu1 %v5282_v29  ;;  %4750 = vmatpush3.bf16.msra.mxu0 %v5283_v30  ;;  %v1976_v29 = vld [vmem:[#allocation2 + $0xc] sm:$0x1]  ;;  %v5332_v30 = vld [vmem:[%s6683_s3 + $0x2c0] sm:$0xff]  }
 0x185   : > { %4715 = vmatprep.subr.bf16.mxu1 %v5516_v34  ;;  %4775 = vmatprep.subr.bf16.mxu0 %v5516_v34 }
 0x187   : > { %4692 = vmatmul.mubr.bf16.vlgmr.msra.gmra.mrb[8].mxu1 %v1005_v36  ;;  %4752 = vmatmul.mubr.bf16.vlgmr.msra.gmra.mrb[40].mxu0 %v1329_v37  ;;  %v5335_v36 = vld [vmem:[%s6683_s3 + $0x388] sm:$0xff]   ;;  %v5336_v37 = vld [vmem:[%s6683_s3 + $0x2d0] sm:$0xff]  }
 0x188   : > { %4716 = vmatpush3.bf16.msra.mxu1 %v5284_v33  ;;  %4776 = vmatpush3.bf16.msra.mxu0 %v5285_v35  ;;  %v1977_v33 = vpack.c.bf16 %v1976_v29, %v1976_v29  ;;  %v5334_v35 = vld [vmem:[%s6683_s3 + $0x2c8] sm:$0xff]  }
 0x189   : > { %4717 = vmatprep.subr.bf16.mxu1 %v5516_v34  ;;  %4777 = vmatprep.subr.bf16.mxu0 %v5516_v34 }
 0x18a   : > { %4731 = vmatprep.mubr.msk.bf16.mxu1 %vm5517_vm0, %v5516_v34  ;;  %4791 = vmatprep.mubr.msk.bf16.mxu0 %vm5517_vm0, %v5516_v34 }
 0x18c   : > { %4718 = vmatpush3.bf16.msra.mxu1 %v5286_v38  ;;  %4778 = vmatpush3.bf16.msra.mxu0 %v5287_v39  ;;  %v5337_v38 = vld [vmem:[%s6683_s3 + $0x390] sm:$0xff]   ;;  %v5338_v39 = vld [vmem:[%s6683_s3 + $0x2d8] sm:$0xff]  }
 0x18d   : > { %4719 = vmatprep.subr.bf16.mxu1 %v5516_v34  ;;  %4779 = vmatprep.subr.bf16.mxu0 %v5516_v34 }
 0x190   : > { %4720 = vmatpush3.bf16.msra.mxu1 %v5288_v40  ;;  %4780 = vmatpush3.bf16.msra.mxu0 %v5289_v41  ;;  %v5339_v40 = vld [vmem:[%s6683_s3 + $0x398] sm:$0xff]   ;;  %v5340_v41 = vld [vmem:[%s6683_s3 + $0x2e0] sm:$0xff]  }
 0x191   : > { %4721 = vmatprep.subr.bf16.mxu1 %v5516_v34  ;;  %4781 = vmatprep.subr.bf16.mxu0 %v5516_v34 }
 0x194   : > { %4722 = vmatpush3.bf16.msra.mxu1 %v5290_v42  ;;  %4782 = vmatpush3.bf16.msra.mxu0 %v5291_v43  ;;  %v5341_v42 = vld [vmem:[%s6683_s3 + $0x3a0] sm:$0xff]   ;;  %v5342_v43 = vld [vmem:[%s6683_s3 + $0x2e8] sm:$0xff]  }
 0x195   : > { %4723 = vmatprep.subr.bf16.mxu1 %v5516_v34  ;;  %4783 = vmatprep.subr.bf16.mxu0 %v5516_v34 }
 0x198   : > { %4724 = vmatpush3.bf16.msra.mxu1 %v5292_v44  ;;  %4784 = vmatpush3.bf16.msra.mxu0 %v5293_v45  ;;  %v5343_v44 = vld [vmem:[%s6683_s3 + $0x3a8] sm:$0xff]   ;;  %v5344_v45 = vld [vmem:[%s6683_s3 + $0x2f0] sm:$0xff]  }
 0x199   : > { %4725 = vmatprep.subr.bf16.mxu1 %v5516_v34  ;;  %4785 = vmatprep.subr.bf16.mxu0 %v5516_v34 }
 0x19c   : > { %4726 = vmatpush3.bf16.msra.mxu1 %v5294_v46  ;;  %4786 = vmatpush3.bf16.msra.mxu0 %v5295_v47  ;;  %v5345_v46 = vld [vmem:[%s6683_s3 + $0x3b0] sm:$0xff]   ;;  %v5346_v47 = vld [vmem:[%s6683_s3 + $0x2f8] sm:$0xff]  }
 0x19d   : > { %4727 = vmatprep.subr.bf16.mxu1 %v5516_v34  ;;  %4787 = vmatprep.subr.bf16.mxu0 %v5516_v34 }
 0x1a0   : > { %4728 = vmatpush3.bf16.msra.mxu1 %v5296_v48  ;;  %4788 = vmatpush3.bf16.msra.mxu0 %v5297_v49  ;;  %v5347_v48 = vld [vmem:[%s6683_s3 + $0x3b8] sm:$0xff]   ;;  %v1868_v49 = vld [vmem:[#allocation2 + $0xb] sm:$0x1] }
 0x1a1   : > { %4729 = vmatprep.subr.bf16.mxu1 %v5516_v34  ;;  %4789 = vmatprep.subr.bf16.mxu0 %v5516_v34  ;;  %v1869_v53 = vpack.c.bf16 %v1868_v49, %v1868_v49 }
 0x1a4   : > { %4730 = vmatpush3.bf16.msra.mxu1 %v5298_v50  ;;  %4790 = vmatpush3.bf16.msra.mxu0 %v5299_v51  ;;  %v2192_v50 = vld [vmem:[#allocation2 + $0xe] sm:$0x1]  ;;  %v5348_v51 = vld [vmem:[%s6683_s3 + $0x340] sm:$0xff]  }
 0x1a5   : > { %4755 = vmatprep.subr.bf16.mxu1 %v5516_v34  ;;  %4815 = vmatprep.subr.bf16.mxu0 %v5516_v34 }
 0x1a7   : > { %4732 = vmatmul.mubr.bf16.vlgmr.msra.gmra.mrb[12].mxu1 %v1221_v56  ;;  %4792 = vmatmul.mubr.bf16.vlgmr.msra.gmra.mrb[44].mxu0 %v1545_v57  ;;  %v5351_v56 = vld [vmem:[%s6683_s3 + $0x408] sm:$0xff]   ;;  %v5352_v57 = vld [vmem:[%s6683_s3 + $0x350] sm:$0xff]  }
 0x1a8   : > { %4756 = vmatpush3.bf16.msra.mxu1 %v5300_v54  ;;  %4816 = vmatpush3.bf16.msra.mxu0 %v5301_v55  ;;  %v2193_v54 = vpack.c.bf16 %v2192_v50, %v2192_v50  ;;  %v5350_v55 = vld [vmem:[%s6683_s3 + $0x348] sm:$0xff]  }
 0x1a9   : > { %4757 = vmatprep.subr.bf16.mxu1 %v5516_v34  ;;  %4817 = vmatprep.subr.bf16.mxu0 %v5516_v34  ;;  %v5382_v50 = vld [vmem:[%s6683_s3 + $0x448] sm:$0xff]  }
 0x1aa   : > { %4771 = vmatprep.mubr.msk.bf16.mxu1 %vm5517_vm0, %v5516_v34  ;;  %4831 = vmatprep.mubr.msk.bf16.mxu0 %vm5517_vm0, %v5516_v34 }
 0x1ac   : > { %4758 = vmatpush3.bf16.msra.mxu1 %v5302_v58  ;;  %4818 = vmatpush3.bf16.msra.mxu0 %v5303_v59  ;;  %v5353_v58 = vld [vmem:[%s6683_s3 + $0x410] sm:$0xff]   ;;  %v5354_v59 = vld [vmem:[%s6683_s3 + $0x358] sm:$0xff]  }
 0x1ad   : > { %4759 = vmatprep.subr.bf16.mxu1 %v5516_v34  ;;  %4819 = vmatprep.subr.bf16.mxu0 %v5516_v34 }
 0x1b0   : > { %4760 = vmatpush3.bf16.msra.mxu1 %v5304_v60  ;;  %4820 = vmatpush3.bf16.msra.mxu0 %v5305_v61  ;;  %v5355_v60 = vld [vmem:[%s6683_s3 + $0x418] sm:$0xff]   ;;  %v5356_v61 = vld [vmem:[%s6683_s3 + $0x360] sm:$0xff]  }
 0x1b1   : > { %4761 = vmatprep.subr.bf16.mxu1 %v5516_v34  ;;  %4821 = vmatprep.subr.bf16.mxu0 %v5516_v34 }
 0x1b4   : > { %4762 = vmatpush3.bf16.msra.mxu1 %v5306_v62  ;;  %4822 = vmatpush3.bf16.msra.mxu0 %v5307_v63  ;;  %v5357_v62 = vld [vmem:[%s6683_s3 + $0x420] sm:$0xff]   ;;  %v5358_v63 = vld [vmem:[%s6683_s3 + $0x368] sm:$0xff]  }
 0x1b5   : > { %4763 = vmatprep.subr.bf16.mxu1 %v5516_v34  ;;  %4823 = vmatprep.subr.bf16.mxu0 %v5516_v34 }
 0x1b8   : > { %4764 = vmatpush3.bf16.msra.mxu1 %v5308_v0  ;;  %4824 = vmatpush3.bf16.msra.mxu0 %v5309_v1  ;;  %v5359_v0 = vld [vmem:[%s6683_s3 + $0x428] sm:$0xff]  }
 0x1b9   : > { %4765 = vmatprep.subr.bf16.mxu1 %v5516_v34  ;;  %4825 = vmatprep.subr.bf16.mxu0 %v5516_v34 }
 0x1bc   : > { %4766 = vmatpush3.bf16.msra.mxu1 %v5310_v2  ;;  %4826 = vmatpush3.bf16.msra.mxu0 %v5311_v3 }
 0x1bd   : > { %4767 = vmatprep.subr.bf16.mxu1 %v5516_v34  ;;  %4827 = vmatprep.subr.bf16.mxu0 %v5516_v34 }
 0x1c0   : > { %4768 = vmatpush3.bf16.msra.mxu1 %v5312_v4  ;;  %4828 = vmatpush3.bf16.msra.mxu0 %v5313_v5 }
 0x1c1   : > { %4769 = vmatprep.subr.bf16.mxu1 %v5516_v34  ;;  %4829 = vmatprep.subr.bf16.mxu0 %v5516_v34 }
 0x1c4   : > { %4770 = vmatpush3.bf16.msra.mxu1 %v5314_v6  ;;  %4830 = vmatpush3.bf16.msra.mxu0 %v5315_v7  ;;  %v5360_v7 = vld [vmem:[%s6683_s3 + $0x370] sm:$0xff]  }
 0x1c5   : > { %4795 = vmatprep.subr.bf16.mxu1 %v5516_v34  ;;  %4855 = vmatprep.subr.bf16.mxu0 %v5516_v34 }
 0x1c7   : > { %4772 = vmatmul.mubr.bf16.vlgmr.msra.gmra.mrb[16].mxu1 %v1437_v12  ;;  %4832 = vmatmul.mubr.bf16.vlgmr.msra.gmra.mrb[48].mxu0 %v1761_v13  ;;  %v5363_v12 = vld [vmem:[%s6683_s3 + $0x438] sm:$0xff]   ;;  %v2084_v13 = vld [vmem:[#allocation2 + $0xd] sm:$0x1] }
 0x1c8   : > { %4796 = vmatpush3.bf16.msra.mxu1 %v5316_v10  ;;  %4856 = vmatpush3.bf16.msra.mxu0 %v5317_v11  ;;  %v5362_v11 = vld [vmem:[%s6683_s3 + $0x378] sm:$0xff]  }
 0x1c9   : > { %4797 = vmatprep.subr.bf16.mxu1 %v5516_v34  ;;  %4857 = vmatprep.subr.bf16.mxu0 %v5516_v34 }
 0x1ca   : > { %4811 = vmatprep.mubr.msk.bf16.mxu1 %vm5517_vm0, %v5516_v34  ;;  %4871 = vmatprep.mubr.msk.bf16.mxu0 %vm5517_vm0, %v5516_v34 }
 0x1cc   : > { %4798 = vmatpush3.bf16.msra.mxu1 %v5318_v14  ;;  %4858 = vmatpush3.bf16.msra.mxu0 %v5319_v15  ;;  %v2408_v14 = vld [vmem:[#allocation2 + $0x10] sm:$0x1]  ;;  %v5364_v15 = vld [vmem:[%s6683_s3 + $0x3c0] sm:$0xff]  }
 0x1cd   : > { %4799 = vmatprep.subr.bf16.mxu1 %v5516_v34  ;;  %4859 = vmatprep.subr.bf16.mxu0 %v5516_v34 }
 0x1d0   : > { %4800 = vmatpush3.bf16.msra.mxu1 %v5320_v16  ;;  %4860 = vmatpush3.bf16.msra.mxu0 %v5321_v17  ;;  %v5365_v16 = vld [vmem:[%s6683_s3 + $0x480] sm:$0xff]   ;;  %v2085_v17 = vpack.c.bf16 %v2084_v13, %v2084_v13 }
 0x1d1   : > { %4801 = vmatprep.subr.bf16.mxu1 %v5516_v34  ;;  %4861 = vmatprep.subr.bf16.mxu0 %v5516_v34  ;;  %v5397_v13 = vld [vmem:[%s6683_s3 + $0x580] sm:$0xff]  }
 0x1d4   : > { %4802 = vmatpush3.bf16.msra.mxu1 %v5322_v18  ;;  %4862 = vmatpush3.bf16.msra.mxu0 %v5323_v19  ;;  %v2409_v18 = vpack.c.bf16 %v2408_v14, %v2408_v14  ;;  %v5366_v19 = vld [vmem:[%s6683_s3 + $0x3c8] sm:$0xff]  }
 0x1d5   : > { %4803 = vmatprep.subr.bf16.mxu1 %v5516_v34  ;;  %4863 = vmatprep.subr.bf16.mxu0 %v5516_v34 }
 0x1d8   : > { %4804 = vmatpush3.bf16.msra.mxu1 %v5324_v20  ;;  %4864 = vmatpush3.bf16.msra.mxu0 %v5325_v21  ;;  %v5367_v20 = vld [vmem:[%s6683_s3 + $0x488] sm:$0xff]   ;;  %v5368_v21 = vld [vmem:[%s6683_s3 + $0x3d0] sm:$0xff]  }
 0x1d9   : > { %4805 = vmatprep.subr.bf16.mxu1 %v5516_v34  ;;  %4865 = vmatprep.subr.bf16.mxu0 %v5516_v34 }
 0x1dc   : > { %4806 = vmatpush3.bf16.msra.mxu1 %v5326_v22  ;;  %4866 = vmatpush3.bf16.msra.mxu0 %v5327_v23  ;;  %v5369_v22 = vld [vmem:[%s6683_s3 + $0x490] sm:$0xff]   ;;  %v5370_v23 = vld [vmem:[%s6683_s3 + $0x3d8] sm:$0xff]  }
 0x1dd   : > { %4807 = vmatprep.subr.bf16.mxu1 %v5516_v34  ;;  %4867 = vmatprep.subr.bf16.mxu0 %v5516_v34 }
 0x1e0   : > { %4808 = vmatpush3.bf16.msra.mxu1 %v5328_v24  ;;  %4868 = vmatpush3.bf16.msra.mxu0 %v5329_v25  ;;  %v5371_v24 = vld [vmem:[%s6683_s3 + $0x498] sm:$0xff]   ;;  %v5372_v25 = vld [vmem:[%s6683_s3 + $0x3e0] sm:$0xff]  }
 0x1e1   : > { %4809 = vmatprep.subr.bf16.mxu1 %v5516_v34  ;;  %4869 = vmatprep.subr.bf16.mxu0 %v5516_v34 }
 0x1e4   : > { %4810 = vmatpush3.bf16.msra.mxu1 %v5330_v26  ;;  %4870 = vmatpush3.bf16.msra.mxu0 %v5331_v27  ;;  %v5373_v26 = vld [vmem:[%s6683_s3 + $0x4a0] sm:$0xff]   ;;  %v5374_v27 = vld [vmem:[%s6683_s3 + $0x3e8] sm:$0xff]  }
 0x1e5   : > { %4835 = vmatprep.subr.bf16.mxu1 %v5516_v34  ;;  %4895 = vmatprep.subr.bf16.mxu0 %v5516_v34 }
 0x1e7   : > { %4812 = vmatmul.mubr.bf16.vlgmr.msra.gmra.mrb[20].mxu1 %v1653_v32  ;;  %4872 = vmatmul.mubr.bf16.vlgmr.msra.gmra.mrb[52].mxu0 %v1977_v33 }
 0x1e8   : > { %4836 = vmatpush3.bf16.msra.mxu1 %v5332_v30  ;;  %4896 = vmatpush3.bf16.msra.mxu0 %v5333_v31 }
 0x1e9   : > { %4837 = vmatprep.subr.bf16.mxu1 %v5516_v34  ;;  %4897 = vmatprep.subr.bf16.mxu0 %v5516_v34 }
 0x1ea   : > { %4851 = vmatprep.mubr.msk.bf16.mxu1 %vm5517_vm0, %v5516_v34  ;;  %4911 = vmatprep.mubr.msk.bf16.mxu0 %vm5517_vm0, %v5516_v34 }
 0x1ec   : > { %4838 = vmatpush3.bf16.msra.mxu1 %v5334_v35  ;;  %4898 = vmatpush3.bf16.msra.mxu0 %v5335_v36 }
 0x1ed   : > { %4839 = vmatprep.subr.bf16.mxu1 %v5516_v34  ;;  %4899 = vmatprep.subr.bf16.mxu0 %v5516_v34 }
 0x1f0   : > { %4840 = vmatpush3.bf16.msra.mxu1 %v5336_v37  ;;  %4900 = vmatpush3.bf16.msra.mxu0 %v5337_v38  ;;  %v5376_v37 = vld [vmem:[%s6683_s3 + $0x3f0] sm:$0xff]  }
 0x1f1   : > { %4841 = vmatprep.subr.bf16.mxu1 %v5516_v34  ;;  %4901 = vmatprep.subr.bf16.mxu0 %v5516_v34  ;;  %v5377_v38 = vld [vmem:[%s6683_s3 + $0x4b0] sm:$0xff]  }
 0x1f4   : > { %4842 = vmatpush3.bf16.msra.mxu1 %v5338_v39  ;;  %4902 = vmatpush3.bf16.msra.mxu0 %v5339_v40 }
 0x1f5   : > { %4843 = vmatprep.subr.bf16.mxu1 %v5516_v34  ;;  %4903 = vmatprep.subr.bf16.mxu0 %v5516_v34 }
 0x1f8   : > { %4844 = vmatpush3.bf16.msra.mxu1 %v5340_v41  ;;  %4904 = vmatpush3.bf16.msra.mxu0 %v5341_v42  ;;  %v5378_v42 = vld [vmem:[%s6683_s3 + $0x3f8] sm:$0xff]  }
 0x1f9   : > { %4845 = vmatprep.subr.bf16.mxu1 %v5516_v34  ;;  %4905 = vmatprep.subr.bf16.mxu0 %v5516_v34 }
 0x1fc   : > { %4846 = vmatpush3.bf16.msra.mxu1 %v5342_v43  ;;  %4906 = vmatpush3.bf16.msra.mxu0 %v5343_v44  ;;  %v5379_v43 = vld [vmem:[%s6683_s3 + $0x4b8] sm:$0xff]   ;;  %v2300_v44 = vld [vmem:[#allocation2 + $0xf] sm:$0x1] }
 0x1fd   : > { %4847 = vmatprep.subr.bf16.mxu1 %v5516_v34  ;;  %4907 = vmatprep.subr.bf16.mxu0 %v5516_v34 }
 0x200   : > { %4848 = vmatpush3.bf16.msra.mxu1 %v5344_v45  ;;  %4908 = vmatpush3.bf16.msra.mxu0 %v5345_v46  ;;  %v2624_v45 = vld [vmem:[#allocation2 + $0x12] sm:$0x1]  ;;  %v5380_v46 = vld [vmem:[%s6683_s3 + $0x440] sm:$0xff]  }
 0x201   : > { %4849 = vmatprep.subr.bf16.mxu1 %v5516_v34  ;;  %4909 = vmatprep.subr.bf16.mxu0 %v5516_v34  ;;  %v2625_v49 = vpack.c.bf16 %v2624_v45, %v2624_v45 }
 0x204   : > { %4850 = vmatpush3.bf16.msra.mxu1 %v5346_v47  ;;  %4910 = vmatpush3.bf16.msra.mxu0 %v5347_v48  ;;  %v5381_v47 = vld [vmem:[%s6683_s3 + $0x500] sm:$0xff]   ;;  %v2301_v48 = vpack.c.bf16 %v2300_v44, %v2300_v44 }
 0x205   : > { %4875 = vmatprep.subr.bf16.mxu1 %v5516_v34  ;;  %4935 = vmatprep.subr.bf16.mxu0 %v5516_v34  ;;  %v5413_v44 = vld [vmem:[%s6683_s3 + $0x600] sm:$0xff]  }
 0x207   : > { %4852 = vmatmul.mubr.bf16.vlgmr.msra.gmra.mrb[24].mxu1 %v1869_v53  ;;  %4912 = vmatmul.mubr.bf16.vlgmr.msra.gmra.mrb[56].mxu0 %v2193_v54  ;;  %v5385_v53 = vld [vmem:[%s6683_s3 + $0x510] sm:$0xff]   ;;  %v5386_v54 = vld [vmem:[%s6683_s3 + $0x458] sm:$0xff]  }
 0x208   : > { %4876 = vmatpush3.bf16.msra.mxu1 %v5348_v51  ;;  %4936 = vmatpush3.bf16.msra.mxu0 %v5349_v52  ;;  %v5383_v51 = vld [vmem:[%s6683_s3 + $0x508] sm:$0xff]   ;;  %v5384_v52 = vld [vmem:[%s6683_s3 + $0x450] sm:$0xff]  }
 0x209   : > { %4877 = vmatprep.subr.bf16.mxu1 %v5516_v34  ;;  %4937 = vmatprep.subr.bf16.mxu0 %v5516_v34 }
 0x20a   : > { %4891 = vmatprep.mubr.msk.bf16.mxu1 %vm5517_vm0, %v5516_v34  ;;  %4951 = vmatprep.mubr.msk.bf16.mxu0 %vm5517_vm0, %v5516_v34 }
 0x20c   : > { %4878 = vmatpush3.bf16.msra.mxu1 %v5350_v55  ;;  %4938 = vmatpush3.bf16.msra.mxu0 %v5351_v56  ;;  %v5387_v55 = vld [vmem:[%s6683_s3 + $0x518] sm:$0xff]   ;;  %v5388_v56 = vld [vmem:[%s6683_s3 + $0x460] sm:$0xff]  }
 0x20d   : > { %4879 = vmatprep.subr.bf16.mxu1 %v5516_v34  ;;  %4939 = vmatprep.subr.bf16.mxu0 %v5516_v34 }
 0x210   : > { %4880 = vmatpush3.bf16.msra.mxu1 %v5352_v57  ;;  %4940 = vmatpush3.bf16.msra.mxu0 %v5353_v58  ;;  %v5389_v57 = vld [vmem:[%s6683_s3 + $0x520] sm:$0xff]   ;;  %v5390_v58 = vld [vmem:[%s6683_s3 + $0x468] sm:$0xff]  }
 0x211   : > { %4881 = vmatprep.subr.bf16.mxu1 %v5516_v34  ;;  %4941 = vmatprep.subr.bf16.mxu0 %v5516_v34 }
 0x214   : > { %4882 = vmatpush3.bf16.msra.mxu1 %v5354_v59  ;;  %4942 = vmatpush3.bf16.msra.mxu0 %v5355_v60  ;;  %v5391_v59 = vld [vmem:[%s6683_s3 + $0x528] sm:$0xff]  }
 0x215   : > { %4883 = vmatprep.subr.bf16.mxu1 %v5516_v34  ;;  %4943 = vmatprep.subr.bf16.mxu0 %v5516_v34 }
 0x218   : > { %4884 = vmatpush3.bf16.msra.mxu1 %v5356_v61  ;;  %4944 = vmatpush3.bf16.msra.mxu0 %v5357_v62 }
 0x219   : > { %4885 = vmatprep.subr.bf16.mxu1 %v5516_v34  ;;  %4945 = vmatprep.subr.bf16.mxu0 %v5516_v34 }
 0x21a   : > { %v6219_v1 = vpop.f32.mrb[0].mxu1  ;;  %v6221_v2 = vpop.f32.mrb[32].mxu0 }
 0x21b   : > { %v4633_v3 = vpop.f32.mrb[1].mxu1  ;;  %v4673_v4 = vpop.f32.mrb[33].mxu0 }
 0x21c   : > { %4886 = vmatpush3.bf16.msra.mxu1 %v5358_v63  ;;  %4946 = vmatpush3.bf16.msra.mxu0 %v5359_v0  ;;  %v805_v5 = vpop.f32.mrb[2].mxu1  ;;  %v1000_v6 = vpop.f32.mrb[34].mxu0  ;;  %v5392_v3 = vld [vmem:[%s6683_s3 + $0x470] sm:$0xff]  }
 0x21d   : > { %v4634_v9 = vpop.f32.mrb[3].mxu1  ;;  %v4674_v10 = vpop.f32.mrb[35].mxu0  ;;  %4887 = vmatprep.subr.bf16.mxu1 %v5516_v34  ;;  %4947 = vmatprep.subr.bf16.mxu0 %v5516_v34  ;;  %v5393_v4 = vld [vmem:[%s6683_s3 + $0x530] sm:$0xff]  }
 0x21e   : > { %v5395_v9 = vld [vmem:[%s6683_s3 + $0x538] sm:$0xff]   ;;  %v2516_v10 = vld [vmem:[#allocation2 + $0x11] sm:$0x1] }
 0x21f   : > { %v2517_v14 = vpack.c.bf16 %v2516_v10, %v2516_v10 }
 0x220   : > { %4888 = vmatpush3.bf16.msra.mxu1 %v5360_v7  ;;  %4948 = vmatpush3.bf16.msra.mxu0 %v5361_v8  ;;  %v5394_v8 = vld [vmem:[%s6683_s3 + $0x478] sm:$0xff]  }
 0x221   : > { %4889 = vmatprep.subr.bf16.mxu1 %v5516_v34  ;;  %4949 = vmatprep.subr.bf16.mxu0 %v5516_v34 }
 0x224   : > { %4890 = vmatpush3.bf16.msra.mxu1 %v5362_v11  ;;  %4950 = vmatpush3.bf16.msra.mxu0 %v5363_v12  ;;  %v2840_v11 = vld [vmem:[#allocation2 + $0x14] sm:$0x1]  ;;  %v5396_v12 = vld [vmem:[%s6683_s3 + $0x4c0] sm:$0xff]  }
 0x225   : > { %4915 = vmatprep.subr.bf16.mxu1 %v5516_v34  ;;  %4975 = vmatprep.subr.bf16.mxu0 %v5516_v34 }
 0x227   : > { %4892 = vmatmul.mubr.bf16.vlgmr.msra.gmra.mrb[28].mxu1 %v2085_v17  ;;  %4952 = vmatmul.mubr.bf16.vlgmr.msra.gmra.mrb[60].mxu0 %v2409_v18  ;;  %v5399_v17 = vld [vmem:[%s6683_s3 + $0x588] sm:$0xff]   ;;  %v5400_v18 = vld [vmem:[%s6683_s3 + $0x4d0] sm:$0xff]  }
 0x228   : > { %4916 = vmatpush3.bf16.msra.mxu1 %v5364_v15  ;;  %4976 = vmatpush3.bf16.msra.mxu0 %v5365_v16  ;;  %v2841_v15 = vpack.c.bf16 %v2840_v11, %v2840_v11  ;;  %v5398_v16 = vld [vmem:[%s6683_s3 + $0x4c8] sm:$0xff]  }
 0x229   : > { %4917 = vmatprep.subr.bf16.mxu1 %v5516_v34  ;;  %4977 = vmatprep.subr.bf16.mxu0 %v5516_v34 }
 0x22a   : > { %4931 = vmatprep.mubr.msk.bf16.mxu1 %vm5517_vm0, %v5516_v34  ;;  %4991 = vmatprep.mubr.msk.bf16.mxu0 %vm5517_vm0, %v5516_v34 }
 0x22c   : > { %4918 = vmatpush3.bf16.msra.mxu1 %v5366_v19  ;;  %4978 = vmatpush3.bf16.msra.mxu0 %v5367_v20  ;;  %v5401_v19 = vld [vmem:[%s6683_s3 + $0x590] sm:$0xff]   ;;  %v5402_v20 = vld [vmem:[%s6683_s3 + $0x4d8] sm:$0xff]  }
 0x22d   : > { %4919 = vmatprep.subr.bf16.mxu1 %v5516_v34  ;;  %4979 = vmatprep.subr.bf16.mxu0 %v5516_v34 }
 0x230   : > { %4920 = vmatpush3.bf16.msra.mxu1 %v5368_v21  ;;  %4980 = vmatpush3.bf16.msra.mxu0 %v5369_v22  ;;  %v5403_v21 = vld [vmem:[%s6683_s3 + $0x598] sm:$0xff]   ;;  %v5404_v22 = vld [vmem:[%s6683_s3 + $0x4e0] sm:$0xff]  }
 0x231   : > { %4921 = vmatprep.subr.bf16.mxu1 %v5516_v34  ;;  %4981 = vmatprep.subr.bf16.mxu0 %v5516_v34 }
 0x234   : > { %4922 = vmatpush3.bf16.msra.mxu1 %v5370_v23  ;;  %4982 = vmatpush3.bf16.msra.mxu0 %v5371_v24  ;;  %v5405_v23 = vld [vmem:[%s6683_s3 + $0x5a0] sm:$0xff]   ;;  %v5406_v24 = vld [vmem:[%s6683_s3 + $0x4e8] sm:$0xff]  }
 0x235   : > { %4923 = vmatprep.subr.bf16.mxu1 %v5516_v34  ;;  %4983 = vmatprep.subr.bf16.mxu0 %v5516_v34 }
 0x238   : > { %4924 = vmatpush3.bf16.msra.mxu1 %v5372_v25  ;;  %4984 = vmatpush3.bf16.msra.mxu0 %v5373_v26  ;;  %v5407_v25 = vld [vmem:[%s6683_s3 + $0x5a8] sm:$0xff]  }
 0x239   : > { %4925 = vmatprep.subr.bf16.mxu1 %v5516_v34  ;;  %4985 = vmatprep.subr.bf16.mxu0 %v5516_v34 }
 0x23a   : > { %v890_v29 = vpop.f32.mrb[4].mxu1  ;;  %v6291_v30 = vpop.f32.mrb[36].mxu0 }
 0x23b   : > { %v891_v31 = vadd.f32 %v890_v29, %v6219_v1  ;;  %v4653_v32 = vpop.f32.mrb[5].mxu1  ;;  %v4713_v33 = vpop.f32.mrb[37].mxu0 }
 0x23c   : > { %v893_v35 = vpop.f32.mrb[6].mxu1  ;;  %v1216_v36 = vpop.f32.mrb[38].mxu0  ;;  %4926 = vmatpush3.bf16.msra.mxu1 %v5374_v27  ;;  %4986 = vmatpush3.bf16.msra.mxu0 %v5375_v28  ;;  %v5408_v33 = vld [vmem:[%s6683_s3 + $0x4f0] sm:$0xff]  }
 0x23d   : > { %v4654_v39 = vpop.f32.mrb[7].mxu1  ;;  %v4714_v40 = vpop.f32.mrb[39].mxu0  ;;  %4927 = vmatprep.subr.bf16.mxu1 %v5516_v34  ;;  %4987 = vmatprep.subr.bf16.mxu0 %v5516_v34  ;;  %v1003_v41 = vadd.f32 %v6221_v2, %v891_v31  ;;  %v5409_v35 = vld [vmem:[%s6683_s3 + $0x5b0] sm:$0xff]  }
 0x23e   : > { %v5410_v39 = vld [vmem:[%s6683_s3 + $0x4f8] sm:$0xff]  }
 0x23f   : > { %v5411_v40 = vld [vmem:[%s6683_s3 + $0x5b8] sm:$0xff]  }
 0x240   : > { %4928 = vmatpush3.bf16.msra.mxu1 %v5376_v37  ;;  %4988 = vmatpush3.bf16.msra.mxu0 %v5377_v38 }
 0x241   : > { %4929 = vmatprep.subr.bf16.mxu1 %v5516_v34  ;;  %4989 = vmatprep.subr.bf16.mxu0 %v5516_v34 }
 0x244   : > { %4930 = vmatpush3.bf16.msra.mxu1 %v5378_v42  ;;  %4990 = vmatpush3.bf16.msra.mxu0 %v5379_v43  ;;  %v3056_v42 = vld [vmem:[#allocation2 + $0x16] sm:$0x1]  ;;  %v5412_v43 = vld [vmem:[%s6683_s3 + $0x540] sm:$0xff]  }
 0x245   : > { %4955 = vmatprep.subr.bf16.mxu1 %v5516_v34  ;;  %5015 = vmatprep.subr.bf16.mxu0 %v5516_v34 }
 0x247   : > { %4932 = vmatmul.mubr.bf16.vlgmr.msra.gmra.mrb[32].mxu1 %v2301_v48  ;;  %4992 = vmatmul.mubr.bf16.vlgmr.msra.gmra.mrb[64].mxu0 %v2625_v49  ;;  %v5415_v48 = vld [vmem:[%s6683_s3 + $0x608] sm:$0xff]   ;;  %v5416_v49 = vld [vmem:[%s6683_s3 + $0x550] sm:$0xff]  }
 0x248   : > { %4956 = vmatpush3.bf16.msra.mxu1 %v5380_v46  ;;  %5016 = vmatpush3.bf16.msra.mxu0 %v5381_v47  ;;  %v3057_v46 = vpack.c.bf16 %v3056_v42, %v3056_v42  ;;  %v5414_v47 = vld [vmem:[%s6683_s3 + $0x548] sm:$0xff]  }
 0x249   : > { %4957 = vmatprep.subr.bf16.mxu1 %v5516_v34  ;;  %5017 = vmatprep.subr.bf16.mxu0 %v5516_v34 }
 0x24a   : > { %4971 = vmatprep.mubr.msk.bf16.mxu1 %vm5517_vm0, %v5516_v34  ;;  %5031 = vmatprep.mubr.msk.bf16.mxu0 %vm5517_vm0, %v5516_v34 }
 0x24c   : > { %4958 = vmatpush3.bf16.msra.mxu1 %v5382_v50  ;;  %5018 = vmatpush3.bf16.msra.mxu0 %v5383_v51  ;;  %v5417_v50 = vld [vmem:[%s6683_s3 + $0x610] sm:$0xff]   ;;  %v5418_v51 = vld [vmem:[%s6683_s3 + $0x558] sm:$0xff]  }
 0x24d   : > { %4959 = vmatprep.subr.bf16.mxu1 %v5516_v34  ;;  %5019 = vmatprep.subr.bf16.mxu0 %v5516_v34 }
 0x250   : > { %4960 = vmatpush3.bf16.msra.mxu1 %v5384_v52  ;;  %5020 = vmatpush3.bf16.msra.mxu0 %v5385_v53  ;;  %v5419_v52 = vld [vmem:[%s6683_s3 + $0x618] sm:$0xff]   ;;  %v5420_v53 = vld [vmem:[%s6683_s3 + $0x560] sm:$0xff]  }
 0x251   : > { %4961 = vmatprep.subr.bf16.mxu1 %v5516_v34  ;;  %5021 = vmatprep.subr.bf16.mxu0 %v5516_v34 }
 0x254   : > { %4962 = vmatpush3.bf16.msra.mxu1 %v5386_v54  ;;  %5022 = vmatpush3.bf16.msra.mxu0 %v5387_v55  ;;  %v5421_v54 = vld [vmem:[%s6683_s3 + $0x620] sm:$0xff]   ;;  %v5422_v55 = vld [vmem:[%s6683_s3 + $0x568] sm:$0xff]  }
 0x255   : > { %4963 = vmatprep.subr.bf16.mxu1 %v5516_v34  ;;  %5023 = vmatprep.subr.bf16.mxu0 %v5516_v34 }
 0x258   : > { %4964 = vmatpush3.bf16.msra.mxu1 %v5388_v56  ;;  %5024 = vmatpush3.bf16.msra.mxu0 %v5389_v57  ;;  %v5423_v56 = vld [vmem:[%s6683_s3 + $0x628] sm:$0xff]  }
 0x259   : > { %4965 = vmatprep.subr.bf16.mxu1 %v5516_v34  ;;  %5025 = vmatprep.subr.bf16.mxu0 %v5516_v34 }
 0x25a   : > { %v1105_v60 = vpop.f32.mrb[8].mxu1  ;;  %v6363_v61 = vpop.f32.mrb[40].mxu0 }
 0x25b   : > { %v1111_v62 = vadd.f32 %v1105_v60, %v1003_v41  ;;  %v4693_v63 = vpop.f32.mrb[9].mxu1  ;;  %v4753_v0 = vpop.f32.mrb[41].mxu0  ;;  %v2732_v41 = vld [vmem:[#allocation2 + $0x13] sm:$0x1] }
 0x25c   : > { %v1108_v1 = vpop.f32.mrb[10].mxu1  ;;  %v1432_v2 = vpop.f32.mrb[42].mxu0  ;;  %4966 = vmatpush3.bf16.msra.mxu1 %v5390_v58  ;;  %5026 = vmatpush3.bf16.msra.mxu0 %v5391_v59  ;;  %v2733_v45 = vpack.c.bf16 %v2732_v41, %v2732_v41  ;;  %v5424_v0 = vld [vmem:[%s6683_s3 + $0x570] sm:$0xff]  }
 0x25d   : > { %v4694_v5 = vpop.f32.mrb[11].mxu1  ;;  %v4754_v6 = vpop.f32.mrb[43].mxu0  ;;  %4967 = vmatprep.subr.bf16.mxu1 %v5516_v34  ;;  %5027 = vmatprep.subr.bf16.mxu0 %v5516_v34  ;;  %v1219_v7 = vadd.f32 %v6291_v30, %v1111_v62  ;;  %v5425_v1 = vld [vmem:[%s6683_s3 + $0x630] sm:$0xff]  }
 0x25e   : > { %v5426_v5 = vld [vmem:[%s6683_s3 + $0x578] sm:$0xff]  }
 0x25f   : > { %v5427_v6 = vld [vmem:[%s6683_s3 + $0x638] sm:$0xff]  }
 0x260   : > { %4968 = vmatpush3.bf16.msra.mxu1 %v5392_v3  ;;  %5028 = vmatpush3.bf16.msra.mxu0 %v5393_v4 }
 0x261   : > { %4969 = vmatprep.subr.bf16.mxu1 %v5516_v34  ;;  %5029 = vmatprep.subr.bf16.mxu0 %v5516_v34 }
 0x264   : > { %4970 = vmatpush3.bf16.msra.mxu1 %v5394_v8  ;;  %5030 = vmatpush3.bf16.msra.mxu0 %v5395_v9  ;;  %v3272_v8 = vld [vmem:[#allocation2 + $0x18] sm:$0x1]  ;;  %v5428_v9 = vld [vmem:[%s6683_s3 + $0x5c0] sm:$0xff]  }
 0x265   : > { %4995 = vmatprep.subr.bf16.mxu1 %v5516_v34  ;;  %5055 = vmatprep.subr.bf16.mxu0 %v5516_v34  ;;  %v3273_v11 = vpack.c.bf16 %v3272_v8, %v3272_v8  ;;  %v5446_v8 = vld [vmem:[%s6687_s7 + $0x10] sm:$0xff]  }
 0x267   : > { %4972 = vmatmul.mubr.bf16.vlgmr.msra.gmra.mrb[36].mxu1 %v2517_v14  ;;  %5032 = vmatmul.mubr.bf16.vlgmr.msra.gmra.mrb[68].mxu0 %v2841_v15  ;;  %v5431_v14 = vld [vmem:[%s6683_s3 + $0x5d8] sm:$0xff]   ;;  %v5432_v15 = vld [vmem:[%s6683_s3 + $0x5e0] sm:$0xff]  }
 0x268   : > { %4996 = vmatpush3.bf16.msra.mxu1 %v5396_v12  ;;  %5056 = vmatpush3.bf16.msra.mxu0 %v5397_v13  ;;  %v5429_v12 = vld [vmem:[%s6683_s3 + $0x5c8] sm:$0xff]   ;;  %v5430_v13 = vld [vmem:[%s6683_s3 + $0x5d0] sm:$0xff]  }
 0x269   : > { %4997 = vmatprep.subr.bf16.mxu1 %v5516_v34  ;;  %5057 = vmatprep.subr.bf16.mxu0 %v5516_v34 }
 0x26a   : > { %5011 = vmatprep.mubr.msk.bf16.mxu1 %vm5517_vm0, %v5516_v34  ;;  %5071 = vmatprep.mubr.msk.bf16.mxu0 %vm5517_vm0, %v5516_v34 }
 0x26c   : > { %4998 = vmatpush3.bf16.msra.mxu1 %v5398_v16  ;;  %5058 = vmatpush3.bf16.msra.mxu0 %v5399_v17  ;;  %v5433_v16 = vld [vmem:[%s6683_s3 + $0x5e8] sm:$0xff]  }
 0x26d   : > { %4999 = vmatprep.subr.bf16.mxu1 %v5516_v34  ;;  %5059 = vmatprep.subr.bf16.mxu0 %v5516_v34 }
 0x270   : > { %5000 = vmatpush3.bf16.msra.mxu1 %v5400_v18  ;;  %5060 = vmatpush3.bf16.msra.mxu0 %v5401_v19 }
 0x271   : > { %5001 = vmatprep.subr.bf16.mxu1 %v5516_v34  ;;  %5061 = vmatprep.subr.bf16.mxu0 %v5516_v34 }
 0x274   : > { %5002 = vmatpush3.bf16.msra.mxu1 %v5402_v20  ;;  %5062 = vmatpush3.bf16.msra.mxu0 %v5403_v21 }
 0x275   : > { %5003 = vmatprep.subr.bf16.mxu1 %v5516_v34  ;;  %5063 = vmatprep.subr.bf16.mxu0 %v5516_v34 }
 0x278   : > { %5004 = vmatpush3.bf16.msra.mxu1 %v5404_v22  ;;  %5064 = vmatpush3.bf16.msra.mxu0 %v5405_v23 }
 0x279   : > { %5005 = vmatprep.subr.bf16.mxu1 %v5516_v34  ;;  %5065 = vmatprep.subr.bf16.mxu0 %v5516_v34 }
 0x27a   : > { %v1321_v26 = vpop.f32.mrb[12].mxu1  ;;  %v6434_v27 = vpop.f32.mrb[44].mxu0 }
 0x27b   : > { %v1327_v28 = vadd.f32 %v1321_v26, %v1219_v7  ;;  %v4733_v29 = vpop.f32.mrb[13].mxu1  ;;  %v4793_v30 = vpop.f32.mrb[45].mxu0  ;;  %v2948_v7 = vld [vmem:[#allocation2 + $0x15] sm:$0x1] }
 0x27c   : > { %v1324_v31 = vpop.f32.mrb[14].mxu1  ;;  %v1648_v32 = vpop.f32.mrb[46].mxu0  ;;  %5006 = vmatpush3.bf16.msra.mxu1 %v5406_v24  ;;  %5066 = vmatpush3.bf16.msra.mxu0 %v5407_v25  ;;  %v2949_v10 = vpack.c.bf16 %v2948_v7, %v2948_v7  ;;  %v5434_v24 = vld [vmem:[%s6683_s3 + $0x5f0] sm:$0xff]   ;;  %v5445_v7 = vld [vmem:[%s6687_s7 + $0x8] sm:$0xff]  }
 0x27d   : > { %v4734_v36 = vpop.f32.mrb[15].mxu1  ;;  %v4794_v37 = vpop.f32.mrb[47].mxu0  ;;  %5007 = vmatprep.subr.bf16.mxu1 %v5516_v34  ;;  %5067 = vmatprep.subr.bf16.mxu0 %v5516_v34  ;;  %v1435_v38 = vadd.f32 %v6363_v61, %v1327_v28  ;;  %v5435_v28 = vld [vmem:[%s6683_s3 + $0x5f8] sm:$0xff]   ;;  %v3164_v29 = vld [vmem:[#allocation2 + $0x17] sm:$0x1] }
 0x27e   : > { %v3165_v30 = vpack.c.bf16 %v3164_v29, %v3164_v29 }
 0x280   : > { %5008 = vmatpush3.bf16.msra.mxu1 %v5408_v33  ;;  %5068 = vmatpush3.bf16.msra.mxu0 %v5409_v35 }
 0x281   : > { %5009 = vmatprep.subr.bf16.mxu1 %v5516_v34  ;;  %5069 = vmatprep.subr.bf16.mxu0 %v5516_v34 }
 0x284   : > { %5010 = vmatpush3.bf16.msra.mxu1 %v5410_v39  ;;  %5070 = vmatpush3.bf16.msra.mxu0 %v5411_v40 }
 0x285   : > { %5035 = vmatprep.subr.bf16.mxu1 %v5516_v34  ;;  %5095 = vmatprep.subr.bf16.mxu0 %v5516_v34 }
 0x287   : > { %5012 = vmatmul.mubr.bf16.vlgmr.msra.gmra.mrb[40].mxu1 %v2733_v45  ;;  %5072 = vmatmul.mubr.bf16.vlgmr.msra.gmra.mrb[72].mxu0 %v3057_v46 }
 0x288   : > { %5036 = vmatpush3.bf16.msra.mxu1 %v5412_v43  ;;  %5096 = vmatpush3.bf16.msra.mxu0 %v5413_v44 }
 0x289   : > { %5037 = vmatprep.subr.bf16.mxu1 %v5516_v34  ;;  %5097 = vmatprep.subr.bf16.mxu0 %v5516_v34 }
 0x28a   : > { %5051 = vmatprep.mubr.msk.bf16.mxu1 %vm5517_vm0, %v5516_v34  ;;  %5111 = vmatprep.mubr.msk.bf16.mxu0 %vm5517_vm0, %v5516_v34 }
 0x28c   : > { %5038 = vmatpush3.bf16.msra.mxu1 %v5414_v47  ;;  %5098 = vmatpush3.bf16.msra.mxu0 %v5415_v48 }
 0x28d   : > { %5039 = vmatprep.subr.bf16.mxu1 %v5516_v34  ;;  %5099 = vmatprep.subr.bf16.mxu0 %v5516_v34 }
 0x290   : > { %5040 = vmatpush3.bf16.msra.mxu1 %v5416_v49  ;;  %5100 = vmatpush3.bf16.msra.mxu0 %v5417_v50 }
 0x291   : > { %5041 = vmatprep.subr.bf16.mxu1 %v5516_v34  ;;  %5101 = vmatprep.subr.bf16.mxu0 %v5516_v34 }
 0x294   : > { %5042 = vmatpush3.bf16.msra.mxu1 %v5418_v51  ;;  %5102 = vmatpush3.bf16.msra.mxu0 %v5419_v52  ;;  %v5436_v52 = vld [vmem:[%s6685_s5] sm:$0xff]  }
 0x295   : > { %5043 = vmatprep.subr.bf16.mxu1 %v5516_v34  ;;  %5103 = vmatprep.subr.bf16.mxu0 %v5516_v34 }
 0x298   : > { %5044 = vmatpush3.bf16.msra.mxu1 %v5420_v53  ;;  %5104 = vmatpush3.bf16.msra.mxu0 %v5421_v54  ;;  %v5437_v53 = vld [vmem:[%s6685_s5 + $0x8] sm:$0xff]   ;;  %v5438_v54 = vld [vmem:[%s6685_s5 + $0x10] sm:$0xff]  }
 0x299   : > { %5045 = vmatprep.subr.bf16.mxu1 %v5516_v34  ;;  %5105 = vmatprep.subr.bf16.mxu0 %v5516_v34 }
 0x29a   : > { %v1537_v57 = vpop.f32.mrb[16].mxu1  ;;  %v1861_v58 = vpop.f32.mrb[48].mxu0 }
 0x29b   : > { %v1543_v59 = vadd.f32 %v1537_v57, %v1435_v38  ;;  %v4773_v60 = vpop.f32.mrb[17].mxu1  ;;  %v4833_v61 = vpop.f32.mrb[49].mxu0 }
 0x29c   : > { %v1540_v62 = vpop.f32.mrb[18].mxu1  ;;  %v1864_v63 = vpop.f32.mrb[50].mxu0  ;;  %5046 = vmatpush3.bf16.msra.mxu1 %v5422_v55  ;;  %5106 = vmatpush3.bf16.msra.mxu0 %v5423_v56  ;;  %v5439_v55 = vld [vmem:[%s6685_s5 + $0x18] sm:$0xff]   ;;  %v5440_v56 = vld [vmem:[%s6685_s5 + $0x20] sm:$0xff]  }
 0x29d   : > { %v4774_v2 = vpop.f32.mrb[19].mxu1  ;;  %v4834_v3 = vpop.f32.mrb[51].mxu0  ;;  %5047 = vmatprep.subr.bf16.mxu1 %v5516_v34  ;;  %5107 = vmatprep.subr.bf16.mxu0 %v5516_v34  ;;  %v1651_v4 = vadd.f32 %v6434_v27, %v1543_v59  ;;  %v5441_v62 = vld [vmem:[%s6685_s5 + $0x28] sm:$0xff]  }
 0x2a0   : > { %5048 = vmatpush3.bf16.msra.mxu1 %v5424_v0  ;;  %5108 = vmatpush3.bf16.msra.mxu0 %v5425_v1 }
 0x2a1   : > { %5049 = vmatprep.subr.bf16.mxu1 %v5516_v34  ;;  %5109 = vmatprep.subr.bf16.mxu0 %v5516_v34 }
 0x2a4   : > { %5050 = vmatpush3.bf16.msra.mxu1 %v5426_v5  ;;  %5110 = vmatpush3.bf16.msra.mxu0 %v5427_v6  ;;  %v5443_v5 = vld [vmem:[%s6685_s5 + $0x38] sm:$0xff]   ;;  %v5444_v6 = vld [vmem:[%s6687_s7] sm:$0xff]  }
 0x2a5   : > { %5075 = vmatprep.subr.bf16.mxu1 %v5516_v34  ;;  %5135 = vmatprep.subr.bf16.mxu0 %v5516_v34 }
 0x2a7   : > { %5052 = vmatmul.mubr.bf16.vlgmr.msra.gmra.mrb[44].mxu1 %v2949_v10  ;;  %5112 = vmatmul.mubr.bf16.vlgmr.msra.gmra.mrb[76].mxu0 %v3273_v11  ;;  %v5448_v10 = vld [vmem:[%s6687_s7 + $0x20] sm:$0xff]   ;;  %v5449_v11 = vld [vmem:[%s6687_s7 + $0x28] sm:$0xff]  }
 0x2a8   : > { %5076 = vmatpush3.bf16.msra.mxu1 %v5428_v9  ;;  %5091 = vmatprep.mubr.msk.bf16.mxu1 %vm5517_vm0, %v5516_v34  ;;  %v5447_v9 = vld [vmem:[%s6687_s7 + $0x18] sm:$0xff]  }
 0x2a9   : > { %5077 = vmatprep.subr.bf16.mxu1 %v5516_v34  ;;  %5151 = vmatprep.mubr.msk.bf16.mxu0 %vm5517_vm0, %v5516_v34 }
 0x2aa   : > { %5136 = vmatpush3.bf16.msra.mxu0 %v5444_v6 }
 0x2ab   : > { %5137 = vmatprep.subr.bf16.mxu0 %v5516_v34 }
 0x2ac   : > { %5078 = vmatpush3.bf16.msra.mxu1 %v5429_v12 }
 0x2ad   : > { %5079 = vmatprep.subr.bf16.mxu1 %v5516_v34 }
 0x2ae   : > { %5138 = vmatpush3.bf16.msra.mxu0 %v5445_v7 }
 0x2af   : > { %5139 = vmatprep.subr.bf16.mxu0 %v5516_v34 }
 0x2b0   : > { %5080 = vmatpush3.bf16.msra.mxu1 %v5430_v13 }
 0x2b1   : > { %5081 = vmatprep.subr.bf16.mxu1 %v5516_v34 }
 0x2b2   : > { %5140 = vmatpush3.bf16.msra.mxu0 %v5446_v8 }
 0x2b3   : > { %5141 = vmatprep.subr.bf16.mxu0 %v5516_v34 }
 0x2b4   : > { %5082 = vmatpush3.bf16.msra.mxu1 %v5431_v14 }
 0x2b5   : > { %5083 = vmatprep.subr.bf16.mxu1 %v5516_v34 }
 0x2b6   : > { %5142 = vmatpush3.bf16.msra.mxu0 %v5447_v9 }
 0x2b7   : > { %5143 = vmatprep.subr.bf16.mxu0 %v5516_v34 }
 0x2b8   : > { %5084 = vmatpush3.bf16.msra.mxu1 %v5432_v15 }
 0x2b9   : > { %5085 = vmatprep.subr.bf16.mxu1 %v5516_v34 }
 0x2ba   : > { %v1753_v17 = vpop.f32.mrb[20].mxu1  ;;  %v2077_v18 = vpop.f32.mrb[52].mxu0  ;;  %5144 = vmatpush3.bf16.msra.mxu0 %v5448_v10 }
 0x2bb   : > { %v1759_v19 = vadd.f32 %v1753_v17, %v1651_v4  ;;  %v4813_v20 = vpop.f32.mrb[21].mxu1  ;;  %v4873_v21 = vpop.f32.mrb[53].mxu0  ;;  %v5442_v4 = vld [vmem:[%s6685_s5 + $0x30] sm:$0xff]   ;;  %5145 = vmatprep.subr.bf16.mxu0 %v5516_v34 }
 0x2bc   : > { %v1756_v22 = vpop.f32.mrb[22].mxu1  ;;  %v2080_v23 = vpop.f32.mrb[54].mxu0  ;;  %5086 = vmatpush3.bf16.msra.mxu1 %v5433_v16 }
 0x2bd   : > { %v4814_v25 = vpop.f32.mrb[23].mxu1  ;;  %v4874_v26 = vpop.f32.mrb[55].mxu0  ;;  %5087 = vmatprep.subr.bf16.mxu1 %v5516_v34  ;;  %v1867_v27 = vadd.f32 %v1861_v58, %v1759_v19 }
 0x2be   : > { %5146 = vmatpush3.bf16.msra.mxu0 %v5449_v11 }
 0x2bf   : > { %5147 = vmatprep.subr.bf16.mxu0 %v5516_v34 }
 0x2c0   : > { %5088 = vmatpush3.bf16.msra.mxu1 %v5434_v24 }
 0x2c1   : > { %5089 = vmatprep.subr.bf16.mxu1 %v5516_v34 }
 0x2c4   : > { %5090 = vmatpush3.bf16.msra.mxu1 %v5435_v28 }
 0x2c5   : > { %5115 = vmatprep.subr.bf16.mxu1 %v5516_v34 }
 0x2c7   : > { %5092 = vmatmul.mubr.bf16.vlgmr.msra.gmra.mrb[48].mxu1 %v3165_v30 }
 0x2c8   : > { %5131 = vmatprep.mubr.msk.bf16.mxu1 %vm5517_vm0, %v5516_v34  ;;  %5116 = vmatpush3.bf16.msra.mxu1 %v5436_v52 }
 0x2c9   : > { %5117 = vmatprep.subr.bf16.mxu1 %v5516_v34 }
 0x2cc   : > { %5118 = vmatpush3.bf16.msra.mxu1 %v5437_v53  ;;  %v5450_v53 = vld [vmem:[%s6687_s7 + $0x30] sm:$0xff]  }
 0x2cd   : > { %5119 = vmatprep.subr.bf16.mxu1 %v5516_v34  ;;  %5148 = vmatpush3.bf16.msra.mxu0 %v5450_v53 }
 0x2ce   : > { %5149 = vmatprep.subr.bf16.mxu0 %v5516_v34 }
 0x2d0   : > { %5120 = vmatpush3.bf16.msra.mxu1 %v5438_v54  ;;  %v5451_v54 = vld [vmem:[%s6687_s7 + $0x38] sm:$0xff]  }
 0x2d1   : > { %5121 = vmatprep.subr.bf16.mxu1 %v5516_v34  ;;  %5150 = vmatpush3.bf16.msra.mxu0 %v5451_v54 }
 0x2d4   : > { %5122 = vmatpush3.bf16.msra.mxu1 %v5439_v55  ;;  %v3400_v55 = vld [vmem:[%s6686_s6] sm:$0x1] }
 0x2d5   : > { %5123 = vmatprep.subr.bf16.mxu1 %v5516_v34 }
 0x2d8   : > { %5124 = vmatpush3.bf16.msra.mxu1 %v5440_v56 }
 0x2d9   : > { %5125 = vmatprep.subr.bf16.mxu1 %v5516_v34 }
 0x2da   : > { %v1969_v31 = vpop.f32.mrb[24].mxu1  ;;  %v2293_v32 = vpop.f32.mrb[56].mxu0 }
 0x2db   : > { %v1975_v33 = vadd.f32 %v1969_v31, %v1867_v27  ;;  %v4853_v35 = vpop.f32.mrb[25].mxu1  ;;  %v4913_v36 = vpop.f32.mrb[57].mxu0 }
 0x2dc   : > { %v1972_v37 = vpop.f32.mrb[26].mxu1  ;;  %v2296_v38 = vpop.f32.mrb[58].mxu0  ;;  %5126 = vmatpush3.bf16.msra.mxu1 %v5441_v62 }
 0x2dd   : > { %v4854_v39 = vpop.f32.mrb[27].mxu1  ;;  %v4914_v40 = vpop.f32.mrb[59].mxu0  ;;  %v2083_v41 = vadd.f32 %v2077_v18, %v1975_v33  ;;  %5127 = vmatprep.subr.bf16.mxu1 %v5516_v34 }
 0x2e0   : > { %5128 = vmatpush3.bf16.msra.mxu1 %v5442_v4 }
 0x2e1   : > { %5129 = vmatprep.subr.bf16.mxu1 %v5516_v34  ;;  %v3507_v34 = vld [vmem:[%s6688_s8] sm:$0x1] }
 0x2e4   : > { %5130 = vmatpush3.bf16.msra.mxu1 %v5443_v5 }
 0x2fa   : > { %v2185_v42 = vpop.f32.mrb[28].mxu1  ;;  %v2509_v43 = vpop.f32.mrb[60].mxu0 }
 0x2fb   : > { %v2191_v44 = vadd.f32 %v2185_v42, %v2083_v41  ;;  %v4893_v45 = vpop.f32.mrb[29].mxu1  ;;  %v4953_v46 = vpop.f32.mrb[61].mxu0 }
 0x2fc   : > { %v2188_v47 = vpop.f32.mrb[30].mxu1  ;;  %v2512_v48 = vpop.f32.mrb[62].mxu0  ;;  %v3380_v46 = vld [vmem:[%s6684_s4] sm:$0x1] }
 0x2fd   : > { %v4894_v49 = vpop.f32.mrb[31].mxu1  ;;  %v4954_v50 = vpop.f32.mrb[63].mxu0  ;;  %v2299_v51 = vadd.f32 %v2293_v32, %v2191_v44 }
 0x31a   : > { %v2401_v57 = vpop.f32.mrb[32].mxu1  ;;  %v2725_v58 = vpop.f32.mrb[64].mxu0 }
 0x31b   : > { %v2407_v59 = vadd.f32 %v2401_v57, %v2299_v51  ;;  %v4933_v60 = vpop.f32.mrb[33].mxu1  ;;  %v4993_v61 = vpop.f32.mrb[65].mxu0 }
 0x31c   : > { %v2404_v63 = vpop.f32.mrb[34].mxu1  ;;  %v2728_v0 = vpop.f32.mrb[66].mxu0 }
 0x31d   : > { %v4934_v1 = vpop.f32.mrb[35].mxu1  ;;  %v4994_v2 = vpop.f32.mrb[67].mxu0  ;;  %v2515_v3 = vadd.f32 %v2509_v43, %v2407_v59 }
 0x33a   : > { %v2617_v12 = vpop.f32.mrb[36].mxu1  ;;  %v2941_v13 = vpop.f32.mrb[68].mxu0 }
 0x33b   : > { %v2623_v14 = vadd.f32 %v2617_v12, %v2515_v3  ;;  %v4973_v15 = vpop.f32.mrb[37].mxu1  ;;  %v5033_v16 = vpop.f32.mrb[69].mxu0 }
 0x33c   : > { %v2620_v17 = vpop.f32.mrb[38].mxu1  ;;  %v2944_v18 = vpop.f32.mrb[70].mxu0 }
 0x33d   : > { %v4974_v19 = vpop.f32.mrb[39].mxu1  ;;  %v5034_v20 = vpop.f32.mrb[71].mxu0  ;;  %v2731_v21 = vadd.f32 %v2725_v58, %v2623_v14 }
 0x35a   : > { %v2833_v22 = vpop.f32.mrb[40].mxu1  ;;  %v3157_v23 = vpop.f32.mrb[72].mxu0 }
 0x35b   : > { %v2839_v24 = vadd.f32 %v2833_v22, %v2731_v21  ;;  %v5013_v25 = vpop.f32.mrb[41].mxu1  ;;  %v5073_v26 = vpop.f32.mrb[73].mxu0 }
 0x35c   : > { %v2836_v27 = vpop.f32.mrb[42].mxu1  ;;  %v3160_v28 = vpop.f32.mrb[74].mxu0 }
 0x35d   : > { %v5014_v29 = vpop.f32.mrb[43].mxu1  ;;  %v5074_v30 = vpop.f32.mrb[75].mxu0  ;;  %v2947_v31 = vadd.f32 %v2941_v13, %v2839_v24 }
 0x37a   : > { %v3049_v32 = vpop.f32.mrb[44].mxu1  ;;  %v3373_v33 = vpop.f32.mrb[76].mxu0 }
 0x37b   : > { %v3055_v35 = vadd.f32 %v3049_v32, %v2947_v31  ;;  %v5053_v36 = vpop.f32.mrb[45].mxu1  ;;  %v5113_v37 = vpop.f32.mrb[77].mxu0 }
 0x37c   : > { %v3052_v38 = vpop.f32.mrb[46].mxu1  ;;  %v3376_v39 = vpop.f32.mrb[78].mxu0 }
 0x37d   : > { %v5054_v40 = vpop.f32.mrb[47].mxu1  ;;  %v5114_v41 = vpop.f32.mrb[79].mxu0  ;;  %v3163_v42 = vadd.f32 %v3157_v23, %v3055_v35 }
 0x39a   : > { %v3265_v43 = vpop.f32.mrb[48].mxu1 }
 0x39b   : > { %v3271_v44 = vadd.f32 %v3265_v43, %v3163_v42  ;;  %v5093_v45 = vpop.f32.mrb[49].mxu1 }
 0x39c   : > { %v3268_v47 = vpop.f32.mrb[50].mxu1 }
 0x39d   : > { %v3379_v48 = vadd.f32 %v3373_v33, %v3271_v44  ;;  %v5094_v49 = vpop.f32.mrb[51].mxu1 }
 0x39f   : > { %v3381_v50 = vadd.f32 %v3380_v46, %v3379_v48 }
 0x3a1   : > { %v3382_v51 = vmax.f32 %v3381_v50, 0.0 }
 0x3a3   : > { %v3383_v52 = vpack.c.bf16 %v3382_v51, %v3382_v51 }
 0x3a5   : > { %5132 = vmatmul.mubr.bf16.vlgmr.msra.gmra.mrb[52].mxu1 %v3383_v52 }
 0x478   : > { %v3483_v56 = vpop.f32.mrb[52].mxu1 }
 0x479   : > { %v3484_v57 = vadd.f32 %v3483_v56, %v3400_v55  ;;  %v5133_v58 = vpop.f32.mrb[53].mxu1 }
 0x47a   : > { %v3486_v59 = vpop.f32.mrb[54].mxu1 }
 0x47b   : > { %v3489_v60 = vmax.f32 %v3484_v57, 0.0  ;;  %v5134_v61 = vpop.f32.mrb[55].mxu1 }
 0x47d   : > { %v3490_v62 = vpack.c.bf16 %v3489_v60, %v3489_v60 }
 0x47f   : > { %5152 = vmatmul.mubr.bf16.vlgmr.msra.gmra.mrb[80].mxu0 %v3490_v62 }
 0x552   : > { %v3590_v63 = vpop.f32.mrb[80].mxu0 }
 0x553   : > { %v3591_v0 = vadd.f32 %v3590_v63, %v3507_v34  ;;  %v5153_v1 = vpop.f32.mrb[81].mxu0 }
 0x554   : > { %v3593_v2 = vpop.f32.mrb[82].mxu0 }
 0x555   : > { %3596 = vst [vmem:[%s324_s22] sm:$0x1] %v3591_v0  ;;  %v5154_v3 = vpop.f32.mrb[83].mxu0 }
 0x556   : > { %5465 = shalt.err (!%p5462_p3)
}
 0x557   : > { %s5466_s28 = scalar_lea.hbm %s6638_s25, 16  ;;  %s5470_s22 = scalar_lea.hbm %s6689_s9, 32 }
 0x558   : > { %p5467_p4 = scmp.ne.s32.totalorder %s6638_s25, %s5466_s28  ;;  %p5471_p9 = scmp.lt.u32.totalorder %s6638_s25, %s6689_s9 }
 0x559   : > { %p5472_p10 = scmp.lt.u32.totalorder %s5470_s22, %s5466_s28  ;;  %p5474_p12 = scmp.lt.u32.totalorder %s5466_s28, %s6638_s25 }
 0x55a   : > { %p5468_p7 = pnand %p5467_p4, %p5607_p5 }
 0x55b   : > { %p5473_p11 = por %p5472_p10, %p5471_p9 }
 0x55c   : > { %p5469_p8 = pneg %p5468_p7 }
 0x55d   : > { %p5475_p13 = por %p5474_p12, %p5473_p11 }
 0x55f   : > { %p5476_p0 = pnand %p5475_p13, %p5469_p8 }
 0x561   : > { %5479 = shalt.err (!%p5476_p0)
}
 0x562   : > { %5155 = dma.vmem_to_hbm [thread:$0]  (%p5607_p5), %s6640_s23, 16, %s6638_s25, %s3598_s26  }
 0x563 PF: > { %p5161_p1 = scmp.ge.s32.totalorder %s5514_s12, 2  ;;  %s3622_s13 = sand.u32 1, %s5502_s30  }
 0x564   : > { %s3623_s16 = scalar_lea.sflag [#allocation4], %s3622_s13 }
 0x565   : > { %p5158_p2 = pnand %p5161_p1, %p5611_p6 }
 0x567   : > { %5497 = dma.done.wait (!%p5158_p2), %s3623_s16, 16  }
 0x568   : > { %5499 = vsyncadd (!%p5158_p2), %s3623_s16, 4294967280  ;;  %p19_p3 = scmp.ge.s32.totalorder %s5594_s15, 4   ;;  %s6692_s30 = smov %s5506_s10 }
 0x569   : > { %s6693_s10 = smov %s5510_s11  ;;  %s6694_s11 = smov %s5605_s18 }
 0x56a   : > { %s6695_s12 = smov %s5594_s15  ;;  %21 = sbr.rel (!%p19_p3) target bundleno = 3 (0x3), region = 115 }
 0x571   :  { %3627 = vsyncpa [#allocation4], 1 }
 0x572   :  { %3629 = vsyncpa [#allocation4 + $0x1], 1 }

</bundles_post_ra>
